<compile_context>
chip_gen: v7x
topology: tpu7x:2x2x1
jax: 0.10.0
libtpu: 0.0.40
codegen_flags: <defaults>
</compile_context>

<pallas_src>
import functools

import jax
import jax.numpy as jnp
import numpy as np
from jax import lax
from jax.experimental import pallas as pl
from jax.experimental.pallas import tpu as pltpu

HIDDEN_PAD = 128  # fc1 hidden size 50 padded to a full 128-lane register


# ----------------------------------------------------------------------------
# One-time weight preparation (review item: pre-transpose / pre-reshape once)
# ----------------------------------------------------------------------------
def _band_matrices(w, w_in, n_out, parity, dtype):
    """Banded 'conv along width' weight matrix.

    w: [CO, CI, KH, KW].  Returns A of shape [KH, w_in*CI, n_out*CO] with
        A[kh, wi*CI+ci, j*CO+co] = w[co, ci, kh, wi - (2*j + parity)]
    (zero outside 0 <= kw < KW).  Contracting an input row (lanes = wi*CI+ci)
    with A[kh] and summing over kh yields the valid conv output at the
    stride-2 output columns ow = 2*j + parity, minor layout (j, co).
    """
    CO, CI, KH, KW = w.shape
    wi = np.arange(w_in)[:, None]                     # [w_in, 1]
    j = np.arange(n_out)[None, :]                     # [1, n_out]
    kw = wi - (2 * j + parity)                        # [w_in, n_out]
    valid = (kw >= 0) & (kw < KW)
    kw_c = np.clip(kw, 0, KW - 1)
    wt = jnp.transpose(w, (2, 3, 1, 0))               # [KH, KW, CI, CO]
    a = wt[:, kw_c, :, :]                             # [KH, w_in, n_out, CI, CO]
    a = a * jnp.asarray(valid, w.dtype)[None, :, :, None, None]
    a = jnp.transpose(a, (0, 1, 3, 2, 4))             # [KH, w_in, CI, n_out, CO]
    return a.reshape(KH, w_in * CI, n_out * CO).astype(dtype)


def prepare_params(params, compute_dtype=jnp.bfloat16):
    """Build MXU-ready weights once (outside the per-step forward)."""
    w1, b1 = params["conv1_w"], params["conv1_b"]     # [10,1,5,5], [10]
    w2, b2 = params["conv2_w"], params["conv2_b"]     # [20,10,5,5], [20]
    f1w, f1b = params["fc1_w"], params["fc1_b"]       # [50,320], [50]
    f2w, f2b = params["fc2_w"], params["fc2_b"]       # [10,50], [10]

    # fc1: fold PyTorch's NCHW view(-1,320) ordering (c*16+i*4+j) into a
    # weight laid out for our NHWC activations (i, j*20+c), pad hidden->128.
    fc1 = f1w.reshape(50, 20, 4, 4).transpose(2, 3, 1, 0).reshape(4, 80, 50)
    fc1 = jnp.pad(fc1, ((0, 0), (0, 0), (0, HIDDEN_PAD - 50)))
    fc2 = jnp.pad(f2w.T, ((0, HIDDEN_PAD - 50), (0, 0)))  # [128, 10]

    return {
        "a1e": _band_matrices(w1, 28, 12, 0, compute_dtype),   # [5, 28, 120]
        "a1o": _band_matrices(w1, 28, 12, 1, compute_dtype),   # [5, 28, 120]
        "b1": jnp.tile(b1, 12).reshape(1, 120).astype(jnp.float32),
        "a2e": _band_matrices(w2, 12, 4, 0, compute_dtype),    # [5, 120, 80]
        "a2o": _band_matrices(w2, 12, 4, 1, compute_dtype),    # [5, 120, 80]
        "b2": jnp.tile(b2, 4).reshape(1, 80).astype(jnp.float32),
        "fc1w": fc1.astype(compute_dtype),                     # [4, 80, 128]
        "fc1b": jnp.pad(f1b, (0, HIDDEN_PAD - 50)).reshape(1, HIDDEN_PAD)
                   .astype(jnp.float32),
        "fc2w": fc2.astype(compute_dtype),                     # [128, 10]
        "fc2b": f2b.reshape(1, 10).astype(jnp.float32),
    }


# ----------------------------------------------------------------------------
# Fused forward kernel (one grid step = `bb` samples, everything in VMEM)
# ----------------------------------------------------------------------------
def _fused_net_kernel(x_ref, a1e_ref, a1o_ref, b1_ref,
                      a2e_ref, a2o_ref, b2_ref,
                      fc1w_ref, fc1b_ref, fc2w_ref, fc2b_ref,
                      out_ref, *, bb):
    f32 = jnp.float32
    cdt = x_ref.dtype                                   # matmul operand dtype (bf16)

    x = x_ref[0]                                        # [bb, 28, 28]

    # ---- conv1 (+bias) + 2x2 max-pool + ReLU (banded MXU matmuls) --------
    acc_e = jnp.zeros((bb * 24, 120), f32)              # even output columns
    acc_o = jnp.zeros((bb * 24, 120), f32)              # odd  output columns
    for kh in range(5):
        lhs = x[:, kh:kh + 24, :].reshape(bb * 24, 28)  # rows = (b, oh)
        acc_e = acc_e + jnp.dot(lhs, a1e_ref[kh], preferred_element_type=f32)
        acc_o = acc_o + jnp.dot(lhs, a1o_ref[kh], preferred_element_type=f32)
    h = jnp.maximum(acc_e, acc_o) + b1_ref[...]         # width-pooled [bb*24,120]
    h = jnp.max(h.reshape(bb * 12, 2, 120), axis=1)     # height pool
    p1 = jnp.maximum(h, 0.0).astype(cdt)                # ReLU; NHWC [(b i),(j c)]

    # ---- conv2 (+bias) + 2x2 max-pool + ReLU  (Dropout2d = identity) -----
    p1 = p1.reshape(bb, 12, 120)
    acc_e = jnp.zeros((bb * 8, 80), f32)
    acc_o = jnp.zeros((bb * 8, 80), f32)
    for kh in range(5):
        lhs = p1[:, kh:kh + 8, :].reshape(bb * 8, 120)
        acc_e = acc_e + jnp.dot(lhs, a2e_ref[kh], preferred_element_type=f32)
        acc_o = acc_o + jnp.dot(lhs, a2o_ref[kh], preferred_element_type=f32)
    h = jnp.maximum(acc_e, acc_o) + b2_ref[...]         # [bb*8, 80]
    h = jnp.max(h.reshape(bb * 4, 2, 80), axis=1)
    p2 = jnp.maximum(h, 0.0).astype(cdt)                # NHWC [(b i),(j c)]

    # ---- fc1 + ReLU (flatten folded into pre-permuted fc1 weights) -------
    p2 = p2.reshape(bb, 4, 80)
    acc = jnp.zeros((bb, HIDDEN_PAD), f32)
    for i in range(4):
        acc = acc + jnp.dot(p2[:, i, :], fc1w_ref[i], preferred_element_type=f32)
    hid = jnp.maximum(acc + fc1b_ref[...], 0.0).astype(cdt)   # [bb, 128]

    # ---- fc2 + log_softmax (F.dropout = identity in eval mode) -----------
    logits = jnp.dot(hid, fc2w_ref[...], preferred_element_type=f32) + fc2b_ref[...]
    m = jnp.max(logits, axis=-1, keepdims=True)
    s = logits - m
    lse = jnp.log(jnp.sum(jnp.exp(s), axis=-1, keepdims=True))
    out_ref[0] = (s - lse).astype(out_ref.dtype)


def net_forward(x, prepped, *, block_b=4):
    """x: [B, 1, 28, 28] float32 -> log-probs [B, 10] float32."""
    B = x.shape[0]
    cdt = prepped["a1e"].dtype
    bb = max(1, min(block_b, B))
    nb = pl.cdiv(B, bb)
    bp = nb * bb

    xb = x.reshape(B, 28, 28).astype(cdt)
    if bp != B:
        xb = jnp.pad(xb, ((0, bp - B), (0, 0), (0, 0)))
    xb = xb.reshape(nb, bb, 28, 28)

    wspec3 = lambda s: pl.BlockSpec(s, lambda i: (0, 0, 0))
    wspec2 = lambda s: pl.BlockSpec(s, lambda i: (0, 0))

    out = pl.pallas_call(
        functools.partial(_fused_net_kernel, bb=bb),
        out_shape=jax.ShapeDtypeStruct((nb, bb, 10), jnp.float32),
        grid=(nb,),
        in_specs=[
            pl.BlockSpec((1, bb, 28, 28), lambda i: (i, 0, 0, 0)),     # x
            wspec3((5, 28, 120)), wspec3((5, 28, 120)), wspec2((1, 120)),   # conv1
            wspec3((5, 120, 80)), wspec3((5, 120, 80)), wspec2((1, 80)),    # conv2
            wspec3((4, 80, HIDDEN_PAD)), wspec2((1, HIDDEN_PAD)),           # fc1
            wspec2((HIDDEN_PAD, 10)), wspec2((1, 10)),                      # fc2
        ],
        out_specs=pl.BlockSpec((1, bb, 10), lambda i: (i, 0, 0)),
        compiler_params=pltpu.CompilerParams(
            dimension_semantics=("parallel",),       # megacore (v7x) batch sharding
            vmem_limit_bytes=32 * 1024 * 1024,
        ),
    )(xb, prepped["a1e"], prepped["a1o"], prepped["b1"],
      prepped["a2e"], prepped["a2o"], prepped["b2"],
      prepped["fc1w"], prepped["fc1b"], prepped["fc2w"], prepped["fc2b"])

    return out.reshape(bp, 10)[:B]


# ----------------------------------------------------------------------------
# Pure-JAX reference (for self-check) and parameter init
# ----------------------------------------------------------------------------
def reference_forward(x, params):
    dn = ("NCHW", "OIHW", "NCHW")
    y = lax.conv_general_dilated(x, params["conv1_w"], (1, 1), "VALID",
                                 dimension_numbers=dn)
    y = y + params["conv1_b"][None, :, None, None]
    y = lax.reduce_window(y, -jnp.inf, lax.max, (1, 1, 2, 2), (1, 1, 2, 2), "VALID")
    y = jax.nn.relu(y)
    y = lax.conv_general_dilated(y, params["conv2_w"], (1, 1), "VALID",
                                 dimension_numbers=dn)
    y = y + params["conv2_b"][None, :, None, None]
    y = lax.reduce_window(y, -jnp.inf, lax.max, (1, 1, 2, 2), (1, 1, 2, 2), "VALID")
    y = jax.nn.relu(y)
    y = y.reshape(y.shape[0], 320)
    y = jax.nn.relu(y @ params["fc1_w"].T + params["fc1_b"])
    y = y @ params["fc2_w"].T + params["fc2_b"]
    return jax.nn.log_softmax(y, axis=-1)


def init_params(key):
    ks = jax.random.split(key, 8)
    scale = 0.1
    return {
        "conv1_w": scale * jax.random.normal(ks[0], (10, 1, 5, 5), jnp.float32),
        "conv1_b": scale * jax.random.normal(ks[1], (10,), jnp.float32),
        "conv2_w": scale * jax.random.normal(ks[2], (20, 10, 5, 5), jnp.float32),
        "conv2_b": scale * jax.random.normal(ks[3], (20,), jnp.float32),
        "fc1_w": scale * jax.random.normal(ks[4], (50, 320), jnp.float32),
        "fc1_b": scale * jax.random.normal(ks[5], (50,), jnp.float32),
        "fc2_w": scale * jax.random.normal(ks[6], (10, 50), jnp.float32),
        "fc2_b": scale * jax.random.normal(ks[7], (10,), jnp.float32),
    }


if __name__ == "__main__":
    key = jax.random.PRNGKey(0)
    pkey, xkey = jax.random.split(key)
    params = init_params(pkey)
    prepped = prepare_params(params)                       # bf16 matmul operands
    # MNIST-shaped input (28x28, 1 channel is required so the flattened
    # feature size is 320, as fc1 expects).  B=8 -> grid of 2 parallel steps.
    x = jax.random.normal(xkey, (8, 1, 28, 28), jnp.float32)

    fwd = jax.jit(functools.partial(net_forward, block_b=4))
    out = jax.block_until_ready(fwd(x, prepped))

    assert out.shape == (8, 10), out.shape
    # log_softmax rows must exp-sum to ~1 (epilogue kept in f32).
    assert bool(jnp.allclose(jnp.exp(out).sum(axis=-1), 1.0, atol=1e-4))
    # Compare against a pure-JAX f32 reference (loose tol: bf16 MXU operands).
    ref = reference_forward(x, params)
    err = float(jnp.max(jnp.abs(out - ref)))
    assert err < 0.1, f"max |pallas - reference| = {err}"
    print("KERNEL_OK")
</pallas_src>

<mosaic_0001>
module attributes {stable_mosaic.version = 11 : i64} {
  func.func @_fused_net_kernel(%arg0: i32, %arg1: memref<1x4x28x28xbf16, #tpu.memory_space<vmem>>, %arg2: memref<5x28x120xbf16, #tpu.memory_space<vmem>>, %arg3: memref<5x28x120xbf16, #tpu.memory_space<vmem>>, %arg4: memref<1x120xf32, #tpu.memory_space<vmem>>, %arg5: memref<5x120x80xbf16, #tpu.memory_space<vmem>>, %arg6: memref<5x120x80xbf16, #tpu.memory_space<vmem>>, %arg7: memref<1x80xf32, #tpu.memory_space<vmem>>, %arg8: memref<4x80x128xbf16, #tpu.memory_space<vmem>>, %arg9: memref<1x128xf32, #tpu.memory_space<vmem>>, %arg10: memref<128x10xbf16, #tpu.memory_space<vmem>>, %arg11: memref<1x10xf32, #tpu.memory_space<vmem>>, %arg12: memref<1x4x10xf32, #tpu.memory_space<vmem>>) attributes {dimension_semantics = [#tpu.dimension_semantics<parallel>], iteration_bounds = array<i64: 2>, scalar_prefetch = 0 : i64, scratch_operands = 0 : i64, tpu.core_type = #tpu.core_type<tc>, window_params = [{transform_indices = @transform_0, window_bounds = array<i64: 1, 4, 28, 28>}, {pipeline_mode = #tpu.pipeline_mode<synchronous>, transform_indices = @transform_1, window_bounds = array<i64: 5, 28, 120>}, {pipeline_mode = #tpu.pipeline_mode<synchronous>, transform_indices = @transform_2, window_bounds = array<i64: 5, 28, 120>}, {pipeline_mode = #tpu.pipeline_mode<synchronous>, transform_indices = @transform_3, window_bounds = array<i64: 1, 120>}, {pipeline_mode = #tpu.pipeline_mode<synchronous>, transform_indices = @transform_4, window_bounds = array<i64: 5, 120, 80>}, {pipeline_mode = #tpu.pipeline_mode<synchronous>, transform_indices = @transform_5, window_bounds = array<i64: 5, 120, 80>}, {pipeline_mode = #tpu.pipeline_mode<synchronous>, transform_indices = @transform_6, window_bounds = array<i64: 1, 80>}, {pipeline_mode = #tpu.pipeline_mode<synchronous>, transform_indices = @transform_7, window_bounds = array<i64: 4, 80, 128>}, {pipeline_mode = #tpu.pipeline_mode<synchronous>, transform_indices = @transform_8, window_bounds = array<i64: 1, 128>}, {pipeline_mode = #tpu.pipeline_mode<synchronous>, transform_indices = @transform_9, window_bounds = array<i64: 128, 10>}, {pipeline_mode = #tpu.pipeline_mode<synchronous>, transform_indices = @transform_10, window_bounds = array<i64: 1, 10>}, {transform_indices = @transform_11, window_bounds = array<i64: 1, 4, 10>}]} {
    %c0 = arith.constant 0 : index
    %c0_0 = arith.constant 0 : index
    %c0_1 = arith.constant 0 : index
    %c0_2 = arith.constant 0 : index
    %0 = vector.load %arg1[%c0, %c0_0, %c0_1, %c0_2] : memref<1x4x28x28xbf16, #tpu.memory_space<vmem>>, vector<1x4x28x28xbf16>
    %1 = vector.shape_cast %0 : vector<1x4x28x28xbf16> to vector<4x28x28xbf16>
    %cst = arith.constant 0.000000e+00 : f32
    %2 = vector.broadcast %cst : f32 to vector<96x120xf32>
    %cst_3 = arith.constant 0.000000e+00 : f32
    %3 = vector.broadcast %cst_3 : f32 to vector<96x120xf32>
    %4 = vector.extract_strided_slice %1 {offsets = [0, 0, 0], sizes = [4, 24, 28], strides = [1, 1, 1]} : vector<4x28x28xbf16> to vector<4x24x28xbf16>
    %5 = vector.shape_cast %4 : vector<4x24x28xbf16> to vector<96x28xbf16>
    %c0_4 = arith.constant 0 : index
    %c0_5 = arith.constant 0 : index
    %c0_6 = arith.constant 0 : index
    %6 = vector.load %arg2[%c0_4, %c0_5, %c0_6] : memref<5x28x120xbf16, #tpu.memory_space<vmem>>, vector<1x28x120xbf16>
    %7 = vector.shape_cast %6 : vector<1x28x120xbf16> to vector<28x120xbf16>
    %cst_7 = arith.constant dense<0.000000e+00> : vector<96x120xf32>
    %8 = tpu.matmul %5, %7, %cst_7 {dimension_numbers = #tpu.dot_dimension_numbers<[1], [0], [0], [1], [0, 0, 1, 1], [], []>} : vector<96x28xbf16>, vector<28x120xbf16>, vector<96x120xf32> -> vector<96x120xf32>
    %9 = arith.addf %2, %8 : vector<96x120xf32>
    %c0_8 = arith.constant 0 : index
    %c0_9 = arith.constant 0 : index
    %c0_10 = arith.constant 0 : index
    %10 = vector.load %arg3[%c0_8, %c0_9, %c0_10] : memref<5x28x120xbf16, #tpu.memory_space<vmem>>, vector<1x28x120xbf16>
    %11 = vector.shape_cast %10 : vector<1x28x120xbf16> to vector<28x120xbf16>
    %cst_11 = arith.constant dense<0.000000e+00> : vector<96x120xf32>
    %12 = tpu.matmul %5, %11, %cst_11 {dimension_numbers = #tpu.dot_dimension_numbers<[1], [0], [0], [1], [0, 0, 1, 1], [], []>} : vector<96x28xbf16>, vector<28x120xbf16>, vector<96x120xf32> -> vector<96x120xf32>
    %13 = arith.addf %3, %12 : vector<96x120xf32>
    %14 = vector.extract_strided_slice %1 {offsets = [0, 1, 0], sizes = [4, 24, 28], strides = [1, 1, 1]} : vector<4x28x28xbf16> to vector<4x24x28xbf16>
    %15 = vector.shape_cast %14 : vector<4x24x28xbf16> to vector<96x28xbf16>
    %c1 = arith.constant 1 : index
    %c0_12 = arith.constant 0 : index
    %c0_13 = arith.constant 0 : index
    %16 = vector.load %arg2[%c1, %c0_12, %c0_13] : memref<5x28x120xbf16, #tpu.memory_space<vmem>>, vector<1x28x120xbf16>
    %17 = vector.shape_cast %16 : vector<1x28x120xbf16> to vector<28x120xbf16>
    %cst_14 = arith.constant dense<0.000000e+00> : vector<96x120xf32>
    %18 = tpu.matmul %15, %17, %cst_14 {dimension_numbers = #tpu.dot_dimension_numbers<[1], [0], [0], [1], [0, 0, 1, 1], [], []>} : vector<96x28xbf16>, vector<28x120xbf16>, vector<96x120xf32> -> vector<96x120xf32>
    %19 = arith.addf %9, %18 : vector<96x120xf32>
    %c1_15 = arith.constant 1 : index
    %c0_16 = arith.constant 0 : index
    %c0_17 = arith.constant 0 : index
    %20 = vector.load %arg3[%c1_15, %c0_16, %c0_17] : memref<5x28x120xbf16, #tpu.memory_space<vmem>>, vector<1x28x120xbf16>
    %21 = vector.shape_cast %20 : vector<1x28x120xbf16> to vector<28x120xbf16>
    %cst_18 = arith.constant dense<0.000000e+00> : vector<96x120xf32>
    %22 = tpu.matmul %15, %21, %cst_18 {dimension_numbers = #tpu.dot_dimension_numbers<[1], [0], [0], [1], [0, 0, 1, 1], [], []>} : vector<96x28xbf16>, vector<28x120xbf16>, vector<96x120xf32> -> vector<96x120xf32>
    %23 = arith.addf %13, %22 : vector<96x120xf32>
    %24 = vector.extract_strided_slice %1 {offsets = [0, 2, 0], sizes = [4, 24, 28], strides = [1, 1, 1]} : vector<4x28x28xbf16> to vector<4x24x28xbf16>
    %25 = vector.shape_cast %24 : vector<4x24x28xbf16> to vector<96x28xbf16>
    %c2 = arith.constant 2 : index
    %c0_19 = arith.constant 0 : index
    %c0_20 = arith.constant 0 : index
    %26 = vector.load %arg2[%c2, %c0_19, %c0_20] : memref<5x28x120xbf16, #tpu.memory_space<vmem>>, vector<1x28x120xbf16>
    %27 = vector.shape_cast %26 : vector<1x28x120xbf16> to vector<28x120xbf16>
    %cst_21 = arith.constant dense<0.000000e+00> : vector<96x120xf32>
    %28 = tpu.matmul %25, %27, %cst_21 {dimension_numbers = #tpu.dot_dimension_numbers<[1], [0], [0], [1], [0, 0, 1, 1], [], []>} : vector<96x28xbf16>, vector<28x120xbf16>, vector<96x120xf32> -> vector<96x120xf32>
    %29 = arith.addf %19, %28 : vector<96x120xf32>
    %c2_22 = arith.constant 2 : index
    %c0_23 = arith.constant 0 : index
    %c0_24 = arith.constant 0 : index
    %30 = vector.load %arg3[%c2_22, %c0_23, %c0_24] : memref<5x28x120xbf16, #tpu.memory_space<vmem>>, vector<1x28x120xbf16>
    %31 = vector.shape_cast %30 : vector<1x28x120xbf16> to vector<28x120xbf16>
    %cst_25 = arith.constant dense<0.000000e+00> : vector<96x120xf32>
    %32 = tpu.matmul %25, %31, %cst_25 {dimension_numbers = #tpu.dot_dimension_numbers<[1], [0], [0], [1], [0, 0, 1, 1], [], []>} : vector<96x28xbf16>, vector<28x120xbf16>, vector<96x120xf32> -> vector<96x120xf32>
    %33 = arith.addf %23, %32 : vector<96x120xf32>
    %34 = vector.extract_strided_slice %1 {offsets = [0, 3, 0], sizes = [4, 24, 28], strides = [1, 1, 1]} : vector<4x28x28xbf16> to vector<4x24x28xbf16>
    %35 = vector.shape_cast %34 : vector<4x24x28xbf16> to vector<96x28xbf16>
    %c3 = arith.constant 3 : index
    %c0_26 = arith.constant 0 : index
    %c0_27 = arith.constant 0 : index
    %36 = vector.load %arg2[%c3, %c0_26, %c0_27] : memref<5x28x120xbf16, #tpu.memory_space<vmem>>, vector<1x28x120xbf16>
    %37 = vector.shape_cast %36 : vector<1x28x120xbf16> to vector<28x120xbf16>
    %cst_28 = arith.constant dense<0.000000e+00> : vector<96x120xf32>
    %38 = tpu.matmul %35, %37, %cst_28 {dimension_numbers = #tpu.dot_dimension_numbers<[1], [0], [0], [1], [0, 0, 1, 1], [], []>} : vector<96x28xbf16>, vector<28x120xbf16>, vector<96x120xf32> -> vector<96x120xf32>
    %39 = arith.addf %29, %38 : vector<96x120xf32>
    %c3_29 = arith.constant 3 : index
    %c0_30 = arith.constant 0 : index
    %c0_31 = arith.constant 0 : index
    %40 = vector.load %arg3[%c3_29, %c0_30, %c0_31] : memref<5x28x120xbf16, #tpu.memory_space<vmem>>, vector<1x28x120xbf16>
    %41 = vector.shape_cast %40 : vector<1x28x120xbf16> to vector<28x120xbf16>
    %cst_32 = arith.constant dense<0.000000e+00> : vector<96x120xf32>
    %42 = tpu.matmul %35, %41, %cst_32 {dimension_numbers = #tpu.dot_dimension_numbers<[1], [0], [0], [1], [0, 0, 1, 1], [], []>} : vector<96x28xbf16>, vector<28x120xbf16>, vector<96x120xf32> -> vector<96x120xf32>
    %43 = arith.addf %33, %42 : vector<96x120xf32>
    %44 = vector.extract_strided_slice %1 {offsets = [0, 4, 0], sizes = [4, 24, 28], strides = [1, 1, 1]} : vector<4x28x28xbf16> to vector<4x24x28xbf16>
    %45 = vector.shape_cast %44 : vector<4x24x28xbf16> to vector<96x28xbf16>
    %c4 = arith.constant 4 : index
    %c0_33 = arith.constant 0 : index
    %c0_34 = arith.constant 0 : index
    %46 = vector.load %arg2[%c4, %c0_33, %c0_34] : memref<5x28x120xbf16, #tpu.memory_space<vmem>>, vector<1x28x120xbf16>
    %47 = vector.shape_cast %46 : vector<1x28x120xbf16> to vector<28x120xbf16>
    %cst_35 = arith.constant dense<0.000000e+00> : vector<96x120xf32>
    %48 = tpu.matmul %45, %47, %cst_35 {dimension_numbers = #tpu.dot_dimension_numbers<[1], [0], [0], [1], [0, 0, 1, 1], [], []>} : vector<96x28xbf16>, vector<28x120xbf16>, vector<96x120xf32> -> vector<96x120xf32>
    %49 = arith.addf %39, %48 : vector<96x120xf32>
    %c4_36 = arith.constant 4 : index
    %c0_37 = arith.constant 0 : index
    %c0_38 = arith.constant 0 : index
    %50 = vector.load %arg3[%c4_36, %c0_37, %c0_38] : memref<5x28x120xbf16, #tpu.memory_space<vmem>>, vector<1x28x120xbf16>
    %51 = vector.shape_cast %50 : vector<1x28x120xbf16> to vector<28x120xbf16>
    %cst_39 = arith.constant dense<0.000000e+00> : vector<96x120xf32>
    %52 = tpu.matmul %45, %51, %cst_39 {dimension_numbers = #tpu.dot_dimension_numbers<[1], [0], [0], [1], [0, 0, 1, 1], [], []>} : vector<96x28xbf16>, vector<28x120xbf16>, vector<96x120xf32> -> vector<96x120xf32>
    %53 = arith.addf %43, %52 : vector<96x120xf32>
    %54 = arith.maximumf %49, %53 : vector<96x120xf32>
    %c0_40 = arith.constant 0 : index
    %c0_41 = arith.constant 0 : index
    %55 = vector.load %arg4[%c0_40, %c0_41] : memref<1x120xf32, #tpu.memory_space<vmem>>, vector<1x120xf32>
    %56 = vector.broadcast %55 : vector<1x120xf32> to vector<96x120xf32>
    %57 = arith.addf %54, %56 : vector<96x120xf32>
    %58 = vector.shape_cast %57 : vector<96x120xf32> to vector<48x2x120xf32>
    %cst_42 = arith.constant dense<0xFF800000> : vector<48x120xf32>
    %59 = vector.multi_reduction <maximumf>, %58, %cst_42 [1] : vector<48x2x120xf32> to vector<48x120xf32>
    %cst_43 = arith.constant 0.000000e+00 : f32
    %60 = vector.broadcast %cst_43 : f32 to vector<48x120xf32>
    %61 = arith.maximumf %59, %60 : vector<48x120xf32>
    %62 = arith.truncf %61 : vector<48x120xf32> to vector<48x120xbf16>
    %63 = vector.shape_cast %62 : vector<48x120xbf16> to vector<4x12x120xbf16>
    %cst_44 = arith.constant 0.000000e+00 : f32
    %64 = vector.broadcast %cst_44 : f32 to vector<32x80xf32>
    %cst_45 = arith.constant 0.000000e+00 : f32
    %65 = vector.broadcast %cst_45 : f32 to vector<32x80xf32>
    %66 = vector.extract_strided_slice %63 {offsets = [0, 0, 0], sizes = [4, 8, 120], strides = [1, 1, 1]} : vector<4x12x120xbf16> to vector<4x8x120xbf16>
    %67 = vector.shape_cast %66 : vector<4x8x120xbf16> to vector<32x120xbf16>
    %c0_46 = arith.constant 0 : index
    %c0_47 = arith.constant 0 : index
    %c0_48 = arith.constant 0 : index
    %68 = vector.load %arg5[%c0_46, %c0_47, %c0_48] : memref<5x120x80xbf16, #tpu.memory_space<vmem>>, vector<1x120x80xbf16>
    %69 = vector.shape_cast %68 : vector<1x120x80xbf16> to vector<120x80xbf16>
    %cst_49 = arith.constant dense<0.000000e+00> : vector<32x80xf32>
    %70 = tpu.matmul %67, %69, %cst_49 {dimension_numbers = #tpu.dot_dimension_numbers<[1], [0], [0], [1], [0, 0, 1, 1], [], []>} : vector<32x120xbf16>, vector<120x80xbf16>, vector<32x80xf32> -> vector<32x80xf32>
    %71 = arith.addf %64, %70 : vector<32x80xf32>
    %c0_50 = arith.constant 0 : index
    %c0_51 = arith.constant 0 : index
    %c0_52 = arith.constant 0 : index
    %72 = vector.load %arg6[%c0_50, %c0_51, %c0_52] : memref<5x120x80xbf16, #tpu.memory_space<vmem>>, vector<1x120x80xbf16>
    %73 = vector.shape_cast %72 : vector<1x120x80xbf16> to vector<120x80xbf16>
    %cst_53 = arith.constant dense<0.000000e+00> : vector<32x80xf32>
    %74 = tpu.matmul %67, %73, %cst_53 {dimension_numbers = #tpu.dot_dimension_numbers<[1], [0], [0], [1], [0, 0, 1, 1], [], []>} : vector<32x120xbf16>, vector<120x80xbf16>, vector<32x80xf32> -> vector<32x80xf32>
    %75 = arith.addf %65, %74 : vector<32x80xf32>
    %76 = vector.extract_strided_slice %63 {offsets = [0, 1, 0], sizes = [4, 8, 120], strides = [1, 1, 1]} : vector<4x12x120xbf16> to vector<4x8x120xbf16>
    %77 = vector.shape_cast %76 : vector<4x8x120xbf16> to vector<32x120xbf16>
    %c1_54 = arith.constant 1 : index
    %c0_55 = arith.constant 0 : index
    %c0_56 = arith.constant 0 : index
    %78 = vector.load %arg5[%c1_54, %c0_55, %c0_56] : memref<5x120x80xbf16, #tpu.memory_space<vmem>>, vector<1x120x80xbf16>
    %79 = vector.shape_cast %78 : vector<1x120x80xbf16> to vector<120x80xbf16>
    %cst_57 = arith.constant dense<0.000000e+00> : vector<32x80xf32>
    %80 = tpu.matmul %77, %79, %cst_57 {dimension_numbers = #tpu.dot_dimension_numbers<[1], [0], [0], [1], [0, 0, 1, 1], [], []>} : vector<32x120xbf16>, vector<120x80xbf16>, vector<32x80xf32> -> vector<32x80xf32>
    %81 = arith.addf %71, %80 : vector<32x80xf32>
    %c1_58 = arith.constant 1 : index
    %c0_59 = arith.constant 0 : index
    %c0_60 = arith.constant 0 : index
    %82 = vector.load %arg6[%c1_58, %c0_59, %c0_60] : memref<5x120x80xbf16, #tpu.memory_space<vmem>>, vector<1x120x80xbf16>
    %83 = vector.shape_cast %82 : vector<1x120x80xbf16> to vector<120x80xbf16>
    %cst_61 = arith.constant dense<0.000000e+00> : vector<32x80xf32>
    %84 = tpu.matmul %77, %83, %cst_61 {dimension_numbers = #tpu.dot_dimension_numbers<[1], [0], [0], [1], [0, 0, 1, 1], [], []>} : vector<32x120xbf16>, vector<120x80xbf16>, vector<32x80xf32> -> vector<32x80xf32>
    %85 = arith.addf %75, %84 : vector<32x80xf32>
    %86 = vector.extract_strided_slice %63 {offsets = [0, 2, 0], sizes = [4, 8, 120], strides = [1, 1, 1]} : vector<4x12x120xbf16> to vector<4x8x120xbf16>
    %87 = vector.shape_cast %86 : vector<4x8x120xbf16> to vector<32x120xbf16>
    %c2_62 = arith.constant 2 : index
    %c0_63 = arith.constant 0 : index
    %c0_64 = arith.constant 0 : index
    %88 = vector.load %arg5[%c2_62, %c0_63, %c0_64] : memref<5x120x80xbf16, #tpu.memory_space<vmem>>, vector<1x120x80xbf16>
    %89 = vector.shape_cast %88 : vector<1x120x80xbf16> to vector<120x80xbf16>
    %cst_65 = arith.constant dense<0.000000e+00> : vector<32x80xf32>
    %90 = tpu.matmul %87, %89, %cst_65 {dimension_numbers = #tpu.dot_dimension_numbers<[1], [0], [0], [1], [0, 0, 1, 1], [], []>} : vector<32x120xbf16>, vector<120x80xbf16>, vector<32x80xf32> -> vector<32x80xf32>
    %91 = arith.addf %81, %90 : vector<32x80xf32>
    %c2_66 = arith.constant 2 : index
    %c0_67 = arith.constant 0 : index
    %c0_68 = arith.constant 0 : index
    %92 = vector.load %arg6[%c2_66, %c0_67, %c0_68] : memref<5x120x80xbf16, #tpu.memory_space<vmem>>, vector<1x120x80xbf16>
    %93 = vector.shape_cast %92 : vector<1x120x80xbf16> to vector<120x80xbf16>
    %cst_69 = arith.constant dense<0.000000e+00> : vector<32x80xf32>
    %94 = tpu.matmul %87, %93, %cst_69 {dimension_numbers = #tpu.dot_dimension_numbers<[1], [0], [0], [1], [0, 0, 1, 1], [], []>} : vector<32x120xbf16>, vector<120x80xbf16>, vector<32x80xf32> -> vector<32x80xf32>
    %95 = arith.addf %85, %94 : vector<32x80xf32>
    %96 = vector.extract_strided_slice %63 {offsets = [0, 3, 0], sizes = [4, 8, 120], strides = [1, 1, 1]} : vector<4x12x120xbf16> to vector<4x8x120xbf16>
    %97 = vector.shape_cast %96 : vector<4x8x120xbf16> to vector<32x120xbf16>
    %c3_70 = arith.constant 3 : index
    %c0_71 = arith.constant 0 : index
    %c0_72 = arith.constant 0 : index
    %98 = vector.load %arg5[%c3_70, %c0_71, %c0_72] : memref<5x120x80xbf16, #tpu.memory_space<vmem>>, vector<1x120x80xbf16>
    %99 = vector.shape_cast %98 : vector<1x120x80xbf16> to vector<120x80xbf16>
    %cst_73 = arith.constant dense<0.000000e+00> : vector<32x80xf32>
    %100 = tpu.matmul %97, %99, %cst_73 {dimension_numbers = #tpu.dot_dimension_numbers<[1], [0], [0], [1], [0, 0, 1, 1], [], []>} : vector<32x120xbf16>, vector<120x80xbf16>, vector<32x80xf32> -> vector<32x80xf32>
    %101 = arith.addf %91, %100 : vector<32x80xf32>
    %c3_74 = arith.constant 3 : index
    %c0_75 = arith.constant 0 : index
    %c0_76 = arith.constant 0 : index
    %102 = vector.load %arg6[%c3_74, %c0_75, %c0_76] : memref<5x120x80xbf16, #tpu.memory_space<vmem>>, vector<1x120x80xbf16>
    %103 = vector.shape_cast %102 : vector<1x120x80xbf16> to vector<120x80xbf16>
    %cst_77 = arith.constant dense<0.000000e+00> : vector<32x80xf32>
    %104 = tpu.matmul %97, %103, %cst_77 {dimension_numbers = #tpu.dot_dimension_numbers<[1], [0], [0], [1], [0, 0, 1, 1], [], []>} : vector<32x120xbf16>, vector<120x80xbf16>, vector<32x80xf32> -> vector<32x80xf32>
    %105 = arith.addf %95, %104 : vector<32x80xf32>
    %106 = vector.extract_strided_slice %63 {offsets = [0, 4, 0], sizes = [4, 8, 120], strides = [1, 1, 1]} : vector<4x12x120xbf16> to vector<4x8x120xbf16>
    %107 = vector.shape_cast %106 : vector<4x8x120xbf16> to vector<32x120xbf16>
    %c4_78 = arith.constant 4 : index
    %c0_79 = arith.constant 0 : index
    %c0_80 = arith.constant 0 : index
    %108 = vector.load %arg5[%c4_78, %c0_79, %c0_80] : memref<5x120x80xbf16, #tpu.memory_space<vmem>>, vector<1x120x80xbf16>
    %109 = vector.shape_cast %108 : vector<1x120x80xbf16> to vector<120x80xbf16>
    %cst_81 = arith.constant dense<0.000000e+00> : vector<32x80xf32>
    %110 = tpu.matmul %107, %109, %cst_81 {dimension_numbers = #tpu.dot_dimension_numbers<[1], [0], [0], [1], [0, 0, 1, 1], [], []>} : vector<32x120xbf16>, vector<120x80xbf16>, vector<32x80xf32> -> vector<32x80xf32>
    %111 = arith.addf %101, %110 : vector<32x80xf32>
    %c4_82 = arith.constant 4 : index
    %c0_83 = arith.constant 0 : index
    %c0_84 = arith.constant 0 : index
    %112 = vector.load %arg6[%c4_82, %c0_83, %c0_84] : memref<5x120x80xbf16, #tpu.memory_space<vmem>>, vector<1x120x80xbf16>
    %113 = vector.shape_cast %112 : vector<1x120x80xbf16> to vector<120x80xbf16>
    %cst_85 = arith.constant dense<0.000000e+00> : vector<32x80xf32>
    %114 = tpu.matmul %107, %113, %cst_85 {dimension_numbers = #tpu.dot_dimension_numbers<[1], [0], [0], [1], [0, 0, 1, 1], [], []>} : vector<32x120xbf16>, vector<120x80xbf16>, vector<32x80xf32> -> vector<32x80xf32>
    %115 = arith.addf %105, %114 : vector<32x80xf32>
    %116 = arith.maximumf %111, %115 : vector<32x80xf32>
    %c0_86 = arith.constant 0 : index
    %c0_87 = arith.constant 0 : index
    %117 = vector.load %arg7[%c0_86, %c0_87] : memref<1x80xf32, #tpu.memory_space<vmem>>, vector<1x80xf32>
    %118 = vector.broadcast %117 : vector<1x80xf32> to vector<32x80xf32>
    %119 = arith.addf %116, %118 : vector<32x80xf32>
    %120 = vector.shape_cast %119 : vector<32x80xf32> to vector<16x2x80xf32>
    %cst_88 = arith.constant dense<0xFF800000> : vector<16x80xf32>
    %121 = vector.multi_reduction <maximumf>, %120, %cst_88 [1] : vector<16x2x80xf32> to vector<16x80xf32>
    %cst_89 = arith.constant 0.000000e+00 : f32
    %122 = vector.broadcast %cst_89 : f32 to vector<16x80xf32>
    %123 = arith.maximumf %121, %122 : vector<16x80xf32>
    %124 = arith.truncf %123 : vector<16x80xf32> to vector<16x80xbf16>
    %125 = vector.shape_cast %124 : vector<16x80xbf16> to vector<4x4x80xbf16>
    %cst_90 = arith.constant 0.000000e+00 : f32
    %126 = vector.broadcast %cst_90 : f32 to vector<4x128xf32>
    %127 = vector.extract_strided_slice %125 {offsets = [0, 0, 0], sizes = [4, 1, 80], strides = [1, 1, 1]} : vector<4x4x80xbf16> to vector<4x1x80xbf16>
    %128 = vector.shape_cast %127 : vector<4x1x80xbf16> to vector<4x80xbf16>
    %c0_91 = arith.constant 0 : index
    %c0_92 = arith.constant 0 : index
    %c0_93 = arith.constant 0 : index
    %129 = vector.load %arg8[%c0_91, %c0_92, %c0_93] : memref<4x80x128xbf16, #tpu.memory_space<vmem>>, vector<1x80x128xbf16>
    %130 = vector.shape_cast %129 : vector<1x80x128xbf16> to vector<80x128xbf16>
    %cst_94 = arith.constant dense<0.000000e+00> : vector<4x128xf32>
    %131 = tpu.matmul %128, %130, %cst_94 {dimension_numbers = #tpu.dot_dimension_numbers<[1], [0], [0], [1], [0, 0, 1, 1], [], []>} : vector<4x80xbf16>, vector<80x128xbf16>, vector<4x128xf32> -> vector<4x128xf32>
    %132 = arith.addf %126, %131 : vector<4x128xf32>
    %133 = vector.extract_strided_slice %125 {offsets = [0, 1, 0], sizes = [4, 1, 80], strides = [1, 1, 1]} : vector<4x4x80xbf16> to vector<4x1x80xbf16>
    %134 = vector.shape_cast %133 : vector<4x1x80xbf16> to vector<4x80xbf16>
    %c1_95 = arith.constant 1 : index
    %c0_96 = arith.constant 0 : index
    %c0_97 = arith.constant 0 : index
    %135 = vector.load %arg8[%c1_95, %c0_96, %c0_97] : memref<4x80x128xbf16, #tpu.memory_space<vmem>>, vector<1x80x128xbf16>
    %136 = vector.shape_cast %135 : vector<1x80x128xbf16> to vector<80x128xbf16>
    %cst_98 = arith.constant dense<0.000000e+00> : vector<4x128xf32>
    %137 = tpu.matmul %134, %136, %cst_98 {dimension_numbers = #tpu.dot_dimension_numbers<[1], [0], [0], [1], [0, 0, 1, 1], [], []>} : vector<4x80xbf16>, vector<80x128xbf16>, vector<4x128xf32> -> vector<4x128xf32>
    %138 = arith.addf %132, %137 : vector<4x128xf32>
    %139 = vector.extract_strided_slice %125 {offsets = [0, 2, 0], sizes = [4, 1, 80], strides = [1, 1, 1]} : vector<4x4x80xbf16> to vector<4x1x80xbf16>
    %140 = vector.shape_cast %139 : vector<4x1x80xbf16> to vector<4x80xbf16>
    %c2_99 = arith.constant 2 : index
    %c0_100 = arith.constant 0 : index
    %c0_101 = arith.constant 0 : index
    %141 = vector.load %arg8[%c2_99, %c0_100, %c0_101] : memref<4x80x128xbf16, #tpu.memory_space<vmem>>, vector<1x80x128xbf16>
    %142 = vector.shape_cast %141 : vector<1x80x128xbf16> to vector<80x128xbf16>
    %cst_102 = arith.constant dense<0.000000e+00> : vector<4x128xf32>
    %143 = tpu.matmul %140, %142, %cst_102 {dimension_numbers = #tpu.dot_dimension_numbers<[1], [0], [0], [1], [0, 0, 1, 1], [], []>} : vector<4x80xbf16>, vector<80x128xbf16>, vector<4x128xf32> -> vector<4x128xf32>
    %144 = arith.addf %138, %143 : vector<4x128xf32>
    %145 = vector.extract_strided_slice %125 {offsets = [0, 3, 0], sizes = [4, 1, 80], strides = [1, 1, 1]} : vector<4x4x80xbf16> to vector<4x1x80xbf16>
    %146 = vector.shape_cast %145 : vector<4x1x80xbf16> to vector<4x80xbf16>
    %c3_103 = arith.constant 3 : index
    %c0_104 = arith.constant 0 : index
    %c0_105 = arith.constant 0 : index
    %147 = vector.load %arg8[%c3_103, %c0_104, %c0_105] : memref<4x80x128xbf16, #tpu.memory_space<vmem>>, vector<1x80x128xbf16>
    %148 = vector.shape_cast %147 : vector<1x80x128xbf16> to vector<80x128xbf16>
    %cst_106 = arith.constant dense<0.000000e+00> : vector<4x128xf32>
    %149 = tpu.matmul %146, %148, %cst_106 {dimension_numbers = #tpu.dot_dimension_numbers<[1], [0], [0], [1], [0, 0, 1, 1], [], []>} : vector<4x80xbf16>, vector<80x128xbf16>, vector<4x128xf32> -> vector<4x128xf32>
    %150 = arith.addf %144, %149 : vector<4x128xf32>
    %c0_107 = arith.constant 0 : index
    %c0_108 = arith.constant 0 : index
    %151 = vector.load %arg9[%c0_107, %c0_108] : memref<1x128xf32, #tpu.memory_space<vmem>>, vector<1x128xf32>
    %152 = vector.broadcast %151 : vector<1x128xf32> to vector<4x128xf32>
    %153 = arith.addf %150, %152 : vector<4x128xf32>
    %cst_109 = arith.constant 0.000000e+00 : f32
    %154 = vector.broadcast %cst_109 : f32 to vector<4x128xf32>
    %155 = arith.maximumf %153, %154 : vector<4x128xf32>
    %156 = arith.truncf %155 : vector<4x128xf32> to vector<4x128xbf16>
    %c0_110 = arith.constant 0 : index
    %c0_111 = arith.constant 0 : index
    %157 = vector.load %arg10[%c0_110, %c0_111] : memref<128x10xbf16, #tpu.memory_space<vmem>>, vector<128x10xbf16>
    %cst_112 = arith.constant dense<0.000000e+00> : vector<4x10xf32>
    %158 = tpu.matmul %156, %157, %cst_112 {dimension_numbers = #tpu.dot_dimension_numbers<[1], [0], [0], [1], [0, 0, 1, 1], [], []>} : vector<4x128xbf16>, vector<128x10xbf16>, vector<4x10xf32> -> vector<4x10xf32>
    %c0_113 = arith.constant 0 : index
    %c0_114 = arith.constant 0 : index
    %159 = vector.load %arg11[%c0_113, %c0_114] : memref<1x10xf32, #tpu.memory_space<vmem>>, vector<1x10xf32>
    %160 = vector.broadcast %159 : vector<1x10xf32> to vector<4x10xf32>
    %161 = arith.addf %158, %160 : vector<4x10xf32>
    %cst_115 = arith.constant dense<0xFF800000> : vector<4xf32>
    %162 = vector.multi_reduction <maximumf>, %161, %cst_115 [1] : vector<4x10xf32> to vector<4xf32>
    %163 = vector.shape_cast %162 : vector<4xf32> to vector<4x1xf32>
    %164 = vector.broadcast %163 : vector<4x1xf32> to vector<4x10xf32>
    %165 = arith.subf %161, %164 : vector<4x10xf32>
    %166 = math.exp %165 : vector<4x10xf32>
    %cst_116 = arith.constant dense<0.000000e+00> : vector<4xf32>
    %167 = vector.multi_reduction <add>, %166, %cst_116 [1] : vector<4x10xf32> to vector<4xf32>
    %168 = vector.shape_cast %167 : vector<4xf32> to vector<4x1xf32>
    %169 = math.log %168 : vector<4x1xf32>
    %170 = vector.broadcast %169 : vector<4x1xf32> to vector<4x10xf32>
    %171 = arith.subf %165, %170 : vector<4x10xf32>
    %c0_117 = arith.constant 0 : index
    %c0_118 = arith.constant 0 : index
    %c0_119 = arith.constant 0 : index
    %172 = vector.load %arg12[%c0_117, %c0_118, %c0_119] : memref<1x4x10xf32, #tpu.memory_space<vmem>>, vector<1x4x10xf32>
    %173 = vector.shape_cast %172 : vector<1x4x10xf32> to vector<4x10xf32>
    %174 = vector.shape_cast %171 : vector<4x10xf32> to vector<1x4x10xf32>
    tpu.vector_store %arg12[%c0_117, %c0_118, %c0_119], %174 {strides = array<i32>} : memref<1x4x10xf32, #tpu.memory_space<vmem>>, vector<1x4x10xf32>,
    return
  }
  func.func @transform_0(%arg0: i32) -> (i32, i32, i32, i32) {
    %c0_i32 = arith.constant 0 : i32
    %c0_i32_0 = arith.constant 0 : i32
    %c0_i32_1 = arith.constant 0 : i32
    %c0_i32_2 = arith.constant 0 : i32
    return %arg0, %c0_i32, %c0_i32_0, %c0_i32_1 : i32, i32, i32, i32
  }
  func.func @transform_1(%arg0: i32) -> (i32, i32, i32) {
    %c0_i32 = arith.constant 0 : i32
    %c0_i32_0 = arith.constant 0 : i32
    %c0_i32_1 = arith.constant 0 : i32
    %c0_i32_2 = arith.constant 0 : i32
    return %c0_i32, %c0_i32_0, %c0_i32_1 : i32, i32, i32
  }
  func.func @transform_2(%arg0: i32) -> (i32, i32, i32) {
    %c0_i32 = arith.constant 0 : i32
    %c0_i32_0 = arith.constant 0 : i32
    %c0_i32_1 = arith.constant 0 : i32
    %c0_i32_2 = arith.constant 0 : i32
    return %c0_i32, %c0_i32_0, %c0_i32_1 : i32, i32, i32
  }
  func.func @transform_3(%arg0: i32) -> (i32, i32) {
    %c0_i32 = arith.constant 0 : i32
    %c0_i32_0 = arith.constant 0 : i32
    %c0_i32_1 = arith.constant 0 : i32
    return %c0_i32, %c0_i32_0 : i32, i32
  }
  func.func @transform_4(%arg0: i32) -> (i32, i32, i32) {
    %c0_i32 = arith.constant 0 : i32
    %c0_i32_0 = arith.constant 0 : i32
    %c0_i32_1 = arith.constant 0 : i32
    %c0_i32_2 = arith.constant 0 : i32
    return %c0_i32, %c0_i32_0, %c0_i32_1 : i32, i32, i32
  }
  func.func @transform_5(%arg0: i32) -> (i32, i32, i32) {
    %c0_i32 = arith.constant 0 : i32
    %c0_i32_0 = arith.constant 0 : i32
    %c0_i32_1 = arith.constant 0 : i32
    %c0_i32_2 = arith.constant 0 : i32
    return %c0_i32, %c0_i32_0, %c0_i32_1 : i32, i32, i32
  }
  func.func @transform_6(%arg0: i32) -> (i32, i32) {
    %c0_i32 = arith.constant 0 : i32
    %c0_i32_0 = arith.constant 0 : i32
    %c0_i32_1 = arith.constant 0 : i32
    return %c0_i32, %c0_i32_0 : i32, i32
  }
  func.func @transform_7(%arg0: i32) -> (i32, i32, i32) {
    %c0_i32 = arith.constant 0 : i32
    %c0_i32_0 = arith.constant 0 : i32
    %c0_i32_1 = arith.constant 0 : i32
    %c0_i32_2 = arith.constant 0 : i32
    return %c0_i32, %c0_i32_0, %c0_i32_1 : i32, i32, i32
  }
  func.func @transform_8(%arg0: i32) -> (i32, i32) {
    %c0_i32 = arith.constant 0 : i32
    %c0_i32_0 = arith.constant 0 : i32
    %c0_i32_1 = arith.constant 0 : i32
    return %c0_i32, %c0_i32_0 : i32, i32
  }
  func.func @transform_9(%arg0: i32) -> (i32, i32) {
    %c0_i32 = arith.constant 0 : i32
    %c0_i32_0 = arith.constant 0 : i32
    %c0_i32_1 = arith.constant 0 : i32
    return %c0_i32, %c0_i32_0 : i32, i32
  }
  func.func @transform_10(%arg0: i32) -> (i32, i32) {
    %c0_i32 = arith.constant 0 : i32
    %c0_i32_0 = arith.constant 0 : i32
    %c0_i32_1 = arith.constant 0 : i32
    return %c0_i32, %c0_i32_0 : i32, i32
  }
  func.func @transform_11(%arg0: i32) -> (i32, i32, i32) {
    %c0_i32 = arith.constant 0 : i32
    %c0_i32_0 = arith.constant 0 : i32
    %c0_i32_1 = arith.constant 0 : i32
    return %arg0, %c0_i32, %c0_i32_0 : i32, i32, i32
  }
}

</mosaic_0001>

<bundles_post_ra>
// kernel: net_forward.1
= control target key start
LH: loop header
LB: loop body
LE: loop exit
PB: predicated region body
PF: predicated region fallthrough
CT: control target
= control target key end

     0   :  { %s8569_s0 = inlined_call_operand.vmem [shape: bf16[2,4,28,28], index: 0, kind: input, shape index: {}]   ;;  %s8570_s1 = inlined_call_operand.vmem [shape: bf16[5,28,120], index: 1, kind: input, shape index: {}]   ;;  %s8571_s2 = inlined_call_operand.vmem [shape: bf16[5,28,120], index: 2, kind: input, shape index: {}]   ;;  %s8572_s3 = inlined_call_operand.vmem [shape: f32[1,120], index: 3, kind: input, shape index: {}]   ;;  %s8573_s4 = inlined_call_operand.vmem [shape: bf16[5,120,80], index: 4, kind: input, shape index: {}]   ;;  %s8574_s5 = inlined_call_operand.vmem [shape: bf16[5,120,80], index: 5, kind: input, shape index: {}]   ;;  %s8575_s6 = inlined_call_operand.vmem [shape: f32[1,80], index: 6, kind: input, shape index: {}]   ;;  %s8576_s7 = inlined_call_operand.vmem [shape: bf16[4,80,128], index: 7, kind: input, shape index: {}]   ;;  %s8577_s8 = inlined_call_operand.vmem [shape: f32[1,128], index: 8, kind: input, shape index: {}]   ;;  %s8578_s9 = inlined_call_operand.vmem [shape: bf16[128,10], index: 9, kind: input, shape index: {}]   ;;  %s8579_s10 = inlined_call_operand.vmem [shape: f32[1,10], index: 10, kind: input, shape index: {}]   ;;  %s8580_s11 = inlined_call_operand.hbm [shape: f32[2,4,10], index: 11, kind: output, shape index: {}]  }
   0x1   :  { %8601 = sst [smem:[#allocation12_spill]] %s8569_s0 }
   0x2   :  { %16 = vsyncpa [#allocation3], 0 }
   0x3   :  { %18 = vsyncpa [#allocation3 + $0x1], 0  ;;  %s6544_s17 = smov 0   ;;  %s6546_s18 = smov 0  }
   0x4   :  { %s6548_s19 = smov 0   ;;  %s6550_s20 = smov 0  }
   0x5 LB: > { %s6565_s21 = sadd.s32 4294967295, %s6478_s20   ;;  %s4985_s22 = sadd.s32 4294967294, %s6478_s20   ;;  %s6478_s20 = sphi %s6550_s20, %s8663_s20   ;;  %s6474_s19 = sphi %s6548_s19, %s8662_s19   ;;  %s6470_s18 = sphi %s6546_s18, %s8661_s18   ;;  %s6466_s17 = sphi %s6544_s17, %s8660_s17  }
   0x6   : > { %s6569_s23 = sadd.s32 1, %s6478_s20   ;;  %s267_s24 = sadd.s32 1, %s6474_s19 }
   0x7   : > { %s264_s25 = ssub.s32 %s6478_s20, %s6569_s23  ;;  %p277_p0 = scmp.ne.s32.totalorder %s6474_s19, %s6470_s18 }
   0x8   : > { %p265_p1 = scmp.eq.s32.totalorder %s264_s25, 0  ;;  %p278_p2 = scmp.eq.s32.totalorder %s6565_s21, 1 }
   0x9   : > { %p283_p3 = scmp.ne.s32.totalorder %s6470_s18, %s6466_s17  ;;  %p284_p4 = scmp.eq.s32.totalorder %s4985_s22, 1 }
   0xa   : > { %s6580_s26 = scalar_select %p265_p1, %s6474_s19, %s267_s24  }
   0xb   : > { %p6582_p5 = por %p278_p2, %p277_p0  ;;  %p6586_p6 = por %p284_p4, %p283_p3 }
   0xc   : > { %p4988_p7 = scmp.ge.s32.totalorder %s6478_s20, 1  ;;  %p340_p8 = scmp.lt.s32.totalorder %s6478_s20, 3 }
   0xe   : > { %p341_p9 = pnand %p4988_p7, %p340_p8 }
  0x10   : > { %344 = sbr.rel (%p341_p9) target bundleno = 1723 (0x6bb), region = 64 }
  0x17   : > { %v6277_v0 = vld [vmem:[%s8570_s1 + $0x10] sm:$0xff]   ;;  %vm602_vm0 = vcmask 1045504   ;;  %v6278_v1 = vld [vmem:[%s8570_s1 + $0x18] sm:$0x3f]   ;;  %p380_p10 = scmp.lt.s32.totalorder %s6565_s21, 1  ;;  %v6611_v4 = vld [vmem:[%s8570_s1] sm:$0xff]  }
  0x18   : > { %6082 = vmatprep.subr.bf16.mxu1 %v6277_v0  ;;  %5646 = vmatprep.subr.bf16.mxu0 %v6277_v0  ;;  %v604_v2 = vsel %vm602_vm0, %v6278_v1, 0  ;;  %v6606_v3 = vld [vmem:[%s8571_s2 + $0x10] sm:$0xff]   ;;  %s8604_s0 = sld [smem:[#allocation12_spill]]  ;;  %vm410_vm1 = vsmask.f32 3328  ;;  %vm583_vm3 = vcmask 228352  }
  0x19   : > { %6084 = vmatpush3.bf16.msra.mxu1 %v6277_v0  ;;  %5647 = vmatpush3.bf16.msra.mxu0 %v6277_v0  ;;  %s381_s14 = scalar_select %p380_p10, %s6565_s21, 1  ;;  %vm411_vm2 = vsmask.f32 7440  ;;  %vm1029_vm5 = vcmask 1042432   ;;  %vm1030_vm6 = vcmask 1046532   ;;  %vm1675_vm11 = vcmask 1041408  }
  0x1a   : > { %6215 = vmatprep.subr.msk.bf16.mxu1 %vm602_vm0, %v6278_v1  ;;  %6214 = vmatprep.subr.msk.bf16.mxu0 %vm602_vm0, %v6278_v1  ;;  %vm6648_vm4 = vmor %vm410_vm1, %vm411_vm2  ;;  %v6868_v25 = vld [vmem:[%s8571_s2 + $0x8] sm:$0x3f]   ;;  %vm1332_vm8 = vsmask.f32 2304  ;;  %vm1333_vm9 = vsmask.f32 6416 }
  0x1b   : > { %s5432_s25 = sshll.u32 %s381_s14, 6  ;;  %vm6856_vm7 = vmor %vm1029_vm5, %vm1030_vm6  ;;  %vm1676_vm12 = vcmask 1045508   ;;  %vm2273_vm14 = vcmask 975872   ;;  %vm2816_vm15 = vcmask 1041409   ;;  %vm2820_vm1 = vcmask 1043459   ;;  %s377_s30 = sand.u32 1, %s6470_s18  }
  0x1c   : > { %vm6957_vm10 = vmor %vm1332_vm8, %vm1333_vm9  ;;  %vm2822_vm2 = vcmask 1044484   ;;  %vm2828_vm5 = vcmask 1047559   ;;  %vm2898_vm6 = vcmask 982016   ;;  %vm6482_vm8 = vmmov 0   ;;  %s5429_s13 = sshll.u32 %s6565_s21, 6  ;;  %s6483_s21 = smov [#allocation2]  }
  0x1d   : > { %6085 = vmatpush3.bf16.msra.mxu1 %v604_v2  ;;  %5649 = vmatpush3.bf16.msra.mxu0 %v604_v2  ;;  %vm7123_vm13 = vmor %vm1675_vm11, %vm1676_vm12  ;;  %vm4246_vm9 = vcmask 648192   ;;  %vm4898_vm11 = vcmask 76800   ;;  %s8526_s24 = scalar_lea.hbm %s8580_s11, %s5429_s13 }
  0x1e   : > { %s6616_s12 = scalar_lea.vmem %s8604_s0, %s5432_s25  ;;  %5678 = vmatprep.subr.bf16.mxu1 %v6606_v3  ;;  %5662 = vmatprep.subr.bf16.mxu0 %v6611_v4  ;;  %s4913_s25 = scalar_lea.sflag [#allocation3], %s377_s30 }
  0x1f   : > { %v6619_v5 = vld [vmem:[%s6616_s12] sm:$0xf]  ;;  %v6622_v6 = vld [vmem:[%s6616_s12 + $0x4] sm:$0xf]  ;;  %v6625_v7 = vld [vmem:[%s6616_s12 + $0x8] sm:$0xf] }
  0x20   : > { %v414_v8 = vshrl.u32 %v6619_v5, 16  ;;  %v417_v9 = vshll.u32 %v6619_v5, 16  ;;  %v423_v10 = vshll.u32 %v6622_v6, 16  ;;  %v427_v11 = vshrl.u32 %v6622_v6, 16  ;;  %v6636_v18 = vld [vmem:[%s6616_s12 + $0x14] sm:$0xf] }
  0x21   : > { %v433_v12 = vshll.u32 %v6625_v7, 16  ;;  %v8595_v13 = vshrl.u32 %v6625_v7, 16  ;;  %v6639_v19 = vld [vmem:[%s6616_s12 + $0x18] sm:$0xf]  ;;  %v6644_v24 = vld [vmem:[%s6616_s12 + $0x1c] sm:$0x3] }
  0x22   : > { %v416_v14 = vrot.slane %v414_v8, 4  ;;  %v419_v15 = vrot.slane %v417_v9, 5  ;;  %v425_v16 = vrot.slane %v423_v10, 5  ;;  %v429_v17 = vrot.slane %v427_v11, 4  ;;  %v6670_v42 = vld [vmem:[%s6616_s12 + $0xc] sm:$0x3] }
  0x23   : > { %v435_v22 = vrot.slane %v433_v12, 5  ;;  %v439_v23 = vrot.slane %v8595_v13, 4  ;;  %v6652_v26 = vrot.slane %v414_v8, 5  ;;  %v6654_v27 = vrot.slane %v417_v9, 6  ;;  %v6673_v43 = vld [vmem:[%s6616_s12 + $0x10] sm:$0xf] }
  0x24   : > { %v420_v20 = vor.u32 %v419_v15, %v416_v14  ;;  %v430_v21 = vor.u32 %v429_v17, %v425_v16  ;;  %v457_v28 = vshll.u32 %v6636_v18, 16  ;;  %v461_v29 = vshrl.u32 %v6636_v18, 16  ;;  %v6681_v51 = vld [vmem:[%s6616_s12 + $0x20] sm:$0xf]  ;;  %v6693_v59 = vld [vmem:[%s6616_s12 + $0x24] sm:$0xf] }
  0x25   : > { %v467_v32 = vshll.u32 %v6639_v19, 16  ;;  %v471_v33 = vshrl.u32 %v6639_v19, 16  ;;  %v6660_v34 = vrot.slane %v427_v11, 5  ;;  %v477_v37 = vshll.u32 %v6644_v24, 16  ;;  %v6696_v60 = vld [vmem:[%s6616_s12 + $0x28] sm:$0xf] }
  0x26   : > { %v421_v30 = vrot.slane %v420_v20, 4  ;;  %v431_v31 = vrot.slane %v430_v21, 4  ;;  %v6662_v35 = vrot.slane %v457_v28, 5  ;;  %v463_v36 = vrot.slane %v461_v29, 4  ;;  %v6711_v9 = vld [vmem:[%s6616_s12 + $0x2c] sm:$0x3] }
  0x27   : > { %v469_v40 = vrot.slane %v467_v32, 5  ;;  %v473_v41 = vrot.slane %v471_v33, 4  ;;  %v440_v44 = vor.u32 %v439_v23, %v435_v22  ;;  %v1359_v47 = vrot.slane %v461_v29, 5  ;;  %v6719_v15 = vld [vmem:[%s6616_s12 + $0x30] sm:$0xf] }
  0x28   : > { %v426_v38 = vsel %vm6648_vm4, %v421_v30, %v425_v16  ;;  %v436_v39 = vsel %vm6648_vm4, %v431_v31, %v435_v22  ;;  %v464_v46 = vor.u32 %v463_v36, %v6662_v35  ;;  %v479_v49 = vrot.slane %v477_v37, 5  ;;  %v6738_v30 = vld [vmem:[%s6616_s12 + $0x34] sm:$0xf] }
  0x29   : > { %v6675_v45 = vcombine.low %v426_v38, %v436_v39  ;;  %v474_v48 = vor.u32 %v473_v41, %v469_v40  ;;  %v1360_v50 = vrot.slane %v457_v28, 6  ;;  %v6685_v52 = vrot.slane %v423_v10, 6 }
  0x2a   : > { %v465_v53 = vrot.slane %v464_v46, 4  ;;  %v443_v54 = vshll.u32 %v6670_v42, 16  ;;  %v448_v55 = vshrl.u32 %v6673_v43, 16  ;;  %v451_v58 = vshll.u32 %v6673_v43, 16 }
  0x2b   : > { %5650 = vmatprep.mubr.msk.bf16.mxu0 %vm583_vm3, %v6675_v45  ;;  %v475_v56 = vrot.slane %v474_v48, 4  ;;  %v6689_v57 = vor.u32 %v1360_v50, %v1359_v47  ;;  %v441_v61 = vrot.slane %v440_v44, 4  ;;  %v6704_v1 = vrot.slane %v433_v12, 6  ;;  %v6282_v44 = vld [vmem:[%s8570_s1 + $0x8] sm:$0x3f]  }
  0x2c   : > { %v470_v62 = vsel %vm6648_vm4, %v465_v53, %v469_v40  ;;  %v445_v63 = vrot.slane %v443_v54, 5  ;;  %v450_v0 = vrot.slane %v448_v55, 4  ;;  %v453_v8 = vrot.slane %v451_v58, 5  ;;  %v6761_v50 = vld [vmem:[%s6616_s12 + $0x38] sm:$0xf] }
  0x2d   : > { %v480_v2 = vsel %vm6648_vm4, %v475_v56, %v479_v49  ;;  %v6715_v11 = vrot.slane %v471_v33, 5  ;;  %v8594_v14 = vshrl.u32 %v6681_v51, 16  ;;  %v6723_v12 = vcombine.low %v6619_v5, %v6622_v6 }
  0x2e   : > { %v6713_v10 = vcombine.low %v470_v62, %v480_v2  ;;  %v6725_v16 = vrot.slane %v467_v32, 6  ;;  %v454_v17 = vor.u32 %v453_v8, %v450_v0  ;;  %v8593_v20 = vshll.u32 %v6681_v51, 16 }
  0x2f   : > { %v8591_v21 = vshll.u32 %v6693_v59, 16  ;;  %v446_v22 = vsel %vm6648_vm4, %v441_v61, %v445_v63  ;;  %v484_v23 = vrot.slane %v8594_v14, 4  ;;  %v8592_v28 = vshrl.u32 %v6693_v59, 16 }
  0x30   : > { %5654 = vmatprep.mubr.msk.bf16.mxu1 %vm583_vm3, %v6713_v10  ;;  %v8589_v29 = vshll.u32 %v6696_v60, 16  ;;  %v455_v31 = vrot.slane %v454_v17, 4  ;;  %v487_v32 = vrot.slane %v8593_v20, 5  ;;  %v8590_v36 = vshrl.u32 %v6696_v60, 16 }
  0x31   : > { %v493_v33 = vrot.slane %v8591_v21, 5  ;;  %v1349_v38 = vshrl.u32 %v6670_v42, 16  ;;  %v497_v39 = vrot.slane %v8592_v28, 4  ;;  %v8581_v41 = vshll.u32 %v6711_v9, 16 }
  0x32   : > { %v503_v40 = vrot.slane %v8589_v29, 5  ;;  %v460_v46 = vsel %vm6648_vm4, %v455_v31, %v6662_v35  ;;  %v488_v47 = vor.u32 %v487_v32, %v484_v23  ;;  %v507_v48 = vrot.slane %v8590_v36, 4 }
  0x33   : > { %v8588_v49 = vshrl.u32 %v6719_v15, 16  ;;  %v6763_v53 = vcombine.low %v446_v22, %v460_v46  ;;  %v498_v56 = vor.u32 %v497_v39, %v493_v33  ;;  %v513_v61 = vrot.slane %v8581_v41, 5  ;;  %v6776_v22 = vld [vmem:[%s6616_s12 + $0x3c] sm:$0x3]  ;;  %s4989_s12 = sshll.u32 %s377_s30, 2 }
  0x34   : > { %v8583_v62 = vshll.u32 %v6719_v15, 16  ;;  %v489_v35 = vrot.slane %v488_v47, 4  ;;  %v508_v63 = vor.u32 %v507_v48, %v503_v40  ;;  %v8582_v2 = vshll.u32 %v6738_v30, 16  ;;  %v6281_v47 = vld [vmem:[%s8571_s2 + $0x18] sm:$0x3f]   ;;  %s379_s14 = scalar_lea.vmem [#allocation2], %s4989_s12 }
  0x35   : > { %v518_v0 = vrot.slane %v8588_v49, 4  ;;  %5651 = vmatmul.mubr.msk.bf16.vlgmr.msra.gmra.mrb[0].mxu0 %vm583_vm3, %v6763_v53  ;;  %v499_v8 = vrot.slane %v498_v56, 4  ;;  %v8585_v23 = vshrl.u32 %v6738_v30, 16  ;;  %v8584_v31 = vshll.u32 %v6761_v50, 16  ;;  %v6794_v56 = vld [vmem:[%s8570_s1 + $0x20] sm:$0xff]   ;;  %s4926_s15 = sshll.u32 %s379_s14, 4  ;;  %s8528_s15 = int_to_ptr.vmem [resolvable:$true] %s4926_s15 }
  0x36   : > { %v521_v17 = vrot.slane %v8583_v62, 5  ;;  %v494_v32 = vsel %vm6648_vm4, %v489_v35, %v493_v33  ;;  %5663 = vmatpush3.bf16.msra.mxu0 %v6611_v4  ;;  %v509_v39 = vrot.slane %v508_v63, 4  ;;  %v527_v46 = vrot.slane %v8582_v2, 5  ;;  %5666 = vmatprep.mubr.msk.bf16.mxu0 %vm583_vm3, %v6723_v12  ;;  %s6416_s29 = scalar_lea.vmem %s8528_s15, 64  ;;  %s6420_s12 = sshll.u32 %s6483_s21, 4  ;;  %s6421_s12 = int_to_ptr.vmem [resolvable:$false] %s6420_s12 }
  0x37   : > { %v8587_v48 = vshrl.u32 %v6761_v50, 16  ;;  %v504_v4 = vsel %vm6648_vm4, %v499_v8, %v503_v40  ;;  %v531_v35 = vrot.slane %v8585_v23, 4  ;;  %v537_v63 = vrot.slane %v8584_v31, 5  ;;  %6216 = vmatprep.subr.msk.bf16.mxu0 %vm602_vm0, %v6282_v44  ;;  %p6417_p11 = scmp.ne.s32.totalorder %s8528_s15, %s6416_s29  ;;  %s6422_s0 = scalar_lea.vmem %s6421_s12, 128 }
  0x38   : > { %v522_v33 = vor.u32 %v521_v17, %v518_v0  ;;  %v6805_v41 = vrot.slane %v443_v54, 6  ;;  %v6807_v2 = vcombine.low %v494_v32, %v504_v4  ;;  %v8586_v40 = vshll.u32 %v6776_v22, 16  ;;  %p6423_p0 = scmp.lt.s32.totalorder %s8528_s15, %s6421_s12  ;;  %p6424_p1 = scmp.lt.s32.totalorder %s6422_s0, %s6416_s29 }
  0x39   : > { %v541_v62 = vrot.slane %v8587_v48, 4  ;;  %v514_v0 = vsel %vm6648_vm4, %v509_v39, %v513_v61  ;;  %v532_v17 = vor.u32 %v531_v35, %v527_v46  ;;  %v747_v31 = vsel %vm602_vm0, %v6282_v44, 0  ;;  %p6418_p12 = pnand %p6417_p11, %p6582_p5 }
  0x3a   : > { %v523_v8 = vrot.slane %v522_v33, 4  ;;  %v6815_v23 = vrot.slane %v1349_v38, 5  ;;  %5655 = vmatmul.mubr.msk.bf16.vlgmr.msra.gmra.mrb[0].mxu1 %vm583_vm3, %v6807_v2  ;;  %v547_v32 = vrot.slane %v8586_v40, 5  ;;  %5665 = vmatpush3.bf16.msra.mxu0 %v747_v31  ;;  %v1355_v4 = vrot.slane %v448_v55, 5  ;;  %p6425_p2 = por %p6424_p1, %p6423_p0 }
  0x3b   : > { %v542_v54 = vor.u32 %v541_v62, %v537_v63  ;;  %v1356_v61 = vrot.slane %v451_v58, 6  ;;  %5679 = vmatpush3.bf16.msra.mxu1 %v6606_v3  ;;  %v533_v44 = vrot.slane %v532_v17, 4  ;;  %v6831_v62 = vld [vmem:[%s8571_s2] sm:$0xff]   ;;  %5710 = vmatprep.subr.bf16.mxu0 %v6794_v56  ;;  %v847_v58 = vsel %vm602_vm0, %v6281_v47, 0  ;;  %p6419_p13 = pneg %p6418_p12 }
  0x3c   : > { %v528_v38 = vsel %vm6648_vm4, %v523_v8, %v527_v46  ;;  %6217 = vmatprep.subr.msk.bf16.mxu1 %vm602_vm0, %v6281_v47  ;;  %v6840_v3 = vcombine.low %v6625_v7, %v6673_v43  ;;  %v6846_v46 = vcombine.low %v6636_v18, %v6639_v19  ;;  %v5044_v33 = vrot.slane %v6619_v5, 9 }
  0x3d   : > { %v6834_v31 = vcombine.low %v514_v0, %v528_v38  ;;  %v543_v55 = vrot.slane %v542_v54, 4  ;;  %v538_v39 = vsel %vm6648_vm4, %v533_v44, %v537_v63  ;;  %v1034_v35 = vrot.slane %v6622_v6, 5  ;;  %p6426_p3 = pnand %p6425_p2, %p6419_p13 }
  0x3e   : > { %8607 = vst [vmem:[#allocation5_spill] sm:$0xff] %v6846_v46  ;;  %v1037_v63 = vrot.slane %v6625_v7, 5  ;;  %v1040_v8 = vrot.slane %v6670_v42, 5  ;;  %v5045_v17 = vrot.slane %v6673_v43, 9  ;;  %v1357_v54 = vor.u32 %v1356_v61, %v1355_v4 }
  0x3f   : > { %5658 = vmatprep.mubr.msk.bf16.mxu1 %vm583_vm3, %v6834_v31  ;;  %v548_v47 = vsel %vm6648_vm4, %v543_v55, %v547_v32  ;;  %5681 = vmatpush3.bf16.msra.mxu1 %v847_v58  ;;  %v1036_v32 = vrot.slane %v1034_v35, 4  ;;  %v1044_v44 = vrot.slane %v6636_v18, 5  ;;  %v6292_v55 = vld [vmem:[%s8570_s1 + $0x28] sm:$0x3f]   ;;  %v1047_v4 = vrot.slane %v6639_v19, 5 }
  0x40   : > { %v6863_v38 = vcombine.low %v538_v39, %v548_v47  ;;  %5694 = vmatprep.subr.bf16.mxu1 %v6831_v62  ;;  %v1039_v40 = vrot.slane %v1037_v63, 4  ;;  %v1035_v61 = vsel %vm6856_vm7, %v5044_v33, %v1034_v35  ;;  %v1050_v47 = vrot.slane %v6644_v24, 5 }
  0x41   : > { %5667 = vmatmul.mubr.msk.bf16.vlgmr.msra.gmra.mrb[0].mxu0 %vm583_vm3, %v6840_v3  ;;  %v1038_v58 = vsel %vm6856_vm7, %v1036_v32, %v1037_v63  ;;  %v1046_v39 = vrot.slane %v1044_v44, 4  ;;  %v1045_v49 = vsel %vm6856_vm7, %v5045_v17, %v1044_v44  ;;  %v1049_v29 = vrot.slane %v1047_v4, 4 }
  0x42   : > { %5659 = vmatmul.mubr.msk.bf16.gmra.mrb[4].mxu1 %vm583_vm3, %v6863_v38  ;;  %5670 = vmatprep.mubr.msk.bf16.mxu0 %vm583_vm3, %v6846_v46  ;;  %v1041_v48 = vsel %vm6856_vm7, %v1039_v40, %v1040_v8  ;;  %v1054_v33 = vrot.slane %v6693_v59, 5  ;;  %v6894_v35 = vrot.slane %v477_v37, 6  ;;  %v6898_v32 = vrot.slane %v1357_v54, 4 }
  0x43   : > { %5682 = vmatprep.mubr.msk.bf16.mxu1 %vm583_vm3, %v6675_v45  ;;  %v6904_v40 = vcombine.low %v6681_v51, %v6693_v59  ;;  %5711 = vmatpush3.bf16.msra.mxu0 %v6794_v56  ;;  %v6909_v8 = vcombine.low %v6696_v60, %v6719_v15  ;;  %v1125_v37 = vsel %vm602_vm0, %v6292_v55, 0  ;;  %v5046_v17 = vrot.slane %v6681_v51, 9  ;;  %v6918_v45 = vld [vmem:[%s8570_s1 + $0x30] sm:$0xff]  }
  0x44   : > { %6219 = vmatprep.subr.msk.bf16.mxu0 %vm602_vm0, %v6292_v55  ;;  %v1057_v54 = vrot.slane %v6696_v60, 5  ;;  %v6922_v56 = vcombine.low %v6738_v30, %v6761_v50  ;;  %v942_v44 = vsel %vm602_vm0, %v6868_v25, 0  ;;  %v6926_v36 = vcombine.low %v1035_v61, %v1038_v58 }
  0x45   : > { %v6928_v63 = vcombine.low %v1041_v48, %v1045_v49  ;;  %v1048_v55 = vsel %vm6856_vm7, %v1046_v39, %v1047_v4  ;;  %v1051_v21 = vsel %vm6856_vm7, %v1049_v29, %v1050_v47  ;;  %v1056_v28 = vrot.slane %v1054_v33, 4  ;;  %v6954_v4 = vld [vmem:[%s8571_s2 + $0x28] sm:$0x3f]  }
  0x46   : > { %v6934_v20 = vrot.slane %v1057_v54, 4  ;;  %v1060_v14 = vrot.slane %v6711_v9, 5  ;;  %v5047_v13 = vrot.slane %v6719_v15, 9  ;;  %v1064_v46 = vrot.slane %v6738_v30, 5 }
  0x47   : > { %5713 = vmatpush3.bf16.msra.mxu0 %v1125_v37  ;;  %v1067_v61 = vrot.slane %v6761_v50, 5  ;;  %v6942_v49 = vsel %vm6856_vm7, %v5046_v17, %v1054_v33  ;;  %v1337_v29 = vor.u32 %v6654_v27, %v6652_v26  ;;  %v6949_v48 = vcombine.low %v1048_v55, %v1051_v21 }
  0x48   : > { %5742 = vmatprep.subr.bf16.mxu0 %v6918_v45  ;;  %v1341_v47 = vor.u32 %v6685_v52, %v6660_v34  ;;  %v8612_v26 = vshrl.u32 %v6625_v7, 16  ;;  %v6971_v21 = vsel %vm6856_vm7, %v1056_v28, %v1057_v54  ;;  %v1362_v37 = vsel %vm6957_vm10, %v6898_v32, %v6689_v57 }
  0x49   : > { %5671 = vmatmul.mubr.msk.bf16.gmra.mrb[4].mxu0 %vm583_vm3, %v6904_v40  ;;  %v1338_v33 = vrot.slane %v1337_v29, 4  ;;  %v1363_v34 = vrot.slane %v6689_v57, 4  ;;  %v1366_v28 = vor.u32 %v6725_v16, %v6715_v11  ;;  %v1369_v17 = vshrl.u32 %v6644_v24, 16  ;;  %v6990_v57 = vld [vmem:[%s8571_s2 + $0x20] sm:$0xff]  }
  0x4a   : > { %v1344_v27 = vrot.slane %v8612_v26, 5  ;;  %5683 = vmatmul.mubr.msk.bf16.vlgmr.msra.gmra.mrb[8].mxu1 %vm583_vm3, %v6763_v53  ;;  %5674 = vmatprep.mubr.msk.bf16.mxu0 %vm583_vm3, %v6909_v8  ;;  %v1343_v52 = vrot.slane %v1341_v47, 4  ;;  %v8615_v11 = vshrl.u32 %v6693_v59, 16  ;;  %vm2826_vm4 = vcmask 1046534  }
  0x4b   : > { %5695 = vmatpush3.bf16.msra.mxu1 %v6831_v62  ;;  %5686 = vmatprep.mubr.msk.bf16.mxu1 %vm583_vm3, %v6713_v10  ;;  %v1342_v62 = vsel %vm6957_vm10, %v1338_v33, %v1341_v47  ;;  %v8613_v10 = vshrl.u32 %v6681_v51, 16  ;;  %v1367_v29 = vsel %vm6957_vm10, %v1363_v34, %v1366_v28  ;;  %v1368_v26 = vrot.slane %v1366_v28, 4 }
  0x4c   : > { %v1346_v53 = vor.u32 %v6704_v1, %v1344_v27  ;;  %6218 = vmatprep.subr.msk.bf16.mxu1 %vm602_vm0, %v6868_v25  ;;  %v8614_v1 = vshll.u32 %v6681_v51, 16  ;;  %v1379_v16 = vrot.slane %v8615_v11, 5  ;;  %v1371_v47 = vrot.slane %v1369_v17, 5 }
  0x4d   : > { %v1375_v32 = vrot.slane %v8613_v10, 5  ;;  %v8616_v10 = vshll.u32 %v6693_v59, 16  ;;  %v8618_v34 = vshrl.u32 %v6696_v60, 16  ;;  %v8619_v17 = vshll.u32 %v6696_v60, 16 }
  0x4e   : > { %v1376_v54 = vrot.slane %v8614_v1, 6  ;;  %v1347_v25 = vsel %vm6957_vm10, %v1343_v52, %v1346_v53  ;;  %v1348_v55 = vrot.slane %v1346_v53, 4  ;;  %v7010_v1 = vsel %vm602_vm0, %v6954_v4, 0 }
  0x4f   : > { %v7004_v27 = vcombine.low %v1342_v62, %v1347_v25  ;;  %v1380_v58 = vrot.slane %v8616_v10, 6  ;;  %5697 = vmatpush3.bf16.msra.mxu1 %v942_v44  ;;  %v8617_v52 = vor.u32 %v6805_v41, %v6815_v23  ;;  %v1384_v28 = vrot.slane %v8618_v34, 5  ;;  %v6296_v44 = vld [vmem:[%s8570_s1 + $0x38] sm:$0x3f]  }
  0x50   : > { %v1377_v33 = vor.u32 %v1376_v54, %v1375_v32  ;;  %v1385_v62 = vrot.slane %v8619_v17, 6  ;;  %5726 = vmatprep.subr.bf16.mxu1 %v6990_v57  ;;  %v1373_v54 = vor.u32 %v6894_v35, %v1371_v47  ;;  %v1066_v11 = vrot.slane %v1064_v46, 4 }
  0x51   : > { %v1354_v53 = vsel %vm6957_vm10, %v1348_v55, %v8617_v52  ;;  %v1381_v23 = vor.u32 %v1380_v58, %v1379_v16  ;;  %5675 = vmatmul.mubr.msk.bf16.gmra.mrb[8].mxu0 %vm583_vm3, %v6922_v56  ;;  %v1389_v55 = vshrl.u32 %v6711_v9, 16  ;;  %v8620_v10 = vshrl.u32 %v6719_v15, 16 }
  0x52   : > { %v7025_v32 = vcombine.low %v1354_v53, %v1362_v37  ;;  %v1378_v41 = vrot.slane %v1377_v33, 4  ;;  %v7032_v25 = vor.u32 %v1385_v62, %v1384_v28  ;;  %5687 = vmatmul.mubr.msk.bf16.gmra.mrb[12].mxu1 %vm583_vm3, %v6807_v2  ;;  %5714 = vmatprep.mubr.msk.bf16.mxu0 %vm583_vm3, %v6926_v36  ;;  %v1374_v35 = vsel %vm6957_vm10, %v1368_v26, %v1373_v54  ;;  %v7050_v33 = vld [vmem:[%s8571_s2 + $0x38] sm:$0x3f]  }
  0x53   : > { %v1395_v52 = vrot.slane %v8620_v10, 5  ;;  %v1383_v37 = vrot.slane %v1381_v23, 4  ;;  %v8621_v16 = vshll.u32 %v6719_v15, 16  ;;  %5690 = vmatprep.mubr.msk.bf16.mxu1 %vm583_vm3, %v6834_v31  ;;  %v1061_v2 = vsel %vm6856_vm7, %v6934_v20, %v1060_v14  ;;  %v7077_v20 = vld [vmem:[%s8570_s1 + $0x48] sm:$0x3f]  }
  0x54   : > { %v1382_v58 = vsel %vm6957_vm10, %v1378_v41, %v1381_v23  ;;  %v7061_v26 = vrot.slane %v1067_v61, 4  ;;  %v7063_v53 = vcombine.low %v1367_v29, %v1374_v35  ;;  %v8622_v34 = vshrl.u32 %v6738_v30, 16 }
  0x55   : > { %v1396_v47 = vrot.slane %v8621_v16, 6  ;;  %v1387_v17 = vsel %vm6957_vm10, %v1383_v37, %v7032_v25  ;;  %v8623_v62 = vshll.u32 %v6738_v30, 16  ;;  %v8624_v41 = vshrl.u32 %v6761_v50, 16 }
  0x56   : > { %v1399_v28 = vrot.slane %v8622_v34, 5  ;;  %v1065_v29 = vsel %vm6856_vm7, %v5047_v13, %v1064_v46  ;;  %v7085_v23 = vcombine.low %v1382_v58, %v1387_v17  ;;  %v8625_v10 = vshll.u32 %v6761_v50, 16 }
  0x57   : > { %v1397_v31 = vor.u32 %v1396_v47, %v1395_v52  ;;  %v1400_v54 = vrot.slane %v8623_v62, 6  ;;  %v1404_v14 = vrot.slane %v8624_v41, 5  ;;  %v1409_v35 = vshrl.u32 %v6776_v22, 16 }
  0x58   : > { %v1405_v52 = vrot.slane %v8625_v10, 6  ;;  %v1468_v37 = vsel %vm602_vm0, %v6296_v44, 0  ;;  %v1388_v16 = vrot.slane %v7032_v25, 4  ;;  %v7092_v47 = vrot.slane %v1389_v55, 5 }
  0x59   : > { %v8626_v34 = vshll.u32 %v6711_v9, 16  ;;  %v7098_v41 = vrot.slane %v1397_v31, 4  ;;  %v7100_v13 = vor.u32 %v1400_v54, %v1399_v28  ;;  %v8627_v58 = vshll.u32 %v6776_v22, 16  ;;  %5715 = vmatmul.mubr.msk.bf16.vlgmr.msra.gmra.mrb[0].mxu0 %vm583_vm3, %v6928_v63 }
  0x5a   : > { %v7102_v46 = vor.u32 %v1405_v52, %v1404_v14  ;;  %v7110_v10 = vsel %vm602_vm0, %v7050_v33, 0  ;;  %v5108_v55 = vrot.slane %v6619_v5, 10  ;;  %v7117_v28 = vcombine.low %v6942_v49, %v6971_v21  ;;  %5691 = vmatmul.mubr.msk.bf16.gmra.mrb[16].mxu1 %vm583_vm3, %v6863_v38  ;;  %5718 = vmatprep.mubr.msk.bf16.mxu0 %vm583_vm3, %v6949_v48  ;;  %v7135_v5 = vld [vmem:[%s8570_s1 + $0x40] sm:$0xff]  }
  0x5b   : > { %v7096_v62 = vrot.slane %v8626_v34, 6  ;;  %v7106_v17 = vrot.slane %v8627_v58, 6  ;;  %v7119_v31 = vcombine.low %v1061_v2, %v1065_v29  ;;  %v7121_v54 = vrot.slane %v1409_v35, 5  ;;  %5698 = vmatprep.mubr.msk.bf16.mxu1 %vm583_vm3, %v6723_v12  ;;  %5743 = vmatpush3.bf16.msra.mxu0 %v6918_v45 }
  0x5c   : > { %v1680_v52 = vrot.slane %v6622_v6, 6  ;;  %v7139_v49 = vsel %vm602_vm0, %v7077_v20, 0  ;;  %v1683_v21 = vrot.slane %v6625_v7, 6  ;;  %v1686_v2 = vrot.slane %v6670_v42, 6  ;;  %6221 = vmatprep.subr.msk.bf16.mxu0 %vm602_vm0, %v6296_v44 }
  0x5d   : > { %v5109_v6 = vrot.slane %v6673_v43, 10  ;;  %v1068_v38 = vsel %vm6856_vm7, %v1066_v11, %v1067_v61  ;;  %v1690_v7 = vrot.slane %v6636_v18, 6  ;;  %v1403_v42 = vrot.slane %v7100_v13, 4 }
  0x5e   : > { %v1681_v29 = vsel %vm7123_vm13, %v5108_v55, %v1680_v52  ;;  %v1682_v35 = vrot.slane %v1680_v52, 4  ;;  %v1685_v43 = vrot.slane %v1683_v21, 4  ;;  %v1693_v12 = vrot.slane %v6639_v19, 6  ;;  %v7171_v19 = vld [vmem:[%s8571_s2 + $0x48] sm:$0x3f]  }
  0x5f   : > { %v1696_v34 = vrot.slane %v6644_v24, 6  ;;  %v1691_v45 = vsel %vm7123_vm13, %v5109_v6, %v1690_v7  ;;  %v1692_v11 = vrot.slane %v1690_v7, 4  ;;  %v5110_v58 = vrot.slane %v6681_v51, 10  ;;  %5745 = vmatpush3.bf16.msra.mxu0 %v1468_v37 }
  0x60   : > { %v1684_v61 = vsel %vm7123_vm13, %v1682_v35, %v1683_v21  ;;  %v1687_v18 = vsel %vm7123_vm13, %v1685_v43, %v1686_v2  ;;  %v1695_v44 = vrot.slane %v1693_v12, 4  ;;  %v1700_v52 = vrot.slane %v6693_v59, 6  ;;  %5774 = vmatprep.subr.bf16.mxu0 %v7135_v5 }
  0x61   : > { %v7163_v55 = vcombine.low %v1681_v29, %v1684_v61  ;;  %v7173_v24 = vcombine.low %v1687_v18, %v1691_v45  ;;  %v1694_v21 = vsel %vm7123_vm13, %v1692_v11, %v1693_v12  ;;  %v1703_v51 = vrot.slane %v6696_v60, 6  ;;  %5719 = vmatmul.mubr.msk.bf16.gmra.mrb[4].mxu0 %vm583_vm3, %v7117_v28 }
  0x62   : > { %v1706_v6 = vrot.slane %v6711_v9, 6  ;;  %v1697_v59 = vsel %vm7123_vm13, %v1695_v44, %v1696_v34  ;;  %v1701_v2 = vsel %vm7123_vm13, %v5110_v58, %v1700_v52  ;;  %v1702_v29 = vrot.slane %v1700_v52, 4  ;;  %5699 = vmatmul.mubr.msk.bf16.vlgmr.msra.gmra.mrb[8].mxu1 %vm583_vm3, %v6840_v3  ;;  %5722 = vmatprep.mubr.msk.bf16.mxu0 %vm583_vm3, %v7119_v31  ;;  %v6297_v3 = vld [vmem:[%s8571_s2 + $0x30] sm:$0xff]  }
  0x63   : > { %v5111_v37 = vrot.slane %v6719_v15, 10  ;;  %v7187_v35 = vcombine.low %v1694_v21, %v1697_v59  ;;  %v1705_v7 = vrot.slane %v1703_v51, 4  ;;  %v1710_v60 = vrot.slane %v6738_v30, 6  ;;  %5727 = vmatpush3.bf16.msra.mxu1 %v6990_v57 }
  0x64   : > { %v1713_v9 = vrot.slane %v6761_v50, 6  ;;  %v8630_v43 = vrot.slane %v6776_v22, 5  ;;  %v1408_v12 = vrot.slane %v7102_v46, 4  ;;  %v1704_v34 = vsel %vm7123_vm13, %v1702_v29, %v1703_v51  ;;  %v8631_v50 = vld [vmem:[#allocation5_spill] sm:$0xff]  ;;  %6220 = vmatprep.subr.msk.bf16.mxu1 %vm602_vm0, %v6954_v4 }
  0x65   : > { %v1716_v30 = vrot.slane %v6776_v22, 6  ;;  %5702 = vmatprep.mubr.msk.bf16.mxu1 %vm583_vm3, %v8631_v50  ;;  %v7210_v61 = vcombine.low %v1701_v2, %v1704_v34  ;;  %v1707_v0 = vsel %vm7123_vm13, %v1705_v7, %v1706_v6  ;;  %v1712_v45 = vrot.slane %v1710_v60, 4  ;;  %v6304_v7 = vld [vmem:[%s8574_s5 + $0x3c] sm:$0xff]   ;;  %v6305_v50 = vld [vmem:[%s8573_s4 + $0x44] sm:$0xff]  }
  0x66   : > { %v1071_v15 = vsel %vm6856_vm7, %v7061_v26, %v8630_v43  ;;  %v1711_v26 = vsel %vm7123_vm13, %v5111_v37, %v1710_v60  ;;  %v1715_v57 = vrot.slane %v1713_v9, 4  ;;  %v1883_v11 = vsel %vm602_vm0, %v7171_v19, 0 }
  0x67   : > { %v5120_v22 = vcombine.low %v1707_v0, %v1711_v26  ;;  %v5057_v58 = vcombine.low %v1068_v38, %v1071_v15  ;;  %v1714_v18 = vsel %vm7123_vm13, %v1712_v45, %v1713_v9  ;;  %5729 = vmatpush3.bf16.msra.mxu1 %v7010_v1  ;;  %v1393_v4 = vor.u32 %v7096_v62, %v7092_v47  ;;  %v7343_v9 = vld [vmem:[%s8572_s3] ss:$0 sm:$0xff] }
  0x68   : > { %v1717_v44 = vsel %vm7123_vm13, %v1715_v57, %v1716_v30  ;;  %5758 = vmatprep.subr.bf16.mxu1 %v6297_v3  ;;  %v1413_v1 = vor.u32 %v7106_v17, %v7121_v54  ;;  %v6480_v6 = vmov 1983009808   ;;  %v2025_v2 = vlaneseq }
  0x69   : > { %v5121_v52 = vcombine.low %v1714_v18, %v1717_v44  ;;  %5723 = vmatmul.mubr.msk.bf16.gmra.mrb[8].mxu0 %vm583_vm3, %v5057_v58  ;;  %v2023_v59 = vunpack.c.l.s4 %v6480_v6  ;;  %v6307_v44 = vld [vmem:[%s8573_s4 + $0x4c] sm:$0xff]   ;;  %vm2905_vm7 = vcmask 1043456  }
  0x6a   : > { %5703 = vmatmul.mubr.msk.bf16.gmra.mrb[12].mxu1 %vm583_vm3, %v6904_v40  ;;  %5746 = vmatprep.mubr.msk.bf16.mxu0 %vm583_vm3, %v7004_v27  ;;  %v1394_v40 = vsel %vm6957_vm10, %v1388_v16, %v1393_v4  ;;  %v1414_v25 = vsel %vm6957_vm10, %v1408_v12, %v1413_v1  ;;  %v2026_v37 = vshrl.u32 %v2025_v2, 7 }
  0x6b   : > { %5706 = vmatprep.mubr.msk.bf16.mxu1 %vm583_vm3, %v6909_v8  ;;  %v1402_v8 = vsel %vm6957_vm10, %v7098_v41, %v7100_v13  ;;  %v2024_v29 = vunpack.c.0.s8 %v2023_v59 }
  0x6d   : > { %v7345_v15 = vsub.s32 %v2024_v29, %v2026_v37 }
  0x6f   : > { %8632 = vst [vmem:[#allocation5_spill] sm:$0xff] %v7345_v15 }
  0x71   : > { %5747 = vmatmul.mubr.msk.bf16.vlgmr.msra.gmra.mrb[0].mxu0 %vm583_vm3, %v7025_v32 }
  0x72   : > { %5707 = vmatmul.mubr.msk.bf16.gmra.mrb[16].mxu1 %vm583_vm3, %v6922_v56  ;;  %5750 = vmatprep.mubr.msk.bf16.mxu0 %vm583_vm3, %v7063_v53  ;;  %v5086_v56 = vcombine.low %v1394_v40, %v1402_v8 }
  0x73   : > { %5730 = vmatprep.mubr.msk.bf16.mxu1 %vm583_vm3, %v6926_v36  ;;  %5775 = vmatpush3.bf16.msra.mxu0 %v7135_v5  ;;  %v1407_v36 = vsel %vm6957_vm10, %v1403_v42, %v7102_v46  ;;  %vm4454_vm10 = vcmask 654336  }
  0x74   : > { %6223 = vmatprep.subr.msk.bf16.mxu0 %vm602_vm0, %v7077_v20  ;;  %v6301_v20 = vld [vmem:[%s8571_s2 + $0x40] sm:$0xff]  }
  0x77   : > { %5777 = vmatpush3.bf16.msra.mxu0 %v7139_v49 }
  0x79   : > { %5751 = vmatmul.mubr.msk.bf16.gmra.mrb[4].mxu0 %vm583_vm3, %v7085_v23 }
  0x7a   : > { %5731 = vmatmul.mubr.msk.bf16.vlgmr.msra.gmra.mrb[8].mxu1 %vm583_vm3, %v6928_v63  ;;  %5754 = vmatprep.mubr.msk.bf16.mxu0 %vm583_vm3, %v5086_v56  ;;  %v5087_v63 = vcombine.low %v1407_v36, %v1414_v25 }
  0x7b   : > { %5759 = vmatpush3.bf16.msra.mxu1 %v6297_v3  ;;  %5734 = vmatprep.mubr.msk.bf16.mxu1 %vm583_vm3, %v6949_v48  ;;  %v6306_v3 = vld [vmem:[%s8574_s5 + $0x44] sm:$0xff]  }
  0x7c   : > { %6222 = vmatprep.subr.msk.bf16.mxu1 %vm602_vm0, %v7050_v33 }
  0x7f   : > { %5761 = vmatpush3.bf16.msra.mxu1 %v7110_v10 }
  0x80   : > { %5790 = vmatprep.subr.bf16.mxu1 %v6301_v20 }
  0x81   : > { %5755 = vmatmul.mubr.msk.bf16.gmra.mrb[8].mxu0 %vm583_vm3, %v5087_v63 }
  0x82   : > { %5735 = vmatmul.mubr.msk.bf16.gmra.mrb[12].mxu1 %vm583_vm3, %v7117_v28  ;;  %5778 = vmatprep.mubr.msk.bf16.mxu0 %vm583_vm3, %v7163_v55 }
  0x83   : > { %5738 = vmatprep.mubr.msk.bf16.mxu1 %vm583_vm3, %v7119_v31 }
  0x89   : > { %5779 = vmatmul.mubr.msk.bf16.vlgmr.msra.gmra.mrb[0].mxu0 %vm583_vm3, %v7173_v24 }
  0x8a   : > { %5739 = vmatmul.mubr.msk.bf16.gmra.mrb[16].mxu1 %vm583_vm3, %v5057_v58  ;;  %5782 = vmatprep.mubr.msk.bf16.mxu0 %vm583_vm3, %v7187_v35 }
  0x8b   : > { %5762 = vmatprep.mubr.msk.bf16.mxu1 %vm583_vm3, %v7004_v27 }
  0x91   : > { %5783 = vmatmul.mubr.msk.bf16.gmra.mrb[4].mxu0 %vm583_vm3, %v7210_v61 }
  0x92   : > { %5763 = vmatmul.mubr.msk.bf16.vlgmr.msra.gmra.mrb[8].mxu1 %vm583_vm3, %v7025_v32  ;;  %5786 = vmatprep.mubr.msk.bf16.mxu0 %vm583_vm3, %v5120_v22 }
  0x93   : > { %5791 = vmatpush3.bf16.msra.mxu1 %v6301_v20  ;;  %5766 = vmatprep.mubr.msk.bf16.mxu1 %vm583_vm3, %v7063_v53 }
  0x94   : > { %6224 = vmatprep.subr.msk.bf16.mxu1 %vm602_vm0, %v7171_v19  ;;  %vm2818_vm0 = vcmask 1042434  }
  0x97   : > { %5793 = vmatpush3.bf16.msra.mxu1 %v1883_v11 }
  0x98   : > { %5846 = vmatprep.subr.bf16.mxu1 %v6304_v7 }
  0x99   : > { %5787 = vmatmul.mubr.msk.bf16.gmra.mrb[8].mxu0 %vm583_vm3, %v5121_v52 }
  0x9a   : > { %5767 = vmatmul.mubr.msk.bf16.gmra.mrb[12].mxu1 %vm583_vm3, %v7085_v23 }
  0x9b   : > { %5770 = vmatprep.mubr.msk.bf16.mxu1 %vm583_vm3, %v5086_v56 }
  0xa2   : > { %5771 = vmatmul.mubr.msk.bf16.gmra.mrb[16].mxu1 %vm583_vm3, %v5087_v63 }
  0xa3   : > { %5794 = vmatprep.mubr.msk.bf16.mxu1 %vm583_vm3, %v7163_v55 }
  0xaa   : > { %5795 = vmatmul.mubr.msk.bf16.vlgmr.msra.gmra.mrb[8].mxu1 %vm583_vm3, %v7173_v24 }
  0xab   : > { %5798 = vmatprep.mubr.msk.bf16.mxu1 %vm583_vm3, %v7187_v35  ;;  %v6303_v35 = vld [vmem:[%s8573_s4 + $0x3c] sm:$0xff]   ;;  %5847 = vmatpush3.bf16.msra.mxu1 %v6304_v7 }
  0xac   : > { %5806 = vmatprep.subr.bf16.mxu0 %v6303_v35  ;;  %5848 = vmatprep.subr.bf16.mxu1 %v6306_v3 }
  0xad   : > { %5807 = vmatpush3.bf16.msra.mxu0 %v6303_v35 }
  0xae   : > { %5808 = vmatprep.subr.bf16.mxu0 %v6305_v50 }
  0xaf   : > { %5849 = vmatpush3.bf16.msra.mxu1 %v6306_v3 }
  0xb1   : > { %5809 = vmatpush3.bf16.msra.mxu0 %v6305_v50 }
  0xb2   : > { %5799 = vmatmul.mubr.msk.bf16.gmra.mrb[12].mxu1 %vm583_vm3, %v7210_v61  ;;  %5810 = vmatprep.subr.bf16.mxu0 %v6307_v44 }
  0xb3   : > { %5802 = vmatprep.mubr.msk.bf16.mxu1 %vm583_vm3, %v5120_v22 }
  0xb5   : > { %5811 = vmatpush3.bf16.msra.mxu0 %v6307_v44 }
  0xba   : > { %5803 = vmatmul.mubr.msk.bf16.gmra.mrb[16].mxu1 %vm583_vm3, %v5121_v52  ;;  %v6308_v52 = vld [vmem:[%s8574_s5 + $0x4c] sm:$0xff]   ;;  %vm2824_vm3 = vcmask 1045509  }
  0xbb   : > { %5850 = vmatprep.subr.bf16.mxu1 %v6308_v52 }
  0xbc   : > { %5851 = vmatpush3.bf16.msra.mxu1 %v6308_v52 }
 0x10d   : > { %v5656_v48 = vpop.f32.mrb[0].mxu1 }
 0x10e   : > { %v656_v39 = vpop.f32.mrb[1].mxu1 }
 0x10f   : > { %v5657_v27 = vpop.f32.mrb[2].mxu1 }
 0x110   : > { %v659_v32 = vpop.f32.mrb[3].mxu1 }
 0x115   : > { %v5660_v33 = vpop.f32.mrb[4].mxu1 }
 0x116   : > { %v672_v53 = vpop.f32.mrb[5].mxu1 }
 0x117   : > { %v5661_v23 = vpop.f32.mrb[6].mxu1 }
 0x118   : > { %v675_v16 = vpop.f32.mrb[7].mxu1 }
 0x15c   : > { %v5780_v47 = vpop.f32.mrb[0].mxu0 }
 0x15d   : > { %v1807_v62 = vpop.f32.mrb[1].mxu0 }
 0x15e   : > { %v7314_v41 = vpop.f32.mrb[2].mxu0 }
 0x15f   : > { %v7316_v13 = vpop.f32.mrb[3].mxu0 }
 0x164   : > { %v5784_v46 = vpop.f32.mrb[4].mxu0 }
 0x165   : > { %v7318_v17 = vadd.f32 %v5784_v46, %v5656_v48  ;;  %v1823_v10 = vpop.f32.mrb[5].mxu0 }
 0x166   : > { %v7320_v28 = vadd.f32 %v1823_v10, %v656_v39  ;;  %v5785_v31 = vpop.f32.mrb[6].mxu0 }
 0x167   : > { %v7322_v54 = vadd.f32 %v5785_v31, %v5657_v27  ;;  %v1826_v14 = vpop.f32.mrb[7].mxu0 }
 0x168   : > { %v7324_v5 = vadd.f32 %v1826_v14, %v659_v32 }
 0x16c   : > { %v5788_v49 = vpop.f32.mrb[8].mxu0 }
 0x16d   : > { %v7326_v38 = vadd.f32 %v5788_v49, %v5660_v33  ;;  %v1839_v42 = vpop.f32.mrb[9].mxu0 }
 0x16e   : > { %v7328_v55 = vadd.f32 %v1839_v42, %v672_v53  ;;  %v5789_v19 = vpop.f32.mrb[10].mxu0 }
 0x16f   : > { %v7330_v24 = vadd.f32 %v5789_v19, %v5661_v23  ;;  %v1842_v21 = vpop.f32.mrb[11].mxu0 }
 0x170   : > { %v7332_v51 = vadd.f32 %v1842_v21, %v675_v16 }
 0x17d   : > { %v5796_v60 = vpop.f32.mrb[8].mxu1 }
 0x17e   : > { %v1980_v43 = vmax.f32 %v5780_v47, %v5796_v60  ;;  %v1919_v12 = vpop.f32.mrb[9].mxu1 }
 0x17f   : > { %v1978_v34 = vmax.f32 %v1807_v62, %v1919_v12  ;;  %v7347_v30 = vpop.f32.mrb[10].mxu1  ;;  %v6309_v62 = vld [vmem:[%s8573_s4 + $0x54] sm:$0xff]   ;;  %v6311_v12 = vld [vmem:[%s8573_s4 + $0x5c] sm:$0xff]  }
 0x180   : > { %v1999_v61 = vadd.f32 %v7343_v9, %v1980_v43  ;;  %v1981_v0 = vmax.f32 %v7314_v41, %v7347_v30  ;;  %v7358_v26 = vpop.f32.mrb[11].mxu1  ;;  %v6310_v41 = vld [vmem:[%s8574_s5 + $0x54] sm:$0xff]   ;;  %5812 = vmatprep.subr.bf16.mxu0 %v6309_v62 }
 0x181   : > { %v1997_v45 = vadd.f32 %v7343_v9, %v1978_v34  ;;  %v1979_v22 = vmax.f32 %v7316_v13, %v7358_v26  ;;  %5852 = vmatprep.subr.bf16.mxu1 %v6310_v41  ;;  %5813 = vmatpush3.bf16.msra.mxu0 %v6309_v62  ;;  %v6312_v34 = vld [vmem:[%s8574_s5 + $0x5c] sm:$0xff]  }
 0x182   : > { %v2055_v57 = vcombine.high %v1999_v61, %v1999_v61  ;;  %v2062_v11 = vrot.slane %v1999_v61, %v7345_v15  ;;  %5853 = vmatpush3.bf16.msra.mxu1 %v6310_v41  ;;  %v2000_v43 = vadd.f32 %v7343_v9, %v1981_v0  ;;  %5814 = vmatprep.subr.bf16.mxu0 %v6311_v12 }
 0x183   : > { %v2021_v58 = vcombine.high %v1997_v45, %v1997_v45  ;;  %v2028_v18 = vrot.slane %v1997_v45, %v7345_v15  ;;  %5854 = vmatprep.subr.bf16.mxu1 %v6312_v34 }
 0x184   : > { %v2069_v4 = vrot.slane %v2055_v57, %v7345_v15  ;;  %v2070_v40 = vcombine.high %v2062_v11, %v2062_v11  ;;  %v2330_v8 = vsel %vm2273_vm14, %v2062_v11, -inf }
 0x185   : > { %v2331_v56 = vrot.slane %v2330_v8, 4  ;;  %v2035_v1 = vrot.slane %v2021_v58, %v7345_v15  ;;  %v2036_v36 = vcombine.high %v2028_v18, %v2028_v18  ;;  %v2274_v25 = vsel %vm2273_vm14, %v2028_v18, -inf  ;;  %v7375_v20 = vpop.f32.mrb[12].mxu1  ;;  %5815 = vmatpush3.bf16.msra.mxu0 %v6311_v12 }
 0x186   : > { %v2071_v63 = vcombine.high %v2069_v4, %v2069_v4  ;;  %v2337_v48 = vsel %vm2273_vm14, %v2070_v40, -inf  ;;  %v2344_v39 = vsel %vm2273_vm14, %v2069_v4, -inf  ;;  %v2275_v27 = vrot.slane %v2274_v25, 4  ;;  %v7379_v32 = vpop.f32.mrb[13].mxu1  ;;  %5855 = vmatpush3.bf16.msra.mxu1 %v6312_v34 }
 0x187   : > { %v2332_v33 = vmax.f32 %v2330_v8, %v2331_v56  ;;  %v2338_v53 = vrot.slane %v2337_v48, 4  ;;  %v2345_v23 = vrot.slane %v2344_v39, 4  ;;  %v2037_v16 = vcombine.high %v2035_v1, %v2035_v1  ;;  %v7381_v47 = vpop.f32.mrb[14].mxu1 }
 0x188   : > { %v2351_v46 = vsel %vm2273_vm14, %v2071_v63, -inf  ;;  %v2276_v10 = vmax.f32 %v2274_v25, %v2275_v27  ;;  %v2281_v31 = vsel %vm2273_vm14, %v2036_v36, -inf  ;;  %v2288_v14 = vsel %vm2273_vm14, %v2035_v1, -inf  ;;  %v7392_v49 = vpop.f32.mrb[15].mxu1 }
 0x189   : > { %v2333_v42 = vrot.slane %v2332_v33, 2  ;;  %v2339_v19 = vmax.f32 %v2337_v48, %v2338_v53  ;;  %v2346_v21 = vmax.f32 %v2344_v39, %v2345_v23  ;;  %v2352_v6 = vrot.slane %v2351_v46, 4 }
 0x18a   : > { %v2277_v59 = vrot.slane %v2276_v10, 2  ;;  %v2282_v2 = vrot.slane %v2281_v31, 4  ;;  %v2289_v29 = vrot.slane %v2288_v14, 4  ;;  %v2295_v37 = vsel %vm2273_vm14, %v2037_v16, -inf }
 0x18b   : > { %v2334_v35 = vmax.f32 %v2332_v33, %v2333_v42  ;;  %v2340_v7 = vrot.slane %v2339_v19, 2  ;;  %v2347_v60 = vrot.slane %v2346_v21, 2  ;;  %v2296_v61 = vrot.slane %v2295_v37, 4 }
 0x18c   : > { %v2278_v30 = vmax.f32 %v2276_v10, %v2277_v59  ;;  %v2283_v50 = vmax.f32 %v2281_v31, %v2282_v2  ;;  %v2290_v3 = vmax.f32 %v2288_v14, %v2289_v29  ;;  %v2353_v45 = vmax.f32 %v2351_v46, %v2352_v6  ;;  %v6313_v59 = vld [vmem:[%s8573_s4 + $0x64] sm:$0xff]  }
 0x18d   : > { %v7402_v57 = vpop.f32.mrb[16].mxu1  ;;  %v2341_v11 = vmax.f32 %v2339_v19, %v2340_v7  ;;  %v2297_v18 = vmax.f32 %v2295_v37, %v2296_v61  ;;  %v2335_v52 = vrot.slane %v2334_v35, 1  ;;  %v2348_v4 = vmax.f32 %v2346_v21, %v2347_v60  ;;  %v6314_v2 = vld [vmem:[%s8574_s5 + $0x64] sm:$0xff]   ;;  %v6315_v60 = vld [vmem:[%s8573_s4 + $0x6c] sm:$0xff]   ;;  %5816 = vmatprep.subr.bf16.mxu0 %v6313_v59 }
 0x18e   : > { %v2284_v58 = vrot.slane %v2283_v50, 2  ;;  %v2291_v0 = vrot.slane %v2290_v3, 2  ;;  %v7404_v44 = vpop.f32.mrb[17].mxu1  ;;  %v2072_v40 = vcombine.high %v2000_v43, %v2000_v43  ;;  %v2279_v56 = vrot.slane %v2278_v30, 1  ;;  %5856 = vmatprep.subr.bf16.mxu1 %v6314_v2  ;;  %5817 = vmatpush3.bf16.msra.mxu0 %v6313_v59 }
 0x18f   : > { %v7406_v8 = vpop.f32.mrb[18].mxu1  ;;  %v2298_v25 = vrot.slane %v2297_v18, 2  ;;  %v2354_v48 = vrot.slane %v2353_v45, 2  ;;  %v1998_v39 = vadd.f32 %v7343_v9, %v1979_v22  ;;  %v2342_v27 = vrot.slane %v2341_v11, 1  ;;  %5857 = vmatpush3.bf16.msra.mxu1 %v6314_v2  ;;  %5818 = vmatprep.subr.bf16.mxu0 %v6315_v60 }
 0x190   : > { %v2285_v1 = vmax.f32 %v2283_v50, %v2284_v58  ;;  %v2292_v36 = vmax.f32 %v2290_v3, %v2291_v0  ;;  %v7408_v63 = vpop.f32.mrb[19].mxu1  ;;  %v2079_v16 = vrot.slane %v2000_v43, %v7345_v15  ;;  %v2086_v62 = vrot.slane %v2072_v40, %v7345_v15  ;;  %v6316_v43 = vld [vmem:[%s8574_s5 + $0x6c] sm:$0xff]  }
 0x191   : > { %v2299_v23 = vmax.f32 %v2297_v18, %v2298_v25  ;;  %v2336_v41 = vmax.f32 %v2334_v35, %v2335_v52  ;;  %v2349_v46 = vrot.slane %v2348_v4, 1  ;;  %v2280_v10 = vmax.f32 %v2278_v30, %v2279_v56  ;;  %5858 = vmatprep.subr.bf16.mxu1 %v6316_v43 }
 0x192   : > { %v2286_v33 = vrot.slane %v2285_v1, 1  ;;  %v2293_v53 = vrot.slane %v2292_v36, 1  ;;  %v2087_v42 = vcombine.high %v2079_v16, %v2079_v16  ;;  %v2088_v19 = vcombine.high %v2086_v62, %v2086_v62  ;;  %5819 = vmatpush3.bf16.msra.mxu0 %v6315_v60 }
 0x193   : > { %v2300_v31 = vrot.slane %v2299_v23, 1  ;;  %v2358_v21 = vsel %vm2273_vm14, %v2079_v16, -inf  ;;  %v7417_v13 = vmax.f32 %v2341_v11, %v2342_v27  ;;  %v7419_v26 = vmax.f32 %v2353_v45, %v2354_v48  ;;  %5859 = vmatpush3.bf16.msra.mxu1 %v6316_v43 }
 0x194   : > { %v2287_v14 = vmax.f32 %v2285_v1, %v2286_v33  ;;  %v2294_v22 = vmax.f32 %v2292_v36, %v2293_v53  ;;  %v2038_v6 = vcombine.high %v1998_v39, %v1998_v39  ;;  %v2359_v29 = vrot.slane %v2358_v21, 4 }
 0x195   : > { %8633 = vst [vmem:[#allocation6_spill] sm:$0xff] %v7417_v13  ;;  %8634 = vst [vmem:[#allocation7_spill] sm:$0xff] %v7419_v26  ;;  %v2365_v37 = vsel %vm2273_vm14, %v2087_v42, -inf  ;;  %v2372_v35 = vsel %vm2273_vm14, %v2086_v62, -inf  ;;  %v2379_v7 = vsel %vm2273_vm14, %v2088_v19, -inf  ;;  %v2618_v12 = vmax.f32 %v2336_v41, 0.0 }
 0x196   : > { %v2301_v34 = vmax.f32 %v2299_v23, %v2300_v31  ;;  %v2610_v30 = vmax.f32 %v2280_v10, 0.0  ;;  %v2366_v50 = vrot.slane %v2365_v37, 4  ;;  %v2611_v3 = vmax.f32 %v2287_v14, 0.0 }
 0x197   : > { %v2360_v61 = vmax.f32 %v2358_v21, %v2359_v29  ;;  %v2373_v45 = vrot.slane %v2372_v35, 4  ;;  %v2380_v11 = vrot.slane %v2379_v7, 4  ;;  %v7436_v58 = vmax.f32 %v2348_v4, %v2349_v46 }
 0x198   : > { %v2612_v0 = vmax.f32 %v2294_v22, 0.0  ;;  %v2367_v18 = vmax.f32 %v2365_v37, %v2366_v50  ;;  %v2045_v52 = vrot.slane %v1998_v39, %v7345_v15  ;;  %v2052_v36 = vrot.slane %v2038_v6, %v7345_v15 }
 0x199   : > { %8635 = vst [vmem:[#allocation8_spill] sm:$0xff] %v7436_v58  ;;  %v2361_v40 = vrot.slane %v2360_v61, 2  ;;  %v2374_v56 = vmax.f32 %v2372_v35, %v2373_v45  ;;  %v2381_v1 = vmax.f32 %v2379_v7, %v2380_v11  ;;  %v2666_v25 = vpack.c.bf16 %v2618_v12, %v2618_v12 }
 0x19a   : > { %v2613_v48 = vmax.f32 %v2301_v34, 0.0  ;;  %v7440_v27 = vpack.c.bf16 %v2610_v30, %v2610_v30  ;;  %v2368_v33 = vrot.slane %v2367_v18, 2  ;;  %v7442_v53 = vpack.c.bf16 %v2611_v3, %v2611_v3 }
 0x19b   : > { %v2362_v4 = vmax.f32 %v2360_v61, %v2361_v40  ;;  %v2375_v23 = vrot.slane %v2374_v56, 2  ;;  %v2382_v16 = vrot.slane %v2381_v1, 2  ;;  %v2660_v39 = vpack.c.bf16 %v2612_v0, %v2612_v0 }
 0x19c   : > { %v2369_v62 = vmax.f32 %v2367_v18, %v2368_v33  ;;  %v2053_v41 = vcombine.high %v2045_v52, %v2045_v52  ;;  %v2054_v46 = vcombine.high %v2052_v36, %v2052_v36  ;;  %v2302_v42 = vsel %vm2273_vm14, %v2045_v52, -inf }
 0x19d   : > { %v2363_v10 = vrot.slane %v2362_v4, 1  ;;  %v2376_v31 = vmax.f32 %v2374_v56, %v2375_v23  ;;  %v2383_v14 = vmax.f32 %v2381_v1, %v2382_v16  ;;  %v2303_v21 = vrot.slane %v2302_v42, 4 }
 0x19e   : > { %v2370_v19 = vrot.slane %v2369_v62, 1  ;;  %v2309_v22 = vsel %vm2273_vm14, %v2053_v41, -inf  ;;  %v2316_v6 = vsel %vm2273_vm14, %v2052_v36, -inf  ;;  %v2323_v43 = vsel %vm2273_vm14, %v2054_v46, -inf }
 0x19f   : > { %v2364_v59 = vmax.f32 %v2362_v4, %v2363_v10  ;;  %v2377_v2 = vrot.slane %v2376_v31, 1  ;;  %v2384_v29 = vrot.slane %v2383_v14, 1  ;;  %v2310_v37 = vrot.slane %v2309_v22, 4 }
 0x1a0   : > { %v2371_v35 = vmax.f32 %v2369_v62, %v2370_v19  ;;  %v2304_v7 = vmax.f32 %v2302_v42, %v2303_v21  ;;  %v2317_v60 = vrot.slane %v2316_v6, 4  ;;  %v2324_v11 = vrot.slane %v2323_v43, 4 }
 0x1a1   : > { %v2378_v12 = vmax.f32 %v2376_v31, %v2377_v2  ;;  %v2385_v34 = vmax.f32 %v2383_v14, %v2384_v29  ;;  %v2622_v30 = vmax.f32 %v2364_v59, 0.0  ;;  %v2311_v50 = vmax.f32 %v2309_v22, %v2310_v37 }
 0x1a2   : > { %v2623_v3 = vmax.f32 %v2371_v35, 0.0  ;;  %v2305_v61 = vrot.slane %v2304_v7, 2  ;;  %v2318_v45 = vmax.f32 %v2316_v6, %v2317_v60  ;;  %v2661_v0 = vpack.c.bf16 %v2613_v48, %v2613_v48 }
 0x1a3   : > { %v2624_v18 = vmax.f32 %v2378_v12, 0.0  ;;  %v2670_v52 = vpack.c.bf16 %v2622_v30, %v2622_v30  ;;  %v2312_v40 = vrot.slane %v2311_v50, 2  ;;  %v2325_v33 = vmax.f32 %v2323_v43, %v2324_v11 }
 0x1a4   : > { %v2671_v56 = vpack.c.bf16 %v2623_v3, %v2623_v3  ;;  %v2306_v1 = vmax.f32 %v2304_v7, %v2305_v61  ;;  %v2319_v36 = vrot.slane %v2318_v45, 2  ;;  %v2784_v4 = vunpack.c.l.b16 %v7442_v53 }
 0x1a5   : > { %v2785_v23 = vunpack.c.l.b16 %v2660_v39  ;;  %v2625_v16 = vmax.f32 %v2385_v34, 0.0  ;;  %v2313_v62 = vmax.f32 %v2311_v50, %v2312_v40  ;;  %v2672_v41 = vpack.c.bf16 %v2624_v18, %v2624_v18 }
 0x1a6   : > { %v2792_v46 = vunpack.c.l.b16 %v2671_v56  ;;  %v2320_v10 = vmax.f32 %v2318_v45, %v2319_v36  ;;  %v2326_v31 = vrot.slane %v2325_v33, 2  ;;  %v2962_v48 = vunpack.c.l.b16 %v7440_v27 }
 0x1a7   : > { %v2307_v42 = vrot.slane %v2306_v1, 1  ;;  %v1984_v19 = vmax.f32 %v7318_v17, %v7375_v20  ;;  %v7453_v21 = vunpack.c.l.b16 %v2666_v25  ;;  %v2963_v22 = vunpack.c.l.b16 %v2670_v52 }
 0x1a8   : > { %v2314_v6 = vrot.slane %v2313_v62, 1  ;;  %v2327_v53 = vmax.f32 %v2325_v33, %v2326_v31  ;;  %v7455_v39 = vunpack.c.l.b16 %v2661_v0  ;;  %v7458_v59 = vsel %vm2816_vm15, %v2785_v23, %v2784_v4 }
 0x1a9   : > { %v2966_v2 = vsel %vm2816_vm15, %v2784_v4, %v2962_v48  ;;  %v2673_v29 = vpack.c.bf16 %v2625_v16, %v2625_v16  ;;  %v7461_v37 = vunpack.c.l.b16 %v2672_v41  ;;  %v2973_v27 = vsel %vm2816_vm15, %v2792_v46, %v2963_v22 }
 0x1aa   : > { %v2321_v35 = vrot.slane %v2320_v10, 1  ;;  %v2003_v17 = vadd.f32 %v7343_v9, %v1984_v19  ;;  %v7465_v20 = vmax.f32 %v2306_v1, %v2307_v42  ;;  %v1982_v25 = vmax.f32 %v7320_v28, %v7379_v32 }
 0x1ab   : > { %v7474_v43 = vsel %vm2818_vm0, %v2785_v23, %v2966_v2  ;;  %v7476_v12 = vmax.f32 %v2313_v62, %v2314_v6  ;;  %v2328_v34 = vrot.slane %v2327_v53, 1  ;;  %v7480_v50 = vsel %vm2816_vm15, %v7455_v39, %v2785_v23 }
 0x1ac   : > { %v2123_v30 = vcombine.high %v2003_v17, %v2003_v17  ;;  %8636 = vst [vmem:[#allocation9_spill] sm:$0xff] %v7480_v50  ;;  %v7482_v3 = vunpack.c.l.b16 %v2673_v29  ;;  %v2130_v28 = vrot.slane %v2003_v17, %v7345_v15  ;;  %v2001_v32 = vadd.f32 %v7343_v9, %v1982_v25 }
 0x1ad   : > { %v7488_v61 = vsel %vm2816_vm15, %v7461_v37, %v2792_v46  ;;  %v7492_v45 = vsel %vm2818_vm0, %v7461_v37, %v2973_v27  ;;  %v7494_v11 = vmax.f32 %v2320_v10, %v2321_v35  ;;  %v7499_v1 = vmax.f32 %v2327_v53, %v2328_v34 }
 0x1ae   : > { %v2137_v0 = vrot.slane %v2123_v30, %v7345_v15  ;;  %v2138_v52 = vcombine.high %v2130_v28, %v2130_v28  ;;  %v2442_v40 = vsel %vm2273_vm14, %v2130_v28, -inf  ;;  %v2089_v56 = vcombine.high %v2001_v32, %v2001_v32 }
 0x1af   : > { %v2443_v4 = vrot.slane %v2442_v40, 4  ;;  %v2096_v62 = vrot.slane %v2001_v32, %v7345_v15  ;;  %v2616_v46 = vmax.f32 %v7494_v11, 0.0 }
 0x1b0   : > { %v2139_v33 = vcombine.high %v2137_v0, %v2137_v0  ;;  %v2449_v23 = vsel %vm2273_vm14, %v2138_v52, -inf  ;;  %v2456_v16 = vsel %vm2273_vm14, %v2137_v0, -inf  ;;  %v2103_v41 = vrot.slane %v2089_v56, %v7345_v15 }
 0x1b1   : > { %v2444_v10 = vmax.f32 %v2442_v40, %v2443_v4  ;;  %v2450_v31 = vrot.slane %v2449_v23, 4  ;;  %v2457_v48 = vrot.slane %v2456_v16, 4  ;;  %v2104_v19 = vcombine.high %v2096_v62, %v2096_v62 }
 0x1b2   : > { %v2463_v42 = vsel %vm2273_vm14, %v2139_v33, -inf  ;;  %v2105_v22 = vcombine.high %v2103_v41, %v2103_v41  ;;  %v2386_v6 = vsel %vm2273_vm14, %v2096_v62, -inf  ;;  %v2400_v25 = vsel %vm2273_vm14, %v2103_v41, -inf }
 0x1b3   : > { %v2445_v53 = vrot.slane %v2444_v10, 2  ;;  %v2451_v2 = vmax.f32 %v2449_v23, %v2450_v31  ;;  %v2458_v29 = vmax.f32 %v2456_v16, %v2457_v48  ;;  %v2464_v27 = vrot.slane %v2463_v42, 4 }
 0x1b4   : > { %v2387_v35 = vrot.slane %v2386_v6, 4  ;;  %v2393_v17 = vsel %vm2273_vm14, %v2104_v19, -inf  ;;  %v2407_v34 = vsel %vm2273_vm14, %v2105_v22, -inf  ;;  %v2401_v40 = vrot.slane %v2400_v25, 4 }
 0x1b5   : > { %v2446_v30 = vmax.f32 %v2444_v10, %v2445_v53  ;;  %v2452_v28 = vrot.slane %v2451_v2, 2  ;;  %v2459_v32 = vrot.slane %v2458_v29, 2  ;;  %v2465_v11 = vmax.f32 %v2463_v42, %v2464_v27 }
 0x1b6   : > { %v2388_v0 = vmax.f32 %v2386_v6, %v2387_v35  ;;  %v2394_v52 = vrot.slane %v2393_v17, 4  ;;  %v2408_v56 = vrot.slane %v2407_v34, 4  ;;  %v2402_v48 = vmax.f32 %v2400_v25, %v2401_v40 }
 0x1b7   : > { %v2447_v33 = vrot.slane %v2446_v30, 1  ;;  %v2453_v4 = vmax.f32 %v2451_v2, %v2452_v28  ;;  %v2460_v23 = vmax.f32 %v2458_v29, %v2459_v32  ;;  %v2466_v16 = vrot.slane %v2465_v11, 2 }
 0x1b8   : > { %v2389_v62 = vrot.slane %v2388_v0, 2  ;;  %v2395_v31 = vmax.f32 %v2393_v17, %v2394_v52  ;;  %v2409_v19 = vmax.f32 %v2407_v34, %v2408_v56  ;;  %v2403_v36 = vrot.slane %v2402_v48, 2 }
 0x1b9   : > { %v2448_v14 = vmax.f32 %v2446_v30, %v2447_v33  ;;  %v2454_v41 = vrot.slane %v2453_v4, 1  ;;  %v2461_v60 = vrot.slane %v2460_v23, 1  ;;  %v2467_v22 = vmax.f32 %v2465_v11, %v2466_v16 }
 0x1ba   : > { %v2390_v10 = vmax.f32 %v2388_v0, %v2389_v62  ;;  %v2396_v53 = vrot.slane %v2395_v31, 2  ;;  %v2410_v42 = vrot.slane %v2409_v19, 2  ;;  %v2404_v29 = vmax.f32 %v2402_v48, %v2403_v36 }
 0x1bb   : > { %v2455_v6 = vmax.f32 %v2453_v4, %v2454_v41  ;;  %v2462_v27 = vmax.f32 %v2460_v23, %v2461_v60  ;;  %v2468_v35 = vrot.slane %v2467_v22, 1  ;;  %v2634_v18 = vmax.f32 %v2448_v14, 0.0 }
 0x1bc   : > { %v2391_v7 = vrot.slane %v2390_v10, 1  ;;  %v2397_v2 = vmax.f32 %v2395_v31, %v2396_v53  ;;  %v2411_v28 = vmax.f32 %v2409_v19, %v2410_v42  ;;  %v8637_v34 = vmax.f32 %v7322_v54, %v7381_v47 }
 0x1bd   : > { %v2469_v32 = vmax.f32 %v2467_v22, %v2468_v35  ;;  %v2635_v17 = vmax.f32 %v2455_v6, 0.0  ;;  %v2636_v25 = vmax.f32 %v2462_v27, 0.0  ;;  %v2405_v52 = vrot.slane %v2404_v29, 1 }
 0x1be   : > { %v2004_v30 = vadd.f32 %v7343_v9, %v8637_v34  ;;  %v2392_v11 = vmax.f32 %v2390_v10, %v2391_v7  ;;  %v2398_v0 = vrot.slane %v2397_v2, 1  ;;  %v2412_v40 = vrot.slane %v2411_v28, 1 }
 0x1bf   : > { %v8638_v60 = vmax.f32 %v7465_v20, 0.0  ;;  %v2637_v56 = vmax.f32 %v2469_v32, 0.0  ;;  %v2683_v33 = vpack.c.bf16 %v2635_v17, %v2635_v17  ;;  %v2684_v36 = vpack.c.bf16 %v2636_v25, %v2636_v25 }
 0x1c0   : > { %v2617_v4 = vmax.f32 %v7499_v1, 0.0  ;;  %v8639_v23 = vmax.f32 %v7476_v12, 0.0  ;;  %v2664_v54 = vpack.c.bf16 %v2616_v46, %v2616_v46  ;;  %v2682_v47 = vpack.c.bf16 %v2634_v18, %v2634_v18 }
 0x1c1   : > { %v2662_v14 = vpack.c.bf16 %v8638_v60, %v8638_v60  ;;  %v2685_v62 = vpack.c.bf16 %v2637_v56, %v2637_v56  ;;  %v7523_v7 = vmax.f32 %v2397_v2, %v2398_v0  ;;  %v7525_v31 = vmax.f32 %v2404_v29, %v2405_v52 }
 0x1c2   : > { %v2663_v16 = vpack.c.bf16 %v8639_v23, %v8639_v23  ;;  %v7527_v48 = vmax.f32 %v2411_v28, %v2412_v40  ;;  %v2800_v20 = vunpack.c.l.b16 %v2683_v33  ;;  %v2801_v19 = vunpack.c.l.b16 %v2684_v36 }
 0x1c3   : > { %v2626_v41 = vmax.f32 %v2392_v11, 0.0  ;;  %v2140_v22 = vcombine.high %v2004_v30, %v2004_v30  ;;  %v7532_v1 = vsel %vm2816_vm15, %v7482_v3, %v7461_v37  ;;  %v7534_v12 = vunpack.c.l.b16 %v2662_v14 }
 0x1c4   : > { %8640 = vst [vmem:[#allocation10_spill] sm:$0xff] %v7532_v1  ;;  %v7536_v46 = vunpack.c.l.b16 %v2685_v62  ;;  %v2147_v18 = vrot.slane %v2004_v30, %v7345_v15  ;;  %v7539_v10 = vpack.c.bf16 %v2617_v4, %v2617_v4  ;;  %v7541_v53 = vunpack.c.l.b16 %v2663_v16 }
 0x1c5   : > { %v7543_v42 = vunpack.c.l.b16 %v2664_v54  ;;  %v2964_v6 = vunpack.c.l.b16 %v2682_v47  ;;  %v7553_v29 = vsel %vm2816_vm15, %v2801_v19, %v2800_v20  ;;  %v7556_v32 = vpack.c.bf16 %v2626_v41, %v2626_v41 }
 0x1c6   : > { %v7547_v27 = vsel %vm2816_vm15, %v7536_v46, %v2801_v19  ;;  %v2154_v17 = vrot.slane %v2140_v22, %v7345_v15  ;;  %v2155_v25 = vcombine.high %v2147_v18, %v2147_v18  ;;  %v2470_v34 = vsel %vm2273_vm14, %v2147_v18, -inf }
 0x1c7   : > { %8641 = vst [vmem:[#allocation11_spill] sm:$0xff] %v7547_v27  ;;  %v2980_v28 = vsel %vm2816_vm15, %v2800_v20, %v2964_v6  ;;  %v8642_v30 = vmax.f32 %v7324_v5, %v7392_v49  ;;  %v1988_v0 = vmax.f32 %v7326_v38, %v7402_v57  ;;  %v2471_v40 = vrot.slane %v2470_v34, 4 }
 0x1c8   : > { %v2156_v52 = vcombine.high %v2154_v17, %v2154_v17  ;;  %v2484_v60 = vsel %vm2273_vm14, %v2154_v17, -inf  ;;  %v2477_v56 = vsel %vm2273_vm14, %v2155_v25, -inf  ;;  %v2981_v5 = vsel %vm2818_vm0, %v2801_v19, %v2980_v28 }
 0x1c9   : > { %v2002_v11 = vadd.f32 %v7343_v9, %v8642_v30  ;;  %v2485_v33 = vrot.slane %v2484_v60, 4  ;;  %v2472_v49 = vmax.f32 %v2470_v34, %v2471_v40  ;;  %v2478_v23 = vrot.slane %v2477_v56, 4 }
 0x1ca   : > { %v2491_v16 = vsel %vm2273_vm14, %v2156_v52, -inf  ;;  %v7576_v22 = vadd.f32 %v7343_v9, %v1988_v0 }
 0x1cb   : > { %v2106_v36 = vcombine.high %v2002_v11, %v2002_v11  ;;  %v2113_v4 = vrot.slane %v2002_v11, %v7345_v15  ;;  %v2486_v38 = vmax.f32 %v2484_v60, %v2485_v33  ;;  %v2492_v57 = vrot.slane %v2491_v16, 4 }
 0x1cc   : > { %v2473_v62 = vrot.slane %v2472_v49, 2  ;;  %v2479_v20 = vmax.f32 %v2477_v56, %v2478_v23 }
 0x1cd   : > { %v2120_v54 = vrot.slane %v2106_v36, %v7345_v15  ;;  %v2121_v47 = vcombine.high %v2113_v4, %v2113_v4  ;;  %v2414_v41 = vsel %vm2273_vm14, %v2113_v4, -inf  ;;  %v2487_v18 = vrot.slane %v2486_v38, 2 }
 0x1ce   : > { %v2493_v6 = vmax.f32 %v2491_v16, %v2492_v57  ;;  %v2415_v19 = vrot.slane %v2414_v41, 4  ;;  %v2474_v28 = vmax.f32 %v2472_v49, %v2473_v62  ;;  %v2480_v25 = vrot.slane %v2479_v20, 2 }
 0x1cf   : > { %v2122_v17 = vcombine.high %v2120_v54, %v2120_v54  ;;  %v2421_v34 = vsel %vm2273_vm14, %v2121_v47, -inf  ;;  %v2428_v30 = vsel %vm2273_vm14, %v2120_v54, -inf  ;;  %v2488_v11 = vmax.f32 %v2486_v38, %v2487_v18 }
 0x1d0   : > { %v2494_v52 = vrot.slane %v2493_v6, 2  ;;  %v2416_v40 = vmax.f32 %v2414_v41, %v2415_v19  ;;  %v2422_v60 = vrot.slane %v2421_v34, 4  ;;  %v2475_v56 = vrot.slane %v2474_v28, 1 }
 0x1d1   : > { %v2481_v33 = vmax.f32 %v2479_v20, %v2480_v25  ;;  %v2429_v36 = vrot.slane %v2428_v30, 4  ;;  %v2435_v0 = vsel %vm2273_vm14, %v2122_v17, -inf  ;;  %v2489_v4 = vrot.slane %v2488_v11, 1 }
 0x1d2   : > { %v2495_v23 = vmax.f32 %v2493_v6, %v2494_v52  ;;  %v2417_v16 = vrot.slane %v2416_v40, 2  ;;  %v2423_v57 = vmax.f32 %v2421_v34, %v2422_v60  ;;  %v2476_v49 = vmax.f32 %v2474_v28, %v2475_v56 }
 0x1d3   : > { %v2482_v62 = vrot.slane %v2481_v33, 1  ;;  %v2430_v14 = vmax.f32 %v2428_v30, %v2429_v36  ;;  %v2436_v47 = vrot.slane %v2435_v0, 4  ;;  %v2490_v2 = vmax.f32 %v2488_v11, %v2489_v4 }
 0x1d4   : > { %v2496_v54 = vrot.slane %v2495_v23, 1  ;;  %v2418_v35 = vmax.f32 %v2416_v40, %v2417_v16  ;;  %v2424_v38 = vrot.slane %v2423_v57, 2  ;;  %v2638_v41 = vmax.f32 %v2476_v49, 0.0 }
 0x1d5   : > { %v2483_v18 = vmax.f32 %v2481_v33, %v2482_v62  ;;  %v2431_v19 = vrot.slane %v2430_v14, 2  ;;  %v2437_v37 = vmax.f32 %v2435_v0, %v2436_v47  ;;  %v8643_v20 = vmax.f32 %v7523_v7, 0.0 }
 0x1d6   : > { %v8644_v6 = vmax.f32 %v7525_v31, 0.0  ;;  %v2497_v28 = vmax.f32 %v2495_v23, %v2496_v54  ;;  %v2640_v34 = vmax.f32 %v2490_v2, 0.0  ;;  %v8645_v30 = vmax.f32 %v7527_v48, 0.0 }
 0x1d7   : > { %v2675_v17 = vpack.c.bf16 %v8643_v20, %v8643_v20  ;;  %v2639_v52 = vmax.f32 %v2483_v18, 0.0  ;;  %v2419_v40 = vrot.slane %v2418_v35, 1  ;;  %v7590_v60 = vmax.f32 %v2423_v57, %v2424_v38 }
 0x1d8   : > { %v2676_v25 = vpack.c.bf16 %v8644_v6, %v8644_v6  ;;  %v2677_v11 = vpack.c.bf16 %v8645_v30, %v8645_v30  ;;  %v7593_v56 = vunpack.c.l.b16 %v7539_v10  ;;  %v2686_v7 = vpack.c.bf16 %v2638_v41, %v2638_v41 }
 0x1d9   : > { %v7595_v33 = vmax.f32 %v2430_v14, %v2431_v19  ;;  %v2438_v36 = vrot.slane %v2437_v37, 2  ;;  %v7600_v31 = vsel %vm2818_vm0, %v7536_v46, %v7553_v29  ;;  %v7604_v48 = vsel %vm2820_vm1, %v7536_v46, %v2981_v5 }
 0x1da   : > { %v2641_v2 = vmax.f32 %v2497_v28, 0.0  ;;  %v2191_v0 = vcombine.high %v7576_v22, %v7576_v22  ;;  %v7609_v10 = vunpack.c.l.b16 %v7556_v32  ;;  %v7611_v4 = vunpack.c.l.b16 %v2675_v17 }
 0x1db   : > { %v7613_v14 = vunpack.c.l.b16 %v2676_v25  ;;  %v2688_v23 = vpack.c.bf16 %v2640_v34, %v2640_v34  ;;  %v7615_v16 = vunpack.c.l.b16 %v2677_v11  ;;  %v7617_v29 = vpack.c.bf16 %v2639_v52, %v2639_v52 }
 0x1dc   : > { %v7619_v57 = vmax.f32 %v2418_v35, %v2419_v40  ;;  %v7622_v49 = vunpack.c.l.b16 %v2686_v7  ;;  %v7625_v47 = vmax.f32 %v2437_v37, %v2438_v36  ;;  %v2198_v32 = vrot.slane %v7576_v22, %v7345_v15 }
 0x1dd   : > { %v7629_v54 = vpack.c.bf16 %v2641_v2, %v2641_v2  ;;  %v2205_v38 = vrot.slane %v2191_v0, %v7345_v15  ;;  %v8646_v18 = vmax.f32 %v7328_v55, %v7404_v44  ;;  %v7638_v19 = vunpack.c.l.b16 %v2688_v23 }
 0x1de   : > { %v2206_v20 = vcombine.high %v2198_v32, %v2198_v32  ;;  %v2554_v37 = vsel %vm2273_vm14, %v2198_v32, -inf  ;;  %v2630_v55 = vmax.f32 %v7619_v57, 0.0 }
 0x1df   : > { %v2005_v35 = vadd.f32 %v7343_v9, %v8646_v18  ;;  %v2207_v17 = vcombine.high %v2205_v38, %v2205_v38  ;;  %v2555_v6 = vrot.slane %v2554_v37, 4  ;;  %v2568_v25 = vsel %vm2273_vm14, %v2205_v38, -inf }
 0x1e0   : > { %v2561_v44 = vsel %vm2273_vm14, %v2206_v20, -inf  ;;  %v2569_v34 = vrot.slane %v2568_v25, 4 }
 0x1e1   : > { %v2157_v28 = vcombine.high %v2005_v35, %v2005_v35  ;;  %v2164_v30 = vrot.slane %v2005_v35, %v7345_v15  ;;  %v2556_v11 = vmax.f32 %v2554_v37, %v2555_v6  ;;  %v2562_v52 = vrot.slane %v2561_v44, 4 }
 0x1e2   : > { %v2575_v40 = vsel %vm2273_vm14, %v2207_v17, -inf  ;;  %v2570_v36 = vmax.f32 %v2568_v25, %v2569_v34 }
 0x1e3   : > { %v2171_v7 = vrot.slane %v2157_v28, %v7345_v15  ;;  %v2576_v2 = vrot.slane %v2575_v40, 4  ;;  %v2172_v0 = vcombine.high %v2164_v30, %v2164_v30  ;;  %v2498_v23 = vsel %vm2273_vm14, %v2164_v30, -inf }
 0x1e4   : > { %v2557_v32 = vrot.slane %v2556_v11, 2  ;;  %v2563_v38 = vmax.f32 %v2561_v44, %v2562_v52  ;;  %v2499_v57 = vrot.slane %v2498_v23, 4  ;;  %v2571_v22 = vrot.slane %v2570_v36, 2 }
 0x1e5   : > { %v2173_v18 = vcombine.high %v2171_v7, %v2171_v7  ;;  %v2577_v20 = vmax.f32 %v2575_v40, %v2576_v2  ;;  %v2505_v62 = vsel %vm2273_vm14, %v2172_v0, -inf  ;;  %v2512_v35 = vsel %vm2273_vm14, %v2171_v7, -inf }
 0x1e6   : > { %v2558_v37 = vmax.f32 %v2556_v11, %v2557_v32  ;;  %v2564_v6 = vrot.slane %v2563_v38, 2  ;;  %v2500_v17 = vmax.f32 %v2498_v23, %v2499_v57  ;;  %v2506_v41 = vrot.slane %v2505_v62, 4 }
 0x1e7   : > { %v2572_v28 = vmax.f32 %v2570_v36, %v2571_v22  ;;  %v2578_v25 = vrot.slane %v2577_v20, 2  ;;  %v2513_v34 = vrot.slane %v2512_v35, 4  ;;  %v2519_v5 = vsel %vm2273_vm14, %v2173_v18, -inf }
 0x1e8   : > { %v2559_v30 = vrot.slane %v2558_v37, 1  ;;  %v2565_v26 = vmax.f32 %v2563_v38, %v2564_v6  ;;  %v2501_v44 = vrot.slane %v2500_v17, 2  ;;  %v2507_v52 = vmax.f32 %v2505_v62, %v2506_v41 }
 0x1e9   : > { %v2573_v58 = vrot.slane %v2572_v28, 1  ;;  %v2579_v27 = vmax.f32 %v2577_v20, %v2578_v25  ;;  %v2514_v40 = vmax.f32 %v2512_v35, %v2513_v34  ;;  %v2520_v2 = vrot.slane %v2519_v5, 4 }
 0x1ea   : > { %v2560_v0 = vmax.f32 %v2558_v37, %v2559_v30  ;;  %v2566_v1 = vrot.slane %v2565_v26, 1  ;;  %v2502_v7 = vmax.f32 %v2500_v17, %v2501_v44  ;;  %v2508_v11 = vrot.slane %v2507_v52, 2 }
 0x1eb   : > { %v2574_v32 = vmax.f32 %v2572_v28, %v2573_v58  ;;  %v2580_v23 = vrot.slane %v2579_v27, 1  ;;  %v2515_v57 = vrot.slane %v2514_v40, 2  ;;  %v2521_v22 = vmax.f32 %v2519_v5, %v2520_v2 }
 0x1ec   : > { %v2567_v36 = vmax.f32 %v2565_v26, %v2566_v1  ;;  %v2650_v50 = vmax.f32 %v2560_v0, 0.0  ;;  %v2503_v13 = vrot.slane %v2502_v7, 1  ;;  %v2509_v18 = vmax.f32 %v2507_v52, %v2508_v11 }
 0x1ed   : > { %v7654_v38 = vunpack.c.l.b16 %v7617_v29  ;;  %v8647_v62 = vrot.slane %v7590_v60, 1  ;;  %v2581_v20 = vmax.f32 %v2579_v27, %v2580_v23  ;;  %v2652_v35 = vmax.f32 %v2574_v32, 0.0 }
 0x1ee   : > { %v2651_v37 = vmax.f32 %v2567_v36, 0.0  ;;  %v2698_v6 = vpack.c.bf16 %v2650_v50, %v2650_v50  ;;  %v2516_v58 = vmax.f32 %v2514_v40, %v2515_v57  ;;  %v8648_v5 = vmax.f32 %v7330_v24, %v7406_v8 }
 0x1ef   : > { %v7659_v41 = vmax.f32 %v7590_v60, %v8647_v62  ;;  %v7668_v1 = vsel %vm2820_vm1, %v7622_v49, %v7600_v31  ;;  %v7673_v60 = vsel %vm2816_vm15, %v7622_v49, %v7536_v46  ;;  %v2510_v27 = vrot.slane %v2509_v18, 1 }
 0x1f0   : > { %v2008_v26 = vadd.f32 %v7343_v9, %v8648_v5  ;;  %v2522_v29 = vrot.slane %v2521_v22, 2  ;;  %v8649_v50 = vrot.slane %v7595_v33, 1  ;;  %v2678_v24 = vpack.c.bf16 %v2630_v55, %v2630_v55 }
 0x1f1   : > { %v2699_v8 = vpack.c.bf16 %v2651_v37, %v2651_v37  ;;  %v2504_v9 = vmax.f32 %v2502_v7, %v2503_v13  ;;  %v7681_v28 = vunpack.c.l.b16 %v7629_v54  ;;  %v2653_v25 = vmax.f32 %v2581_v20, 0.0 }
 0x1f2   : > { %v7678_v17 = vmax.f32 %v7595_v33, %v8649_v50  ;;  %v2700_v34 = vpack.c.bf16 %v2652_v35, %v2652_v35  ;;  %v7684_v30 = vunpack.c.l.b16 %v2698_v6  ;;  %v2517_v44 = vrot.slane %v2516_v58, 1 }
 0x1f3   : > { %v7686_v46 = vunpack.c.l.b16 %v2699_v8  ;;  %v2208_v52 = vcombine.high %v2008_v26, %v2008_v26  ;;  %v7691_v33 = vsel %vm2816_vm15, %v7654_v38, %v7622_v49  ;;  %v2511_v55 = vmax.f32 %v2509_v18, %v2510_v27 }
 0x1f4   : > { %v2523_v13 = vmax.f32 %v2521_v22, %v2522_v29  ;;  %v2215_v54 = vrot.slane %v2008_v26, %v7345_v15  ;;  %v7694_v40 = vunpack.c.l.b16 %v2678_v24  ;;  %v2642_v0 = vmax.f32 %v2504_v9, 0.0  ;;  %v6415_v29 = vld [vmem:[%s8572_s3] ss:$0 sm:$0xff] }
 0x1f5   : > { %v7699_v2 = vsel %vm2816_vm15, %v7686_v46, %v7684_v30  ;;  %v2222_v7 = vrot.slane %v2208_v52, %v7345_v15  ;;  %v2701_v11 = vpack.c.bf16 %v2653_v25, %v2653_v25  ;;  %v7702_v32 = vunpack.c.l.b16 %v2700_v34 }
 0x1f6   : > { %v2223_v23 = vcombine.high %v2215_v54, %v2215_v54  ;;  %v2582_v57 = vsel %vm2273_vm14, %v2215_v54, -inf  ;;  %v2518_v36 = vmax.f32 %v2516_v58, %v2517_v44  ;;  %v2524_v20 = vrot.slane %v2523_v13, 1 }
 0x1f7   : > { %v2224_v22 = vcombine.high %v2222_v7, %v2222_v7  ;;  %v2583_v18 = vrot.slane %v2582_v57, 4  ;;  %v2596_v62 = vsel %vm2273_vm14, %v2222_v7, -inf  ;;  %v2643_v35 = vmax.f32 %v2511_v55, 0.0 }
 0x1f8   : > { %v2589_v37 = vsel %vm2273_vm14, %v2223_v23, -inf  ;;  %v2597_v6 = vrot.slane %v2596_v62, 4  ;;  %v8650_v58 = vmax.f32 %v7332_v51, %v7408_v63  ;;  %v2690_v24 = vpack.c.bf16 %v2642_v0, %v2642_v0 }
 0x1f9   : > { %v2584_v5 = vmax.f32 %v2582_v57, %v2583_v18  ;;  %v2590_v26 = vrot.slane %v2589_v37, 4  ;;  %v2603_v27 = vsel %vm2273_vm14, %v2224_v22, -inf  ;;  %v2819_v25 = vsel %vm2818_vm0, %v7455_v39, %v7458_v59 }
 0x1fa   : > { %v2006_v50 = vadd.f32 %v6415_v29, %v8650_v58  ;;  %v2598_v8 = vmax.f32 %v2596_v62, %v2597_v6  ;;  %v2604_v9 = vrot.slane %v2603_v27, 4  ;;  %v2821_v23 = vsel %vm2820_vm1, %v7534_v12, %v2819_v25 }
 0x1fb   : > { %v2585_v34 = vrot.slane %v2584_v5, 2  ;;  %v2591_v44 = vmax.f32 %v2589_v37, %v2590_v26  ;;  %v2823_v62 = vsel %vm2822_vm2, %v7541_v53, %v2821_v23  ;;  %v2525_v37 = vmax.f32 %v2523_v13, %v2524_v20 }
 0x1fc   : > { %v2174_v52 = vcombine.high %v2006_v50, %v2006_v50  ;;  %v2181_v55 = vrot.slane %v2006_v50, %v7345_v15  ;;  %v2599_v54 = vrot.slane %v2598_v8, 2  ;;  %v2605_v7 = vmax.f32 %v2603_v27, %v2604_v9 }
 0x1fd   : > { %v2586_v51 = vmax.f32 %v2584_v5, %v2585_v34  ;;  %v2592_v63 = vrot.slane %v2591_v44, 2  ;;  %v7726_v9 = vunpack.c.l.b16 %v2701_v11  ;;  %v2645_v13 = vmax.f32 %v2525_v37, 0.0 }
 0x1fe   : > { %v2188_v0 = vrot.slane %v2174_v52, %v7345_v15  ;;  %v2189_v57 = vcombine.high %v2181_v55, %v2181_v55  ;;  %v2600_v22 = vmax.f32 %v2598_v8, %v2599_v54  ;;  %v2606_v18 = vrot.slane %v2605_v7, 2 }
 0x1ff   : > { %v2526_v59 = vsel %vm2273_vm14, %v2181_v55, -inf  ;;  %v2587_v6 = vrot.slane %v2586_v51, 1  ;;  %v2593_v29 = vmax.f32 %v2591_v44, %v2592_v63  ;;  %v2644_v52 = vmax.f32 %v2518_v36, 0.0 }
 0x200   : > { %v2190_v26 = vcombine.high %v2188_v0, %v2188_v0  ;;  %v2527_v27 = vrot.slane %v2526_v59, 4  ;;  %v2607_v58 = vmax.f32 %v2605_v7, %v2606_v18  ;;  %v2533_v50 = vsel %vm2273_vm14, %v2189_v57, -inf }
 0x201   : > { %v2540_v5 = vsel %vm2273_vm14, %v2188_v0, -inf  ;;  %v2601_v25 = vrot.slane %v2600_v22, 1  ;;  %v2534_v34 = vrot.slane %v2533_v50, 4  ;;  %v2588_v55 = vmax.f32 %v2586_v51, %v2587_v6 }
 0x202   : > { %v2528_v8 = vmax.f32 %v2526_v59, %v2527_v27  ;;  %v2541_v54 = vrot.slane %v2540_v5, 4  ;;  %v2547_v23 = vsel %vm2273_vm14, %v2190_v26, -inf  ;;  %v2691_v20 = vpack.c.bf16 %v2643_v35, %v2643_v35 }
 0x203   : > { %v2535_v15 = vmax.f32 %v2533_v50, %v2534_v34  ;;  %v2594_v44 = vrot.slane %v2593_v29, 1  ;;  %v2608_v7 = vrot.slane %v2607_v58, 1  ;;  %v2548_v57 = vrot.slane %v2547_v23, 4 }
 0x204   : > { %v2529_v31 = vrot.slane %v2528_v8, 2  ;;  %v2542_v63 = vmax.f32 %v2540_v5, %v2541_v54  ;;  %v7729_v18 = vunpack.c.l.b16 %v2690_v24  ;;  %v7731_v11 = vmax.f32 %v2600_v22, %v2601_v25 }
 0x205   : > { %v2536_v59 = vrot.slane %v2535_v15, 2  ;;  %v7733_v27 = vpack.c.bf16 %v2644_v52, %v2644_v52  ;;  %v2654_v36 = vmax.f32 %v2588_v55, 0.0  ;;  %v2549_v6 = vmax.f32 %v2547_v23, %v2548_v57 }
 0x206   : > { %v2530_v0 = vmax.f32 %v2528_v8, %v2529_v31  ;;  %v2543_v51 = vrot.slane %v2542_v63, 2  ;;  %v7735_v26 = vpack.c.bf16 %v2645_v13, %v2645_v13  ;;  %v7737_v35 = vunpack.c.l.b16 %v2691_v20 }
 0x207   : > { %v2537_v50 = vmax.f32 %v2535_v15, %v2536_v59  ;;  %v7739_v34 = vmax.f32 %v2593_v29, %v2594_v44  ;;  %v7741_v5 = vmax.f32 %v2607_v58, %v2608_v7  ;;  %v2550_v22 = vrot.slane %v2549_v6, 2  ;;  %v6317_v7 = vld [vmem:[%s8573_s4 + $0x74] ss:$0 sps:$4 sm:$0xff]  }
 0x208   : > { %v2531_v37 = vrot.slane %v2530_v0, 1  ;;  %v2544_v24 = vmax.f32 %v2542_v63, %v2543_v51  ;;  %v2656_v31 = vmax.f32 %v7731_v11, 0.0  ;;  %v2702_v52 = vpack.c.bf16 %v2654_v36, %v2654_v36  ;;  %6225 = vmatprep.subr.msk.bf16.mxu0 %vm2905_vm7, %v6317_v7 }
 0x209   : > { %v2538_v8 = vrot.slane %v2537_v50, 1  ;;  %v2551_v54 = vmax.f32 %v2549_v6, %v2550_v22  ;;  %v2825_v23 = vsel %vm2824_vm3, %v7543_v42, %v2823_v62  ;;  %v2831_v44 = vsel %vm2818_vm0, %v7482_v3, %v7488_v61  ;;  %v6318_v62 = vld [vmem:[%s8574_s5 + $0x74] ss:$0 sps:$4 sm:$0xff]   ;;  %v7766_v6 = vld [vmem:[%s8573_s4] sm:$0xff]  }
 0x20a   : > { %v2532_v25 = vmax.f32 %v2530_v0, %v2531_v37  ;;  %v2545_v55 = vrot.slane %v2544_v24, 1  ;;  %v2827_v58 = vsel %vm2826_vm4, %v7593_v56, %v2825_v23  ;;  %v2832_v59 = vsel %vm2820_vm1, %v7609_v10, %v2831_v44  ;;  %v7773_v22 = vld [vmem:[%s8574_s5] sm:$0xff]   ;;  %6227 = vmatprep.subr.msk.bf16.mxu1 %vm2905_vm7, %v6318_v62 }
 0x20b   : > { %v2539_v13 = vmax.f32 %v2537_v50, %v2538_v8  ;;  %v2552_v29 = vrot.slane %v2551_v54, 1  ;;  %v2829_v0 = vsel %vm2828_vm5, %v7453_v21, %v2827_v58  ;;  %v2833_v61 = vsel %vm2822_vm2, %v7611_v4, %v2832_v59 }
 0x20c   : > { %v2646_v20 = vmax.f32 %v2532_v25, 0.0  ;;  %v2546_v15 = vmax.f32 %v2544_v24, %v2545_v55  ;;  %v2834_v24 = vsel %vm2824_vm3, %v7613_v14, %v2833_v61  ;;  %v2655_v61 = vmax.f32 %v7739_v34, 0.0 }
 0x20d   : > { %v2647_v63 = vmax.f32 %v2539_v13, 0.0  ;;  %v2553_v36 = vmax.f32 %v2551_v54, %v2552_v29  ;;  %v2835_v55 = vsel %vm2826_vm4, %v7615_v16, %v2834_v24  ;;  %v2907_v54 = vsel %vm2905_vm7, %v6317_v7, 0 }
 0x20e   : > { %v2694_v57 = vpack.c.bf16 %v2646_v20, %v2646_v20  ;;  %v2648_v51 = vmax.f32 %v2546_v15, 0.0  ;;  %v2836_v13 = vsel %vm2828_vm5, %v7694_v40, %v2835_v55  ;;  %5821 = vmatpush3.bf16.msra.mxu0 %v2907_v54  ;;  %v3161_v20 = vsel %vm2905_vm7, %v6318_v62, 0 }
 0x20f   : > { %v2695_v37 = vpack.c.bf16 %v2647_v63, %v2647_v63  ;;  %v2649_v25 = vmax.f32 %v2553_v36, 0.0  ;;  %v2840_v15 = vsel %vm2822_vm2, %v7654_v38, %v7668_v1  ;;  %v2851_v44 = vpack.c.b16 %v2836_v13, %v2829_v0  ;;  %5861 = vmatpush3.bf16.msra.mxu1 %v3161_v20  ;;  %5826 = vmatprep.subr.bf16.mxu0 %v7766_v6 }
 0x210   : > { %v2965_v50 = vunpack.c.l.b16 %v2694_v57  ;;  %v2696_v8 = vpack.c.bf16 %v2648_v51, %v2648_v51  ;;  %v2841_v7 = vsel %vm2824_vm3, %v7638_v19, %v2840_v15  ;;  %5866 = vmatprep.subr.bf16.mxu1 %v7773_v22  ;;  %v2968_v1 = vsel %vm2820_vm1, %v7455_v39, %v7474_v43 }
 0x211   : > { %v2808_v23 = vunpack.c.l.b16 %v2695_v37  ;;  %v2697_v29 = vpack.c.bf16 %v2649_v25, %v2649_v25  ;;  %v2842_v62 = vsel %vm2826_vm4, %v7681_v28, %v2841_v7  ;;  %v2975_v57 = vsel %vm2820_vm1, %v7482_v3, %v7492_v45  ;;  %5822 = vmatprep.mubr.msk.bf16.mxu0 %vm2898_vm6, %v2851_v44  ;;  %5862 = vmatprep.mubr.msk.bf16.mxu1 %vm2898_vm6, %v2851_v44 }
 0x212   : > { %v2809_v58 = vunpack.c.l.b16 %v2696_v8  ;;  %v2843_v51 = vsel %vm2828_vm5, %v7729_v18, %v2842_v62  ;;  %v7806_v37 = vunpack.c.l.b16 %v2702_v52  ;;  %v2969_v43 = vsel %vm2822_vm2, %v7534_v12, %v2968_v1 }
 0x213   : > { %v2987_v63 = vsel %vm2816_vm15, %v2808_v23, %v2965_v50  ;;  %v2810_v0 = vunpack.c.l.b16 %v2697_v29  ;;  %v2976_v45 = vsel %vm2822_vm2, %v7609_v10, %v2975_v57  ;;  %v2970_v55 = vsel %vm2824_vm3, %v7541_v53, %v2969_v43 }
 0x214   : > { %v2844_v59 = vsel %vm2816_vm15, %v2809_v58, %v2808_v23  ;;  %v2988_v36 = vsel %vm2818_vm0, %v2809_v58, %v2987_v63  ;;  %v2977_v54 = vsel %vm2824_vm3, %v7611_v4, %v2976_v45  ;;  %v2971_v13 = vsel %vm2826_vm4, %v7543_v42, %v2970_v55  ;;  %v6322_v55 = vld [vmem:[%s8574_s5 + $0x8] sm:$0xff]  }
 0x215   : > { %v2845_v50 = vsel %vm2818_vm0, %v2810_v0, %v2844_v59  ;;  %v2989_v24 = vsel %vm2820_vm1, %v2810_v0, %v2988_v36  ;;  %v3354_v25 = vsel %vm2816_vm15, %v2810_v0, %v2809_v58  ;;  %v7817_v8 = vsel %vm2816_vm15, %v7684_v30, %v2810_v0  ;;  %v8651_v36 = vld [vmem:[#allocation6_spill] sm:$0xff] }
 0x216   : > { %v2846_v34 = vsel %vm2820_vm1, %v7684_v30, %v2845_v50  ;;  %v3355_v52 = vsel %vm2818_vm0, %v7684_v30, %v3354_v25  ;;  %v2978_v20 = vsel %vm2826_vm4, %v7613_v14, %v2977_v54  ;;  %v2983_v15 = vsel %vm2822_vm2, %v7622_v49, %v7604_v48 }
 0x217   : > { %v2847_v23 = vsel %vm2822_vm2, %v7686_v46, %v2846_v34  ;;  %v2972_v58 = vsel %vm2828_vm5, %v7593_v56, %v2971_v13  ;;  %v2979_v44 = vsel %vm2828_vm5, %v7615_v16, %v2978_v20  ;;  %v2984_v7 = vsel %vm2824_vm3, %v7654_v38, %v2983_v15  ;;  %v8652_v34 = vld [vmem:[#allocation9_spill] sm:$0xff] }
 0x218   : > { %v2848_v29 = vsel %vm2824_vm3, %v7702_v32, %v2847_v23  ;;  %v2994_v62 = vpack.c.b16 %v2979_v44, %v2972_v58  ;;  %v2985_v1 = vsel %vm2826_vm4, %v7638_v19, %v2984_v7  ;;  %v2990_v48 = vsel %vm2822_vm2, %v7684_v30, %v2989_v24  ;;  %v6321_v24 = vld [vmem:[%s8573_s4 + $0x8] sm:$0xff]  }
 0x219   : > { %v2849_v63 = vsel %vm2826_vm4, %v7726_v9, %v2848_v29  ;;  %v2986_v0 = vsel %vm2828_vm5, %v7681_v28, %v2985_v1  ;;  %v2991_v59 = vsel %vm2824_vm3, %v7686_v46, %v2990_v48  ;;  %v2619_v43 = vmax.f32 %v8651_v36, 0.0 }
 0x21a   : > { %v2850_v57 = vsel %vm2828_vm5, %v7806_v37, %v2849_v63  ;;  %v2992_v50 = vsel %vm2826_vm4, %v7702_v32, %v2991_v59  ;;  %v2631_v25 = vmax.f32 %v7659_v41, 0.0  ;;  %v3334_v30 = vsel %vm2818_vm0, %v7534_v12, %v8652_v34  ;;  %v8653_v41 = vld [vmem:[#allocation10_spill] sm:$0xff] }
 0x21b   : > { %v2852_v45 = vpack.c.b16 %v2850_v57, %v2843_v51  ;;  %v2993_v51 = vsel %vm2828_vm5, %v7726_v9, %v2992_v50  ;;  %v2667_v54 = vpack.c.bf16 %v2619_v43, %v2619_v43  ;;  %v3335_v23 = vsel %vm2820_vm1, %v7541_v53, %v3334_v30  ;;  %v8654_v57 = vld [vmem:[#allocation11_spill] sm:$0xff]  ;;  %v8655_v43 = vld [vmem:[#allocation8_spill] sm:$0xff] }
 0x21c   : > { %v3341_v13 = vsel %vm2818_vm0, %v7609_v10, %v8653_v41  ;;  %v2657_v20 = vmax.f32 %v7741_v5, 0.0  ;;  %v7879_v15 = vpack.c.b16 %v2993_v51, %v2986_v0  ;;  %v2679_v29 = vpack.c.bf16 %v2631_v25, %v2631_v25 }
 0x21d   : > { %5823 = vmatmul.mubr.msk.bf16.vlgmr.msra.gmra.mrb[12].mxu0 %vm2898_vm6, %v2852_v45  ;;  %5863 = vmatmul.mubr.msk.bf16.vlgmr.msra.gmra.mrb[20].mxu1 %vm2898_vm6, %v2852_v45  ;;  %v3336_v58 = vsel %vm2822_vm2, %v7543_v42, %v3335_v23  ;;  %v2703_v44 = vpack.c.bf16 %v2655_v61, %v2655_v61  ;;  %v7885_v7 = vunpack.c.l.b16 %v2667_v54  ;;  %v3342_v63 = vsel %vm2820_vm1, %v7611_v4, %v3341_v13  ;;  %v6323_v61 = vld [vmem:[%s8573_s4 + $0x10] sm:$0xff]  }
 0x21e   : > { %5827 = vmatpush3.bf16.msra.mxu0 %v7766_v6  ;;  %5867 = vmatpush3.bf16.msra.mxu1 %v7773_v22  ;;  %v3337_v5 = vsel %vm2824_vm3, %v7593_v56, %v3336_v58  ;;  %v6324_v6 = vld [vmem:[%s8574_s5 + $0x10] sm:$0xff]   ;;  %v7899_v22 = vunpack.c.l.b16 %v2679_v29  ;;  %v3343_v48 = vsel %vm2822_vm2, %v7613_v14, %v3342_v63  ;;  %v2620_v45 = vmax.f32 %v8655_v43, 0.0 }
 0x21f   : > { %5842 = vmatprep.mubr.msk.bf16.mxu0 %vm2898_vm6, %v2994_v62  ;;  %5882 = vmatprep.mubr.msk.bf16.mxu1 %vm2898_vm6, %v2994_v62  ;;  %v3338_v1 = vsel %vm2826_vm4, %v7453_v21, %v3337_v5  ;;  %v3348_v62 = vsel %vm2818_vm0, %v7622_v49, %v8654_v57  ;;  %v3344_v59 = vsel %vm2824_vm3, %v7615_v16, %v3343_v48  ;;  %v2632_v51 = vmax.f32 %v7678_v17, 0.0 }
 0x220   : > { %5828 = vmatprep.subr.bf16.mxu0 %v6321_v24  ;;  %5868 = vmatprep.subr.bf16.mxu1 %v6322_v55  ;;  %v3339_v0 = vsel %vm2828_vm5, %v7885_v7, %v3338_v1  ;;  %v3349_v36 = vsel %vm2820_vm1, %v7654_v38, %v3348_v62  ;;  %v7918_v50 = vpack.c.bf16 %v2656_v31, %v2656_v31  ;;  %v7933_v54 = vunpack.c.l.b16 %v2703_v44 }
 0x221   : > { %v3345_v49 = vsel %vm2826_vm4, %v7694_v40, %v3344_v59  ;;  %v3350_v25 = vsel %vm2822_vm2, %v7638_v19, %v3349_v36  ;;  %v3356_v34 = vsel %vm2820_vm1, %v7686_v46, %v3355_v52  ;;  %v6325_v52 = vld [vmem:[%s8573_s4 + $0x18] sm:$0xff]   ;;  %v7947_v41 = vpack.c.bf16 %v2657_v20, %v2657_v20 }
 0x222   : > { %5829 = vmatpush3.bf16.msra.mxu0 %v6321_v24  ;;  %5869 = vmatpush3.bf16.msra.mxu1 %v6322_v55  ;;  %v3346_v30 = vsel %vm2828_vm5, %v7899_v22, %v3345_v49  ;;  %v3351_v11 = vsel %vm2824_vm3, %v7681_v28, %v3350_v25  ;;  %v3357_v31 = vsel %vm2822_vm2, %v7702_v32, %v3356_v34  ;;  %v6326_v24 = vld [vmem:[%s8574_s5 + $0x18] sm:$0xff]   ;;  %v3609_v1 = vunpack.c.l.b16 %v7733_v27 }
 0x223   : > { %5830 = vmatprep.subr.bf16.mxu0 %v6323_v61  ;;  %5870 = vmatprep.subr.bf16.mxu1 %v6324_v6  ;;  %v7941_v55 = vpack.c.b16 %v3346_v30, %v3339_v0  ;;  %v3352_v23 = vsel %vm2826_vm4, %v7729_v18, %v3351_v11  ;;  %v3358_v17 = vsel %vm2824_vm3, %v7726_v9, %v3357_v31  ;;  %v3610_v31 = vunpack.c.l.b16 %v7918_v50  ;;  %v6336_v27 = vld [vmem:[%s8574_s5 + $0x78] sm:$0xff]  }
 0x224   : > { %v3353_v13 = vsel %vm2828_vm5, %v7737_v35, %v3352_v23  ;;  %v3359_v29 = vsel %vm2826_vm4, %v7806_v37, %v3358_v17  ;;  %v7953_v58 = vpack.c.bf16 %v2620_v45, %v2620_v45  ;;  %v3611_v5 = vsel %vm2816_vm15, %v7534_v12, %v7455_v39  ;;  %v6327_v39 = vld [vmem:[%s8573_s4 + $0x20] sm:$0xff]  }
 0x225   : > { %v3360_v44 = vsel %vm2828_vm5, %v7933_v54, %v3359_v29  ;;  %v3618_v20 = vsel %vm2816_vm15, %v7609_v10, %v7482_v3  ;;  %v3626_v63 = vsel %vm2818_vm0, %v7654_v38, %v7673_v60  ;;  %v7969_v57 = vpack.c.bf16 %v2632_v51, %v2632_v51  ;;  %v6328_v3 = vld [vmem:[%s8574_s5 + $0x20] sm:$0xff]   ;;  %v6329_v51 = vld [vmem:[%s8573_s4 + $0x28] sm:$0xff]  }
 0x226   : > { %5831 = vmatpush3.bf16.msra.mxu0 %v6323_v61  ;;  %5871 = vmatpush3.bf16.msra.mxu1 %v6324_v6  ;;  %v7967_v48 = vpack.c.b16 %v3360_v44, %v3353_v13  ;;  %v3612_v62 = vsel %vm2818_vm0, %v7541_v53, %v3611_v5  ;;  %v3607_v38 = vunpack.c.l.b16 %v7953_v58  ;;  %v3619_v61 = vsel %vm2818_vm0, %v7611_v4, %v3618_v20  ;;  %v8656_v58 = vld [vmem:[#allocation7_spill] sm:$0xff] }
 0x227   : > { %5832 = vmatprep.subr.bf16.mxu0 %v6325_v52  ;;  %5872 = vmatprep.subr.bf16.mxu1 %v6326_v24  ;;  %v3613_v60 = vsel %vm2820_vm1, %v7543_v42, %v3612_v62  ;;  %v3627_v6 = vsel %vm2820_vm1, %v7638_v19, %v3626_v63  ;;  %v3620_v59 = vsel %vm2820_vm1, %v7613_v14, %v3619_v61  ;;  %v3608_v30 = vunpack.c.l.b16 %v7969_v57 }
 0x228   : > { %v3614_v0 = vsel %vm2822_vm2, %v7593_v56, %v3613_v60  ;;  %v3628_v36 = vsel %vm2822_vm2, %v7681_v28, %v3627_v6  ;;  %v3633_v43 = vsel %vm2818_vm0, %v7686_v46, %v7817_v8  ;;  %v3621_v49 = vsel %vm2822_vm2, %v7615_v16, %v3620_v59 }
 0x229   : > { %v3615_v45 = vsel %vm2824_vm3, %v7453_v21, %v3614_v0  ;;  %v3629_v25 = vsel %vm2824_vm3, %v7729_v18, %v3628_v36  ;;  %v3634_v34 = vsel %vm2820_vm1, %v7702_v32, %v3633_v43  ;;  %v3622_v46 = vsel %vm2824_vm3, %v7694_v40, %v3621_v49 }
 0x22a   : > { %5833 = vmatpush3.bf16.msra.mxu0 %v6325_v52  ;;  %5873 = vmatpush3.bf16.msra.mxu1 %v6326_v24  ;;  %v3616_v11 = vsel %vm2826_vm4, %v7885_v7, %v3615_v45  ;;  %v3630_v8 = vsel %vm2826_vm4, %v7737_v35, %v3629_v25  ;;  %v6330_v52 = vld [vmem:[%s8574_s5 + $0x28] sm:$0xff]   ;;  %v3623_v23 = vsel %vm2826_vm4, %v7899_v22, %v3622_v46  ;;  %v8657_v44 = vrot.slane %v8656_v58, 1 }
 0x22b   : > { %5834 = vmatprep.subr.bf16.mxu0 %v6327_v39  ;;  %5874 = vmatprep.subr.bf16.mxu1 %v6328_v3  ;;  %v3617_v24 = vsel %vm2828_vm5, %v3607_v38, %v3616_v11  ;;  %v3631_v17 = vsel %vm2828_vm5, %v3609_v1, %v3630_v8  ;;  %v3624_v13 = vsel %vm2828_vm5, %v3608_v30, %v3623_v23  ;;  %v8658_v20 = vrot.slane %v7625_v47, 1  ;;  %v6340_v23 = vld [vmem:[%s8574_s5 + $0x88] sm:$0xff]  }
 0x22c   : > { %v3635_v29 = vsel %vm2822_vm2, %v7726_v9, %v3634_v34  ;;  %v2357_v5 = vmax.f32 %v8656_v58, %v8657_v44  ;;  %v8032_v57 = vpack.c.b16 %v3624_v13, %v3617_v24  ;;  %v3889_v60 = vsel %vm2816_vm15, %v7541_v53, %v7534_v12  ;;  %v6331_v12 = vld [vmem:[%s8573_s4 + $0x30] sm:$0xff]   ;;  %v6339_v24 = vld [vmem:[%s8573_s4 + $0x88] sm:$0xff]   ;;  %v6344_v13 = vld [vmem:[%s8574_s5 + $0x98] sm:$0xff]  }
 0x22d   : > { %v2441_v63 = vmax.f32 %v7625_v47, %v8658_v20  ;;  %v3636_v62 = vsel %vm2824_vm3, %v7806_v37, %v3635_v29  ;;  %v3896_v61 = vsel %vm2816_vm15, %v7611_v4, %v7609_v10  ;;  %v3890_v59 = vsel %vm2818_vm0, %v7543_v42, %v3889_v60  ;;  %v6332_v53 = vld [vmem:[%s8574_s5 + $0x30] sm:$0xff]   ;;  %v6345_v29 = vld [vmem:[%s8573_s4 + $0xa0] sm:$0xff]   ;;  %v6347_v44 = vld [vmem:[%s8573_s4 + $0xa8] sm:$0xff]  }
 0x22e   : > { %5835 = vmatpush3.bf16.msra.mxu0 %v6327_v39  ;;  %5875 = vmatpush3.bf16.msra.mxu1 %v6328_v3  ;;  %v3637_v6 = vsel %vm2826_vm4, %v7933_v54, %v3636_v62  ;;  %v2621_v0 = vmax.f32 %v2357_v5, 0.0  ;;  %v3891_v4 = vsel %vm2820_vm1, %v7593_v56, %v3890_v59  ;;  %v3897_v42 = vsel %vm2818_vm0, %v7613_v14, %v3896_v61  ;;  %v6346_v58 = vld [vmem:[%s8574_s5 + $0xa0] sm:$0xff]   ;;  %v6348_v5 = vld [vmem:[%s8574_s5 + $0xa8] sm:$0xff]   ;;  %v6349_v20 = vld [vmem:[%s8573_s4 + $0xb0] ss:$0 sps:$4 sm:$0xff]  }
 0x22f   : > { %v2633_v47 = vmax.f32 %v2441_v63, 0.0  ;;  %5836 = vmatprep.subr.bf16.mxu0 %v6329_v51  ;;  %5876 = vmatprep.subr.bf16.mxu1 %v6330_v52  ;;  %v3638_v10 = vsel %vm2828_vm5, %v3610_v31, %v3637_v6  ;;  %v3892_v43 = vsel %vm2822_vm2, %v7453_v21, %v3891_v4  ;;  %v3898_v49 = vsel %vm2820_vm1, %v7615_v16, %v3897_v42  ;;  %v6333_v16 = vld [vmem:[%s8573_s4 + $0x38] ss:$0 sps:$4 sm:$0xff]   ;;  %v6350_v63 = vld [vmem:[%s8574_s5 + $0xb0] ss:$0 sps:$4 sm:$0xff]   ;;  %v6355_v59 = vld [vmem:[%s8573_s4 + $0xc4] sm:$0xff]  }
 0x230   : > { %v8059_v39 = vpack.c.b16 %v3638_v10, %v3631_v17  ;;  %v2669_v3 = vpack.c.bf16 %v2621_v0, %v2621_v0  ;;  %v3893_v45 = vsel %vm2824_vm3, %v7885_v7, %v3892_v43  ;;  %v3904_v56 = vsel %vm2818_vm0, %v7638_v19, %v7691_v33  ;;  %v6334_v19 = vld [vmem:[%s8574_s5 + $0x38] ss:$0 sps:$4 sm:$0xff]   ;;  %v6353_v0 = vld [vmem:[%s8573_s4 + $0xbc] sm:$0xff]   ;;  %v6365_v43 = vld [vmem:[%s8573_s4 + $0xec] ss:$0 sps:$4 sm:$0xff]  }
 0x231   : > { %v2681_v36 = vpack.c.bf16 %v2633_v47, %v2633_v47  ;;  %v3911_v14 = vsel %vm2818_vm0, %v7702_v32, %v7699_v2  ;;  %v3887_v25 = vunpack.c.l.b16 %v7735_v26  ;;  %v3894_v21 = vsel %vm2826_vm4, %v3607_v38, %v3893_v45  ;;  %v6343_v17 = vld [vmem:[%s8573_s4 + $0x98] sm:$0xff]   ;;  %v6366_v45 = vld [vmem:[%s8574_s5 + $0xec] ss:$0 sps:$4 sm:$0xff]  }
 0x232   : > { %5837 = vmatpush3.bf16.msra.mxu0 %v6329_v51  ;;  %5877 = vmatpush3.bf16.msra.mxu1 %v6330_v52  ;;  %v3885_v34 = vunpack.c.l.b16 %v2669_v3  ;;  %v3899_v7 = vsel %vm2822_vm2, %v7694_v40, %v3898_v49  ;;  %v3905_v32 = vsel %vm2820_vm1, %v7681_v28, %v3904_v56  ;;  %v3912_v40 = vsel %vm2820_vm1, %v7726_v9, %v3911_v14  ;;  %v6338_v52 = vld [vmem:[%s8574_s5 + $0x80] sm:$0xff]   ;;  %v6351_v60 = vld [vmem:[%s8573_s4 + $0xb4] sm:$0xff]  }
 0x233   : > { %5838 = vmatprep.subr.bf16.mxu0 %v6331_v12  ;;  %5878 = vmatprep.subr.bf16.mxu1 %v6332_v53  ;;  %v3886_v33 = vunpack.c.l.b16 %v2681_v36  ;;  %v3900_v2 = vsel %vm2824_vm3, %v7899_v22, %v3899_v7  ;;  %v3906_v11 = vsel %vm2822_vm2, %v7729_v18, %v3905_v32  ;;  %v3913_v46 = vsel %vm2822_vm2, %v7806_v37, %v3912_v40  ;;  %v6352_v6 = vld [vmem:[%s8574_s5 + $0xb4] sm:$0xff]   ;;  %v6354_v47 = vld [vmem:[%s8574_s5 + $0xbc] sm:$0xff]   ;;  %v6363_v3 = vld [vmem:[%s8573_s4 + $0xe4] sm:$0xff]  }
 0x234   : > { %v3895_v26 = vsel %vm2828_vm5, %v3885_v34, %v3894_v21  ;;  %v3901_v38 = vsel %vm2826_vm4, %v3608_v30, %v3900_v2  ;;  %v3888_v8 = vunpack.c.l.b16 %v7947_v41  ;;  %v3907_v28 = vsel %vm2824_vm3, %v7737_v35, %v3906_v11  ;;  %v6335_v41 = vld [vmem:[%s8573_s4 + $0x78] sm:$0xff]   ;;  %v6364_v36 = vld [vmem:[%s8574_s5 + $0xe4] sm:$0xff]   ;;  %v6367_v56 = vld [vmem:[%s8573_s4 + $0xf0] sm:$0xff]  }
 0x235   : > { %v3902_v22 = vsel %vm2828_vm5, %v3886_v33, %v3901_v38  ;;  %v3914_v9 = vsel %vm2824_vm3, %v7933_v54, %v3913_v46  ;;  %v3908_v18 = vsel %vm2826_vm4, %v3609_v1, %v3907_v28  ;;  %v3048_v35 = vsel %vm2905_vm7, %v6333_v16, 0  ;;  %v6360_v10 = vld [vmem:[%s8574_s5 + $0xd4] sm:$0xff]   ;;  %v6361_v4 = vld [vmem:[%s8573_s4 + $0xdc] sm:$0xff]   ;;  %v6381_v11 = vld [vmem:[%s8573_s4 + $0x128] ss:$0 sps:$4 sm:$0xff]  }
 0x236   : > { %5839 = vmatpush3.bf16.msra.mxu0 %v6331_v12  ;;  %5879 = vmatpush3.bf16.msra.mxu1 %v6332_v53  ;;  %v8101_v51 = vpack.c.b16 %v3902_v22, %v3895_v26  ;;  %v3915_v37 = vsel %vm2826_vm4, %v3610_v31, %v3914_v9  ;;  %v3258_v54 = vsel %vm2905_vm7, %v6334_v19, 0  ;;  %v3909_v50 = vsel %vm2828_vm5, %v3887_v25, %v3908_v18  ;;  %v6337_v31 = vld [vmem:[%s8573_s4 + $0x80] sm:$0xff]   ;;  %v6358_v53 = vld [vmem:[%s8574_s5 + $0xcc] sm:$0xff]   ;;  %v6369_v34 = vld [vmem:[%s8573_s4 + $0xf8] sm:$0xff]  }
 0x237   : > { %6226 = vmatprep.subr.msk.bf16.mxu0 %vm2905_vm7, %v6333_v16  ;;  %6228 = vmatprep.subr.msk.bf16.mxu1 %vm2905_vm7, %v6334_v19  ;;  %v3916_v1 = vsel %vm2828_vm5, %v3888_v8, %v3915_v37  ;;  %v3415_v62 = vsel %vm2905_vm7, %v6349_v20, 0  ;;  %v3532_v61 = vsel %vm2905_vm7, %v6350_v63, 0  ;;  %v6356_v12 = vld [vmem:[%s8574_s5 + $0xc4] sm:$0xff]   ;;  %v6362_v42 = vld [vmem:[%s8574_s5 + $0xdc] sm:$0xff]   ;;  %v3693_v49 = vsel %vm2905_vm7, %v6365_v43, 0  ;;  %v6368_v25 = vld [vmem:[%s8574_s5 + $0xf0] sm:$0xff]  }
 0x238   : > { %v8121_v30 = vpack.c.b16 %v3916_v1, %v3909_v50  ;;  %v3810_v14 = vsel %vm2905_vm7, %v6366_v45, 0  ;;  %v6370_v21 = vld [vmem:[%s8574_s5 + $0xf8] sm:$0xff]   ;;  %v6371_v7 = vld [vmem:[%s8573_s4 + $0x100] sm:$0xff]   ;;  %v6374_v19 = vld [vmem:[%s8574_s5 + $0x108] sm:$0xff]   ;;  %v3971_v8 = vsel %vm2905_vm7, %v6381_v11, 0 }
 0x239   : > { %v6372_v16 = vld [vmem:[%s8574_s5 + $0x100] sm:$0xff]   ;;  %v6375_v33 = vld [vmem:[%s8573_s4 + $0x110] sm:$0xff]   ;;  %v6377_v32 = vld [vmem:[%s8573_s4 + $0x118] sm:$0xff]  }
 0x23a   : > { %5841 = vmatpush3.bf16.msra.mxu0 %v3048_v35  ;;  %5881 = vmatpush3.bf16.msra.mxu1 %v3258_v54  ;;  %v6376_v2 = vld [vmem:[%s8574_s5 + $0x110] sm:$0xff]   ;;  %v6378_v40 = vld [vmem:[%s8574_s5 + $0x118] sm:$0xff]   ;;  %v6379_v26 = vld [vmem:[%s8573_s4 + $0x120] sm:$0xff]  }
 0x23b   : > { %5886 = vmatprep.subr.bf16.mxu0 %v6335_v41  ;;  %5906 = vmatprep.subr.bf16.mxu1 %v6336_v27  ;;  %v6380_v38 = vld [vmem:[%s8574_s5 + $0x120] sm:$0xff]   ;;  %v6382_v46 = vld [vmem:[%s8574_s5 + $0x128] ss:$0 sps:$4 sm:$0xff]   ;;  %v6386_v37 = vld [vmem:[%s8576_s7 + $0x30] sm:$0xff]  }
 0x23c   : > { %v4088_v22 = vsel %vm2905_vm7, %v6382_v46, 0  ;;  %v6383_v28 = vld [vmem:[%s8576_s7] sm:$0xff]   ;;  %v6384_v9 = vld [vmem:[%s8576_s7 + $0x28] sm:$0xff]   ;;  %v6387_v35 = vld [vmem:[%s8576_s7 + $0x10] sm:$0xff]  }
 0x23d   : > { %5843 = vmatmul.mubr.msk.bf16.vlgmr.msra.gmra.mrb[12].mxu0 %vm2898_vm6, %v7879_v15  ;;  %5883 = vmatmul.mubr.msk.bf16.vlgmr.msra.gmra.mrb[20].mxu1 %vm2898_vm6, %v7879_v15  ;;  %v6341_v15 = vld [vmem:[%s8573_s4 + $0x90] sm:$0xff]   ;;  %v6385_v18 = vld [vmem:[%s8576_s7 + $0x8] sm:$0xff]   ;;  %v6388_v54 = vld [vmem:[%s8576_s7 + $0x38] sm:$0xff]  }
 0x23e   : > { %5887 = vmatpush3.bf16.msra.mxu0 %v6335_v41  ;;  %5902 = vmatprep.mubr.msk.bf16.mxu0 %vm2898_vm6, %v7941_v55  ;;  %v6389_v41 = vld [vmem:[%s8576_s7 + $0x18] sm:$0xff]   ;;  %v6391_v50 = vld [vmem:[%s8576_s7 + $0x20] sm:$0xff]   ;;  %v6392_v1 = vld [vmem:[%s8576_s7 + $0x48] sm:$0xff]  }
 0x23f   : > { %5907 = vmatpush3.bf16.msra.mxu1 %v6336_v27  ;;  %5922 = vmatprep.mubr.msk.bf16.mxu1 %vm2898_vm6, %v7941_v55  ;;  %v6342_v55 = vld [vmem:[%s8574_s5 + $0x90] sm:$0xff]   ;;  %v6390_v27 = vld [vmem:[%s8576_s7 + $0x40] sm:$0xff]  }
 0x240   : > { %5888 = vmatprep.subr.bf16.mxu0 %v6337_v31  ;;  %5908 = vmatprep.subr.bf16.mxu1 %v6338_v52 }
 0x242   : > { %5889 = vmatpush3.bf16.msra.mxu0 %v6337_v31 }
 0x243   : > { %5909 = vmatpush3.bf16.msra.mxu1 %v6338_v52  ;;  %5890 = vmatprep.subr.bf16.mxu0 %v6339_v24  ;;  %v8350_v52 = vld [vmem:[%s8575_s6] ss:$0 sm:$0xff] }
 0x244   : > { %5910 = vmatprep.subr.bf16.mxu1 %v6340_v23 }
 0x246   : > { %5891 = vmatpush3.bf16.msra.mxu0 %v6339_v24 }
 0x247   : > { %5911 = vmatpush3.bf16.msra.mxu1 %v6340_v23  ;;  %5892 = vmatprep.subr.bf16.mxu0 %v6341_v15 }
 0x248   : > { %5912 = vmatprep.subr.bf16.mxu1 %v6342_v55 }
 0x24a   : > { %5893 = vmatpush3.bf16.msra.mxu0 %v6341_v15 }
 0x24b   : > { %5913 = vmatpush3.bf16.msra.mxu1 %v6342_v55  ;;  %5894 = vmatprep.subr.bf16.mxu0 %v6343_v17 }
 0x24c   : > { %5914 = vmatprep.subr.bf16.mxu1 %v6344_v13 }
 0x24e   : > { %5895 = vmatpush3.bf16.msra.mxu0 %v6343_v17 }
 0x24f   : > { %5915 = vmatpush3.bf16.msra.mxu1 %v6344_v13  ;;  %5896 = vmatprep.subr.bf16.mxu0 %v6345_v29 }
 0x250   : > { %5916 = vmatprep.subr.bf16.mxu1 %v6346_v58 }
 0x252   : > { %5897 = vmatpush3.bf16.msra.mxu0 %v6345_v29 }
 0x253   : > { %5917 = vmatpush3.bf16.msra.mxu1 %v6346_v58  ;;  %5898 = vmatprep.subr.bf16.mxu0 %v6347_v44 }
 0x254   : > { %5918 = vmatprep.subr.bf16.mxu1 %v6348_v5 }
 0x256   : > { %5899 = vmatpush3.bf16.msra.mxu0 %v6347_v44 }
 0x257   : > { %5919 = vmatpush3.bf16.msra.mxu1 %v6348_v5  ;;  %6229 = vmatprep.subr.msk.bf16.mxu0 %vm2905_vm7, %v6349_v20 }
 0x258   : > { %6230 = vmatprep.subr.msk.bf16.mxu1 %vm2905_vm7, %v6350_v63 }
 0x25a   : > { %5901 = vmatpush3.bf16.msra.mxu0 %v3415_v62 }
 0x25b   : > { %5921 = vmatpush3.bf16.msra.mxu1 %v3532_v61  ;;  %5926 = vmatprep.subr.bf16.mxu0 %v6351_v60 }
 0x25c   : > { %5946 = vmatprep.subr.bf16.mxu1 %v6352_v6 }
 0x25d   : > { %5903 = vmatmul.mubr.msk.bf16.vlgmr.msra.gmra.mrb[12].mxu0 %vm2898_vm6, %v7967_v48 }
 0x25e   : > { %5923 = vmatmul.mubr.msk.bf16.vlgmr.msra.gmra.mrb[20].mxu1 %vm2898_vm6, %v7967_v48  ;;  %5927 = vmatpush3.bf16.msra.mxu0 %v6351_v60  ;;  %v6357_v48 = vld [vmem:[%s8573_s4 + $0xcc] sm:$0xff]  }
 0x25f   : > { %5942 = vmatprep.mubr.msk.bf16.mxu0 %vm2898_vm6, %v8032_v57  ;;  %5947 = vmatpush3.bf16.msra.mxu1 %v6352_v6  ;;  %v8659_v60 = vld [vmem:[#allocation5_spill] sm:$0xff] }
 0x260   : > { %5962 = vmatprep.mubr.msk.bf16.mxu1 %vm2898_vm6, %v8032_v57  ;;  %5928 = vmatprep.subr.bf16.mxu0 %v6353_v0  ;;  %v6359_v57 = vld [vmem:[%s8573_s4 + $0xd4] sm:$0xff]  }
 0x261   : > { %5948 = vmatprep.subr.bf16.mxu1 %v6354_v47 }
 0x262   : > { %5929 = vmatpush3.bf16.msra.mxu0 %v6353_v0 }
 0x263   : > { %5949 = vmatpush3.bf16.msra.mxu1 %v6354_v47  ;;  %5930 = vmatprep.subr.bf16.mxu0 %v6355_v59 }
 0x264   : > { %5950 = vmatprep.subr.bf16.mxu1 %v6356_v12 }
 0x266   : > { %5931 = vmatpush3.bf16.msra.mxu0 %v6355_v59 }
 0x267   : > { %5951 = vmatpush3.bf16.msra.mxu1 %v6356_v12  ;;  %5932 = vmatprep.subr.bf16.mxu0 %v6357_v48 }
 0x268   : > { %5952 = vmatprep.subr.bf16.mxu1 %v6358_v53 }
 0x26a   : > { %5933 = vmatpush3.bf16.msra.mxu0 %v6357_v48 }
 0x26b   : > { %5953 = vmatpush3.bf16.msra.mxu1 %v6358_v53  ;;  %5934 = vmatprep.subr.bf16.mxu0 %v6359_v57 }
 0x26c   : > { %5954 = vmatprep.subr.bf16.mxu1 %v6360_v10 }
 0x26e   : > { %5935 = vmatpush3.bf16.msra.mxu0 %v6359_v57 }
 0x26f   : > { %5955 = vmatpush3.bf16.msra.mxu1 %v6360_v10  ;;  %5936 = vmatprep.subr.bf16.mxu0 %v6361_v4 }
 0x270   : > { %5956 = vmatprep.subr.bf16.mxu1 %v6362_v42 }
 0x272   : > { %5937 = vmatpush3.bf16.msra.mxu0 %v6361_v4 }
 0x273   : > { %5957 = vmatpush3.bf16.msra.mxu1 %v6362_v42  ;;  %5938 = vmatprep.subr.bf16.mxu0 %v6363_v3 }
 0x274   : > { %5958 = vmatprep.subr.bf16.mxu1 %v6364_v36 }
 0x276   : > { %5939 = vmatpush3.bf16.msra.mxu0 %v6363_v3 }
 0x277   : > { %5959 = vmatpush3.bf16.msra.mxu1 %v6364_v36  ;;  %6231 = vmatprep.subr.msk.bf16.mxu0 %vm2905_vm7, %v6365_v43 }
 0x278   : > { %6232 = vmatprep.subr.msk.bf16.mxu1 %vm2905_vm7, %v6366_v45 }
 0x27a   : > { %5941 = vmatpush3.bf16.msra.mxu0 %v3693_v49 }
 0x27b   : > { %5961 = vmatpush3.bf16.msra.mxu1 %v3810_v14  ;;  %5966 = vmatprep.subr.bf16.mxu0 %v6367_v56 }
 0x27c   : > { %5986 = vmatprep.subr.bf16.mxu1 %v6368_v25 }
 0x27d   : > { %5943 = vmatmul.mubr.msk.bf16.vlgmr.msra.gmra.mrb[12].mxu0 %vm2898_vm6, %v8059_v39 }
 0x27e   : > { %5963 = vmatmul.mubr.msk.bf16.vlgmr.msra.gmra.mrb[20].mxu1 %vm2898_vm6, %v8059_v39  ;;  %5967 = vmatpush3.bf16.msra.mxu0 %v6367_v56  ;;  %v6373_v39 = vld [vmem:[%s8573_s4 + $0x108] sm:$0xff]  }
 0x27f   : > { %5982 = vmatprep.mubr.msk.bf16.mxu0 %vm2898_vm6, %v8101_v51  ;;  %5987 = vmatpush3.bf16.msra.mxu1 %v6368_v25 }
 0x280   : > { %6002 = vmatprep.mubr.msk.bf16.mxu1 %vm2898_vm6, %v8101_v51  ;;  %5968 = vmatprep.subr.bf16.mxu0 %v6369_v34  ;;  %v6481_v51 = vmov 0.0  }
 0x281   : > { %5988 = vmatprep.subr.bf16.mxu1 %v6370_v21 }
 0x282   : > { %5969 = vmatpush3.bf16.msra.mxu0 %v6369_v34 }
 0x283   : > { %5989 = vmatpush3.bf16.msra.mxu1 %v6370_v21  ;;  %5970 = vmatprep.subr.bf16.mxu0 %v6371_v7 }
 0x284   : > { %5990 = vmatprep.subr.bf16.mxu1 %v6372_v16 }
 0x286   : > { %5971 = vmatpush3.bf16.msra.mxu0 %v6371_v7 }
 0x287   : > { %5991 = vmatpush3.bf16.msra.mxu1 %v6372_v16  ;;  %5972 = vmatprep.subr.bf16.mxu0 %v6373_v39 }
 0x288   : > { %5992 = vmatprep.subr.bf16.mxu1 %v6374_v19 }
 0x28a   : > { %5973 = vmatpush3.bf16.msra.mxu0 %v6373_v39 }
 0x28b   : > { %5993 = vmatpush3.bf16.msra.mxu1 %v6374_v19  ;;  %5974 = vmatprep.subr.bf16.mxu0 %v6375_v33 }
 0x28c   : > { %5994 = vmatprep.subr.bf16.mxu1 %v6376_v2 }
 0x28e   : > { %5975 = vmatpush3.bf16.msra.mxu0 %v6375_v33 }
 0x28f   : > { %5995 = vmatpush3.bf16.msra.mxu1 %v6376_v2  ;;  %5976 = vmatprep.subr.bf16.mxu0 %v6377_v32 }
 0x290   : > { %5996 = vmatprep.subr.bf16.mxu1 %v6378_v40 }
 0x292   : > { %5977 = vmatpush3.bf16.msra.mxu0 %v6377_v32 }
 0x293   : > { %5997 = vmatpush3.bf16.msra.mxu1 %v6378_v40  ;;  %5978 = vmatprep.subr.bf16.mxu0 %v6379_v26 }
 0x294   : > { %5998 = vmatprep.subr.bf16.mxu1 %v6380_v38 }
 0x296   : > { %5979 = vmatpush3.bf16.msra.mxu0 %v6379_v26 }
 0x297   : > { %5999 = vmatpush3.bf16.msra.mxu1 %v6380_v38  ;;  %6233 = vmatprep.subr.msk.bf16.mxu0 %vm2905_vm7, %v6381_v11 }
 0x298   : > { %6234 = vmatprep.subr.msk.bf16.mxu1 %vm2905_vm7, %v6382_v46 }
 0x29a   : > { %5981 = vmatpush3.bf16.msra.mxu0 %v3971_v8 }
 0x29b   : > { %6001 = vmatpush3.bf16.msra.mxu1 %v4088_v22  ;;  %6006 = vmatprep.subr.bf16.mxu0 %v6481_v51 }
 0x29c   : > { %6020 = vmatprep.subr.bf16.mxu1 %v6481_v51 }
 0x29d   : > { %5983 = vmatmul.mubr.msk.bf16.vlgmr.msra.gmra.mrb[12].mxu0 %vm2898_vm6, %v8121_v30 }
 0x29e   : > { %6003 = vmatmul.mubr.msk.bf16.vlgmr.msra.gmra.mrb[20].mxu1 %vm2898_vm6, %v8121_v30  ;;  %6007 = vmatpush3.bf16.msra.mxu0 %v6384_v9 }
 0x29f   : > { %6021 = vmatpush3.bf16.msra.mxu1 %v6383_v28  ;;  %6008 = vmatprep.subr.bf16.mxu0 %v6481_v51 }
 0x2a0   : > { %6022 = vmatprep.subr.bf16.mxu1 %v6481_v51  ;;  %6030 = vmatprep.mubr.msk.bf16.mxu1 %vm6482_vm8, %v6481_v51 }
 0x2a1   : > { %6016 = vmatprep.mubr.msk.bf16.mxu0 %vm6482_vm8, %v6481_v51 }
 0x2a2   : > { %6009 = vmatpush3.bf16.msra.mxu0 %v6386_v37 }
 0x2a3   : > { %6023 = vmatpush3.bf16.msra.mxu1 %v6385_v18  ;;  %6010 = vmatprep.subr.bf16.mxu0 %v6481_v51 }
 0x2a4   : > { %6024 = vmatprep.subr.bf16.mxu1 %v6481_v51 }
 0x2a6   : > { %6011 = vmatpush3.bf16.msra.mxu0 %v6388_v54 }
 0x2a7   : > { %6025 = vmatpush3.bf16.msra.mxu1 %v6387_v35  ;;  %6012 = vmatprep.subr.bf16.mxu0 %v6481_v51 }
 0x2a8   : > { %6026 = vmatprep.subr.bf16.mxu1 %v6481_v51 }
 0x2aa   : > { %6013 = vmatpush3.bf16.msra.mxu0 %v6390_v27 }
 0x2ab   : > { %6027 = vmatpush3.bf16.msra.mxu1 %v6389_v41  ;;  %6014 = vmatprep.subr.bf16.mxu0 %v6481_v51 }
 0x2ac   : > { %6028 = vmatprep.subr.bf16.mxu1 %v6481_v51 }
 0x2ae   : > { %6015 = vmatpush3.bf16.msra.mxu0 %v6392_v1 }
 0x2af   : > { %6029 = vmatpush3.bf16.msra.mxu1 %v6391_v50  ;;  %6034 = vmatprep.subr.bf16.mxu0 %v6481_v51 }
 0x2b0   : > { %6048 = vmatprep.subr.bf16.mxu1 %v6481_v51 }
 0x370   : > { %v5984_v30 = vpop.f32.mrb[12].mxu0 }
 0x371   : > { %v6004_v31 = vpop.f32.mrb[20].mxu1  ;;  %v4007_v24 = vpop.f32.mrb[13].mxu0 }
 0x372   : > { %v4145_v23 = vmax.f32 %v5984_v30, %v6004_v31  ;;  %v4124_v15 = vpop.f32.mrb[21].mxu1  ;;  %v8352_v55 = vpop.f32.mrb[14].mxu0 }
 0x373   : > { %v4143_v17 = vmax.f32 %v4007_v24, %v4124_v15  ;;  %v8354_v13 = vpop.f32.mrb[22].mxu1  ;;  %v8356_v29 = vpop.f32.mrb[15].mxu0 }
 0x374   : > { %v4156_v58 = vadd.f32 %v8350_v52, %v4145_v23  ;;  %v4146_v44 = vmax.f32 %v8352_v55, %v8354_v13  ;;  %v8361_v5 = vpop.f32.mrb[23].mxu1 }
 0x375   : > { %v4154_v20 = vadd.f32 %v8350_v52, %v4143_v17  ;;  %v4144_v63 = vmax.f32 %v8356_v29, %v8361_v5 }
 0x376   : > { %v4196_v62 = vcombine.high %v4156_v58, %v4156_v58  ;;  %v4203_v61 = vrot.slane %v4156_v58, %v8659_v60  ;;  %v4157_v13 = vadd.f32 %v8350_v52, %v4146_v44 }
 0x377   : > { %v4162_v6 = vcombine.high %v4154_v20, %v4154_v20  ;;  %v4169_v0 = vrot.slane %v4154_v20, %v8659_v60 }
 0x378   : > { %v4210_v47 = vrot.slane %v4196_v62, %v8659_v60  ;;  %v4211_v59 = vcombine.high %v4203_v61, %v4203_v61  ;;  %v4303_v12 = vsel %vm4246_vm9, %v4203_v61, -inf }
 0x379   : > { %v4304_v48 = vrot.slane %v4303_v12, 4  ;;  %v4176_v53 = vrot.slane %v4162_v6, %v8659_v60  ;;  %v4177_v57 = vcombine.high %v4169_v0, %v4169_v0  ;;  %v4247_v10 = vsel %vm4246_vm9, %v4169_v0, -inf }
 0x37a   : > { %v4212_v4 = vcombine.high %v4210_v47, %v4210_v47  ;;  %v4310_v42 = vsel %vm4246_vm9, %v4211_v59, -inf  ;;  %v4317_v3 = vsel %vm4246_vm9, %v4210_v47, -inf  ;;  %v4248_v36 = vrot.slane %v4247_v10, 4 }
 0x37b   : > { %v4305_v43 = vmax.f32 %v4303_v12, %v4304_v48  ;;  %v4311_v45 = vrot.slane %v4310_v42, 4  ;;  %v4318_v49 = vrot.slane %v4317_v3, 4  ;;  %v4178_v56 = vcombine.high %v4176_v53, %v4176_v53 }
 0x37c   : > { %v4324_v14 = vsel %vm4246_vm9, %v4212_v4, -inf  ;;  %v4249_v25 = vmax.f32 %v4247_v10, %v4248_v36  ;;  %v4254_v34 = vsel %vm4246_vm9, %v4177_v57, -inf  ;;  %v4261_v21 = vsel %vm4246_vm9, %v4176_v53, -inf }
 0x37d   : > { %v4306_v7 = vrot.slane %v4305_v43, 2  ;;  %v4312_v16 = vmax.f32 %v4310_v42, %v4311_v45  ;;  %v4319_v39 = vmax.f32 %v4317_v3, %v4318_v49  ;;  %v4325_v19 = vrot.slane %v4324_v14, 4 }
 0x37e   : > { %v4250_v33 = vrot.slane %v4249_v25, 2  ;;  %v4255_v2 = vrot.slane %v4254_v34, 4  ;;  %v4262_v32 = vrot.slane %v4261_v21, 4  ;;  %v4268_v40 = vsel %vm4246_vm9, %v4178_v56, -inf }
 0x37f   : > { %v4307_v26 = vmax.f32 %v4305_v43, %v4306_v7  ;;  %v4313_v38 = vrot.slane %v4312_v16, 2  ;;  %v4320_v11 = vrot.slane %v4319_v39, 2  ;;  %v4326_v46 = vmax.f32 %v4324_v14, %v4325_v19 }
 0x380   : > { %v4251_v8 = vmax.f32 %v4249_v25, %v4250_v33  ;;  %v4256_v22 = vmax.f32 %v4254_v34, %v4255_v2  ;;  %v4263_v28 = vmax.f32 %v4261_v21, %v4262_v32  ;;  %v4269_v9 = vrot.slane %v4268_v40, 4 }
 0x381   : > { %v4308_v18 = vrot.slane %v4307_v26, 1  ;;  %v4314_v37 = vmax.f32 %v4312_v16, %v4313_v38  ;;  %v4321_v35 = vmax.f32 %v4319_v39, %v4320_v11  ;;  %v4327_v54 = vrot.slane %v4326_v46, 2 }
 0x382   : > { %v4252_v41 = vrot.slane %v4251_v8, 1  ;;  %v4257_v27 = vrot.slane %v4256_v22, 2  ;;  %v4264_v50 = vrot.slane %v4263_v28, 2  ;;  %v4270_v1 = vmax.f32 %v4268_v40, %v4269_v9 }
 0x383   : > { %v4309_v30 = vmax.f32 %v4307_v26, %v4308_v18  ;;  %v4315_v31 = vrot.slane %v4314_v37, 1  ;;  %v4322_v24 = vrot.slane %v4321_v35, 1  ;;  %v4328_v23 = vmax.f32 %v4326_v46, %v4327_v54 }
 0x384   : > { %v4258_v15 = vmax.f32 %v4256_v22, %v4257_v27  ;;  %v4265_v55 = vmax.f32 %v4263_v28, %v4264_v50  ;;  %v4271_v17 = vrot.slane %v4270_v1, 2  ;;  %v4253_v58 = vmax.f32 %v4251_v8, %v4252_v41 }
 0x385   : > { %v4316_v20 = vmax.f32 %v4314_v37, %v4315_v31  ;;  %v4323_v62 = vmax.f32 %v4321_v35, %v4322_v24  ;;  %v4329_v61 = vrot.slane %v4328_v23, 1  ;;  %v4367_v6 = vmax.f32 %v4309_v30, 0.0 }
 0x386   : > { %v4259_v0 = vrot.slane %v4258_v15, 1  ;;  %v4266_v47 = vrot.slane %v4265_v55, 1  ;;  %v4272_v59 = vmax.f32 %v4270_v1, %v4271_v17  ;;  %v4213_v12 = vcombine.high %v4157_v13, %v4157_v13 }
 0x387   : > { %v4359_v48 = vmax.f32 %v4253_v58, 0.0  ;;  %v4155_v53 = vadd.f32 %v8350_v52, %v4144_v63  ;;  %v8383_v57 = vmax.f32 %v4328_v23, %v4329_v61  ;;  %v4368_v10 = vmax.f32 %v4316_v20, 0.0 }
 0x388   : > { %v4369_v4 = vmax.f32 %v4323_v62, 0.0  ;;  %v8385_v44 = vpack.c.bf16 %v4367_v6, %v4367_v6  ;;  %v4220_v42 = vrot.slane %v4157_v13, %v8659_v60  ;;  %v8388_v3 = vmax.f32 %v4258_v15, %v4259_v0 }
 0x389   : > { %v8390_v36 = vmax.f32 %v4265_v55, %v4266_v47  ;;  %v4273_v43 = vrot.slane %v4272_v59, 1  ;;  %v4227_v45 = vrot.slane %v4213_v12, %v8659_v60  ;;  %v8393_v49 = vpack.c.bf16 %v4359_v48, %v4359_v48 }
 0x38a   : > { %v4228_v29 = vcombine.high %v4220_v42, %v4220_v42  ;;  %v4331_v52 = vsel %vm4246_vm9, %v4220_v42, -inf  ;;  %v4179_v5 = vcombine.high %v4155_v53, %v4155_v53  ;;  %v4370_v63 = vmax.f32 %v8383_v57, 0.0 }
 0x38b   : > { %v8397_v56 = vpack.c.bf16 %v4368_v10, %v4368_v10  ;;  %v8399_v14 = vpack.c.bf16 %v4369_v4, %v4369_v4  ;;  %v4229_v25 = vcombine.high %v4227_v45, %v4227_v45  ;;  %v4332_v34 = vrot.slane %v4331_v52, 4 }
 0x38c   : > { %v4338_v21 = vsel %vm4246_vm9, %v4228_v29, -inf  ;;  %v4345_v7 = vsel %vm4246_vm9, %v4227_v45, -inf  ;;  %v4186_v16 = vrot.slane %v4155_v53, %v8659_v60  ;;  %v4504_v39 = vunpack.c.l.b16 %v8385_v44 }
 0x38d   : > { %v4339_v19 = vrot.slane %v4338_v21, 4  ;;  %v4346_v33 = vrot.slane %v4345_v7, 4  ;;  %v4352_v2 = vsel %vm4246_vm9, %v4229_v25, -inf  ;;  %v4333_v32 = vmax.f32 %v4331_v52, %v4332_v34 }
 0x38e   : > { %v4353_v40 = vrot.slane %v4352_v2, 4  ;;  %v4193_v26 = vrot.slane %v4179_v5, %v8659_v60  ;;  %v4194_v38 = vcombine.high %v4186_v16, %v4186_v16  ;;  %v4274_v11 = vmax.f32 %v4272_v59, %v4273_v43 }
 0x38f   : > { %v4340_v46 = vmax.f32 %v4338_v21, %v4339_v19  ;;  %v4347_v8 = vmax.f32 %v4345_v7, %v4346_v33  ;;  %v4275_v22 = vsel %vm4246_vm9, %v4186_v16, -inf  ;;  %v4334_v28 = vrot.slane %v4333_v32, 2 }
 0x390   : > { %v4354_v9 = vmax.f32 %v4352_v2, %v4353_v40  ;;  %v4195_v18 = vcombine.high %v4193_v26, %v4193_v26  ;;  %v4276_v37 = vrot.slane %v4275_v22, 4  ;;  %v4282_v41 = vsel %vm4246_vm9, %v4194_v38, -inf }
 0x391   : > { %v4341_v35 = vrot.slane %v4340_v46, 2  ;;  %v4348_v54 = vrot.slane %v4347_v8, 2  ;;  %v4289_v27 = vsel %vm4246_vm9, %v4193_v26, -inf  ;;  %v4335_v50 = vmax.f32 %v4333_v32, %v4334_v28 }
 0x392   : > { %v4355_v1 = vrot.slane %v4354_v9, 2  ;;  %v4277_v30 = vmax.f32 %v4275_v22, %v4276_v37  ;;  %v4283_v60 = vrot.slane %v4282_v41, 4  ;;  %v4290_v23 = vrot.slane %v4289_v27, 4 }
 0x393   : > { %v4342_v31 = vmax.f32 %v4340_v46, %v4341_v35  ;;  %v4349_v24 = vmax.f32 %v4347_v8, %v4348_v54  ;;  %v4296_v15 = vsel %vm4246_vm9, %v4195_v18, -inf  ;;  %v4336_v55 = vrot.slane %v4335_v50, 1 }
 0x394   : > { %v4356_v17 = vmax.f32 %v4354_v9, %v4355_v1  ;;  %v4278_v13 = vrot.slane %v4277_v30, 2  ;;  %v4284_v58 = vmax.f32 %v4282_v41, %v4283_v60  ;;  %v4291_v61 = vmax.f32 %v4289_v27, %v4290_v23 }
 0x395   : > { %v4343_v20 = vrot.slane %v4342_v31, 1  ;;  %v4350_v62 = vrot.slane %v4349_v24, 1  ;;  %v4297_v6 = vrot.slane %v4296_v15, 4  ;;  %v4360_v0 = vmax.f32 %v8388_v3, 0.0 }
 0x396   : > { %v4337_v47 = vmax.f32 %v4335_v50, %v4336_v55  ;;  %v4279_v59 = vmax.f32 %v4277_v30, %v4278_v13  ;;  %v4285_v12 = vrot.slane %v4284_v58, 2  ;;  %v4361_v48 = vmax.f32 %v8390_v36, 0.0 }
 0x397   : > { %v4357_v53 = vrot.slane %v4356_v17, 1  ;;  %v4292_v57 = vrot.slane %v4291_v61, 2  ;;  %v4298_v10 = vmax.f32 %v4296_v15, %v4297_v6  ;;  %v4344_v4 = vmax.f32 %v4342_v31, %v4343_v20 }
 0x398   : > { %v4351_v42 = vmax.f32 %v4349_v24, %v4350_v62  ;;  %v4280_v43 = vrot.slane %v4279_v59, 1  ;;  %v4286_v45 = vmax.f32 %v4284_v58, %v4285_v12  ;;  %v8413_v29 = vpack.c.bf16 %v4370_v63, %v4370_v63 }
 0x399   : > { %v4502_v52 = vunpack.c.l.b16 %v8393_v49  ;;  %v4293_v5 = vmax.f32 %v4291_v61, %v4292_v57  ;;  %v4299_v25 = vrot.slane %v4298_v10, 2  ;;  %v4362_v34 = vmax.f32 %v4274_v11, 0.0  ;;  %v6393_v61 = vld [vmem:[%s8576_s7 + $0x78] sm:$0xff]  }
 0x39a   : > { %v4371_v3 = vmax.f32 %v4337_v47, 0.0  ;;  %v4281_v21 = vmax.f32 %v4279_v59, %v4280_v43  ;;  %v4287_v7 = vrot.slane %v4286_v45, 1  ;;  %v4418_v16 = vunpack.c.l.b16 %v8397_v56  ;;  %v6395_v43 = vld [vmem:[%s8576_s7 + $0x80] sm:$0xff]  }
 0x39b   : > { %v4358_v36 = vmax.f32 %v4356_v17, %v4357_v53  ;;  %v4294_v19 = vrot.slane %v4293_v5, 1  ;;  %v4300_v33 = vmax.f32 %v4298_v10, %v4299_v25  ;;  %v4372_v2 = vmax.f32 %v4344_v4, 0.0  ;;  %v6398_v25 = vld [vmem:[%s8576_s7 + $0x60] sm:$0xff]  }
 0x39c   : > { %v4373_v32 = vmax.f32 %v4351_v42, 0.0  ;;  %v4288_v40 = vmax.f32 %v4286_v45, %v4287_v7  ;;  %v4363_v26 = vmax.f32 %v4281_v21, 0.0  ;;  %v4376_v63 = vpack.c.bf16 %v4360_v0, %v4360_v0  ;;  %v6401_v21 = vld [vmem:[%s8576_s7 + $0x98] sm:$0xff]   ;;  %v6402_v7 = vld [vmem:[%s8576_s7 + $0x70] sm:$0xff]  }
 0x39d   : > { %v4377_v38 = vpack.c.bf16 %v4361_v48, %v4361_v48  ;;  %v4295_v46 = vmax.f32 %v4293_v5, %v4294_v19  ;;  %v4301_v49 = vrot.slane %v4300_v33, 1  ;;  %v4378_v8 = vpack.c.bf16 %v4362_v34, %v4362_v34  ;;  %v6394_v48 = vld [vmem:[%s8576_s7 + $0x50] sm:$0xff]   ;;  %v6397_v5 = vld [vmem:[%s8576_s7 + $0x88] sm:$0xff]   ;;  %v6403_v19 = vld [vmem:[%s8578_s9] sm:$0xff]  }
 0x39e   : > { %v4387_v22 = vpack.c.bf16 %v4371_v3, %v4371_v3  ;;  %v4364_v11 = vmax.f32 %v4288_v40, 0.0  ;;  %v4379_v28 = vpack.c.bf16 %v4363_v26, %v4363_v26  ;;  %v4600_v9 = vunpack.c.l.b16 %v8399_v14  ;;  %v6399_v34 = vld [vmem:[%s8576_s7 + $0x90] sm:$0xff]   ;;  %v6400_v3 = vld [vmem:[%s8576_s7 + $0x68] sm:$0xff]   ;;  %v6407_v40 = vld [vmem:[%s8578_s9 + $0x20] sm:$0xff]  }
 0x39f   : > { %v4374_v18 = vmax.f32 %v4358_v36, 0.0  ;;  %v4302_v56 = vmax.f32 %v4300_v33, %v4301_v49  ;;  %v4365_v37 = vmax.f32 %v4295_v46, 0.0  ;;  %v4388_v35 = vpack.c.bf16 %v4372_v2, %v4372_v2  ;;  %v6404_v33 = vld [vmem:[%s8578_s9 + $0x8] sm:$0xff]   ;;  %v6405_v2 = vld [vmem:[%s8578_s9 + $0x10] sm:$0xff]  }
 0x3a0   : > { %v4389_v54 = vpack.c.bf16 %v4373_v32, %v4373_v32  ;;  %v4380_v41 = vpack.c.bf16 %v4364_v11, %v4364_v11  ;;  %v4503_v27 = vunpack.c.l.b16 %v4379_v28  ;;  %v4416_v50 = vunpack.c.l.b16 %v4376_v63  ;;  %v6406_v32 = vld [vmem:[%s8578_s9 + $0x18] sm:$0xff]   ;;  %v6408_v26 = vld [vmem:[%s8578_s9 + $0x28] sm:$0xff]   ;;  %v6409_v63 = vld [vmem:[%s8578_s9 + $0x30] sm:$0xff]  }
 0x3a1   : > { %v4598_v1 = vunpack.c.l.b16 %v4377_v38  ;;  %v4366_v30 = vmax.f32 %v4302_v56, 0.0  ;;  %v4381_v60 = vpack.c.bf16 %v4365_v37, %v4365_v37  ;;  %v4695_v31 = vunpack.c.l.b16 %v4378_v8  ;;  %v6410_v38 = vld [vmem:[%s8578_s9 + $0x38] sm:$0xff]  }
 0x3a2   : > { %v4505_v24 = vunpack.c.l.b16 %v4387_v22  ;;  %v4417_v23 = vunpack.c.l.b16 %v4380_v41  ;;  %v4506_v15 = vsel %vm2816_vm15, %v4503_v27, %v4502_v52  ;;  %v4390_v55 = vpack.c.bf16 %v4374_v18, %v4374_v18  ;;  %v6396_v52 = vld [vmem:[%s8576_s7 + $0x58] sm:$0xff]  }
 0x3a3   : > { %v4382_v17 = vpack.c.bf16 %v4366_v30, %v4366_v30  ;;  %v4599_v13 = vunpack.c.l.b16 %v4381_v60  ;;  %v4507_v14 = vsel %vm2818_vm0, %v4504_v39, %v4506_v15  ;;  %v4419_v58 = vunpack.c.l.b16 %v4388_v35 }
 0x3a4   : > { %v4601_v20 = vunpack.c.l.b16 %v4389_v54  ;;  %v4508_v62 = vsel %vm2820_vm1, %v4505_v24, %v4507_v14  ;;  %v4420_v6 = vsel %vm2816_vm15, %v4417_v23, %v4416_v50  ;;  %v4697_v44 = vunpack.c.l.b16 %v8413_v29 }
 0x3a5   : > { %v4696_v0 = vunpack.c.l.b16 %v4382_v17  ;;  %v4509_v47 = vpack.c.b16 %v4508_v62, %v4508_v62  ;;  %v4421_v59 = vsel %vm2818_vm0, %v4418_v16, %v4420_v6  ;;  %v4602_v12 = vsel %vm2816_vm15, %v4599_v13, %v4598_v1 }
 0x3a6   : > { %v4422_v39 = vsel %vm2820_vm1, %v4419_v58, %v4421_v59  ;;  %v4603_v53 = vsel %vm2818_vm0, %v4600_v9, %v4602_v12  ;;  %v4698_v10 = vunpack.c.l.b16 %v4390_v55  ;;  %v5419_v55 = vld [vmem:[%s8579_s10] ss:$0 sm:$0xff] }
 0x3a7   : > { %6031 = vmatmul.mubr.msk.bf16.vlgmr.msra.gmra.mrb[24].mxu1 %vm4454_vm10, %v4509_v47  ;;  %v4423_v57 = vpack.c.b16 %v4422_v39, %v4422_v39  ;;  %v4699_v4 = vsel %vm2816_vm15, %v4696_v0, %v4695_v31  ;;  %v4604_v42 = vsel %vm2820_vm1, %v4601_v20, %v4603_v53 }
 0x3a8   : > { %6049 = vmatpush3.bf16.msra.mxu1 %v6393_v61  ;;  %6058 = vmatprep.mubr.msk.bf16.mxu1 %vm6482_vm8, %v6481_v51  ;;  %v4700_v45 = vsel %vm2818_vm0, %v4697_v44, %v4699_v4  ;;  %v4605_v36 = vpack.c.b16 %v4604_v42, %v4604_v42 }
 0x3a9   : > { %6017 = vmatmul.mubr.msk.bf16.vlgmr.msra.gmra.mrb[16].mxu0 %vm4454_vm10, %v4423_v57  ;;  %6050 = vmatprep.subr.bf16.mxu1 %v6481_v51  ;;  %v4701_v29 = vsel %vm2820_vm1, %v4698_v10, %v4700_v45 }
 0x3aa   : > { %6035 = vmatpush3.bf16.msra.mxu0 %v6394_v48  ;;  %6044 = vmatprep.mubr.msk.bf16.mxu0 %vm6482_vm8, %v6481_v51  ;;  %v4702_v16 = vpack.c.b16 %v4701_v29, %v4701_v29 }
 0x3ab   : > { %6036 = vmatprep.subr.bf16.mxu0 %v6481_v51 }
 0x3ac   : > { %6051 = vmatpush3.bf16.msra.mxu1 %v6395_v43 }
 0x3ad   : > { %6052 = vmatprep.subr.bf16.mxu1 %v6481_v51 }
 0x3ae   : > { %6037 = vmatpush3.bf16.msra.mxu0 %v6396_v52 }
 0x3af   : > { %6038 = vmatprep.subr.bf16.mxu0 %v6481_v51 }
 0x3b0   : > { %6053 = vmatpush3.bf16.msra.mxu1 %v6397_v5 }
 0x3b1   : > { %6054 = vmatprep.subr.bf16.mxu1 %v6481_v51 }
 0x3b2   : > { %6039 = vmatpush3.bf16.msra.mxu0 %v6398_v25 }
 0x3b3   : > { %6040 = vmatprep.subr.bf16.mxu0 %v6481_v51 }
 0x3b4   : > { %6055 = vmatpush3.bf16.msra.mxu1 %v6399_v34 }
 0x3b5   : > { %6056 = vmatprep.subr.bf16.mxu1 %v6481_v51 }
 0x3b6   : > { %6041 = vmatpush3.bf16.msra.mxu0 %v6400_v3 }
 0x3b7   : > { %6042 = vmatprep.subr.bf16.mxu0 %v6481_v51 }
 0x3b8   : > { %6057 = vmatpush3.bf16.msra.mxu1 %v6401_v21 }
 0x3ba   : > { %6043 = vmatpush3.bf16.msra.mxu0 %v6402_v7 }
 0x3bb   : > { %6059 = vmatmul.mubr.msk.bf16.vlgmr.msra.gmra.mrb[28].mxu1 %vm4454_vm10, %v4702_v16  ;;  %6062 = vmatprep.subr.bf16.mxu0 %v6481_v51 }
 0x3bd   : > { %6045 = vmatmul.mubr.msk.bf16.vlgmr.msra.gmra.mrb[20].mxu0 %vm4454_vm10, %v4605_v36 }
 0x3be   : > { %6078 = vmatprep.mubr.msk.bf16.mxu0 %vm6482_vm8, %v6481_v51  ;;  %6063 = vmatpush3.bf16.msra.mxu0 %v6403_v19 }
 0x3bf   : > { %6064 = vmatprep.subr.bf16.mxu0 %v6481_v51 }
 0x3c2   : > { %6065 = vmatpush3.bf16.msra.mxu0 %v6404_v33 }
 0x3c3   : > { %6066 = vmatprep.subr.bf16.mxu0 %v6481_v51 }
 0x3c6   : > { %6067 = vmatpush3.bf16.msra.mxu0 %v6405_v2 }
 0x3c7   : > { %6068 = vmatprep.subr.bf16.mxu0 %v6481_v51 }
 0x3ca   : > { %6069 = vmatpush3.bf16.msra.mxu0 %v6406_v32 }
 0x3cb   : > { %6070 = vmatprep.subr.bf16.mxu0 %v6481_v51 }
 0x3ce   : > { %6071 = vmatpush3.bf16.msra.mxu0 %v6407_v40 }
 0x3cf   : > { %6072 = vmatprep.subr.bf16.mxu0 %v6481_v51 }
 0x3d2   : > { %6073 = vmatpush3.bf16.msra.mxu0 %v6408_v26 }
 0x3d3   : > { %6074 = vmatprep.subr.bf16.mxu0 %v6481_v51 }
 0x3d6   : > { %6075 = vmatpush3.bf16.msra.mxu0 %v6409_v63 }
 0x3d7   : > { %6076 = vmatprep.subr.bf16.mxu0 %v6481_v51  ;;  %v5418_v51 = vld [vmem:[%s8577_s8] ss:$0 sm:$0xff] }
 0x3da   : > { %6077 = vmatpush3.bf16.msra.mxu0 %v6410_v38 }
 0x47a   : > { %v4577_v46 = vpop.f32.mrb[24].mxu1 }
 0x47b   : > { %v6032_v49 = vpop.f32.mrb[25].mxu1 }
 0x47c   : > { %v4492_v8 = vpop.f32.mrb[16].mxu0  ;;  %v4580_v22 = vpop.f32.mrb[26].mxu1 }
 0x47d   : > { %v4578_v11 = vadd.f32 %v4577_v46, %v4492_v8  ;;  %v6018_v28 = vpop.f32.mrb[17].mxu0  ;;  %v6033_v9 = vpop.f32.mrb[27].mxu1 }
 0x47e   : > { %v4495_v18 = vpop.f32.mrb[18].mxu0 }
 0x47f   : > { %v6019_v56 = vpop.f32.mrb[19].mxu0 }
 0x48e   : > { %v4770_v37 = vpop.f32.mrb[28].mxu1 }
 0x48f   : > { %v6060_v35 = vpop.f32.mrb[29].mxu1 }
 0x490   : > { %v4673_v54 = vpop.f32.mrb[20].mxu0  ;;  %v4773_v41 = vpop.f32.mrb[30].mxu1 }
 0x491   : > { %v4679_v27 = vadd.f32 %v4673_v54, %v4578_v11  ;;  %v6046_v50 = vpop.f32.mrb[21].mxu0  ;;  %v6061_v1 = vpop.f32.mrb[31].mxu1 }
 0x492   : > { %v4676_v30 = vpop.f32.mrb[22].mxu0 }
 0x493   : > { %v4776_v60 = vadd.f32 %v4770_v37, %v4679_v27  ;;  %v6047_v31 = vpop.f32.mrb[23].mxu0 }
 0x495   : > { %v4784_v24 = vadd.f32 %v5418_v51, %v4776_v60 }
 0x497   : > { %v4785_v23 = vmax.f32 %v4784_v24, 0.0 }
 0x499   : > { %v4786_v15 = vpack.c.bf16 %v4785_v23, %v4785_v23 }
 0x49b   : > { %6079 = vmatmul.mubr.bf16.vlgmr.msra.gmra.mrb[24].mxu0 %v4786_v15 }
 0x56e   : > { %v4892_v17 = vpop.f32.mrb[24].mxu0 }
 0x56f   : > { %v4893_v13 = vadd.f32 %v5419_v55, %v4892_v17  ;;  %v6080_v14 = vpop.f32.mrb[25].mxu0 }
 0x570   : > { %v4895_v58 = vpop.f32.mrb[26].mxu0 }
 0x571   : > { %v6081_v20 = vpop.f32.mrb[27].mxu0  ;;  %v4899_v62 = vsel %vm4898_vm11, %v4893_v13, -inf }
 0x572   : > { %4900 = vmax.xlane.f32.xlu0 %v4899_v62 }
 0x5ff   : > { %v4901_v61 = vpop.xlane.xlu0 %4900 }
 0x600   : > { %v4902_v6 = vsub.f32 %v4893_v13, %v4901_v61 }
 0x602   : > { %v4903_v0 = vmul.f32 1.442695, %v4902_v6 }
 0x604   : > { %6411 = vpow2.f32 %v4903_v0 }
 0x60e   : > { %v6412_v47 = vpop.eup %6411 }
 0x60f   : > { %v4905_v59 = vsel %vm4898_vm11, %v6412_v47, 0.0 }
 0x610   : > { %4906 = vadd.xlane.f32.xlu0 %v4905_v59 }
 0x69d   : > { %v4907_v12 = vpop.xlane.xlu0 %4906 }
 0x69e   : > { %6413 = vlog2.f32 %v4907_v12 }
 0x6a8   : > { %v6414_v44 = vpop.eup %6413 }
 0x6a9   : > { %v4909_v39 = vmul.f32 0.6931472, %v6414_v44 }
 0x6ab   : > { %v4910_v48 = vsub.f32 %v4902_v6, %v4909_v39 }
 0x6ad   : > { %4911 = vst.msk [vmem:[%s379_s14] sm:$0xf] %vm4898_vm11, %v4910_v48 }
 0x6ae   : > { %6429 = shalt.err (!%p6426_p3)
}
 0x6af   : > { %s6430_s30 = scalar_lea.hbm %s8526_s24, 64  ;;  %s6434_s16 = scalar_lea.hbm %s8580_s11, 128 }
 0x6b0   : > { %p6431_p4 = scmp.ne.s32.totalorder %s8526_s24, %s6430_s30  ;;  %p6435_p9 = scmp.lt.u32.totalorder %s8526_s24, %s8580_s11 }
 0x6b1   : > { %p6436_p10 = scmp.lt.u32.totalorder %s6434_s16, %s6430_s30  ;;  %p6438_p12 = scmp.lt.u32.totalorder %s6430_s30, %s8526_s24 }
 0x6b2   : > { %p6432_p7 = pnand %p6431_p4, %p6582_p5 }
 0x6b3   : > { %p6437_p11 = por %p6436_p10, %p6435_p9 }
 0x6b4   : > { %p6433_p8 = pneg %p6432_p7 }
 0x6b5   : > { %p6439_p13 = por %p6438_p12, %p6437_p11 }
 0x6b7   : > { %p6440_p0 = pnand %p6439_p13, %p6433_p8 }
 0x6b9   : > { %6443 = shalt.err (!%p6440_p0)
}
 0x6ba   : > { %6235 = dma.vmem_to_hbm [thread:$0]  (%p6582_p5), %s8528_s15, 64, %s8526_s24, %s4913_s25  }
 0x6bb PF: > { %p6241_p1 = scmp.ge.s32.totalorder %s6478_s20, 2  ;;  %s4938_s0 = sand.u32 1, %s6466_s17  }
 0x6bc   : > { %s4939_s29 = scalar_lea.sflag [#allocation3], %s4938_s0 }
 0x6bd   : > { %p6238_p2 = pnand %p6241_p1, %p6586_p6 }
 0x6bf   : > { %6461 = dma.done.wait (!%p6238_p2), %s4939_s29, 64  }
 0x6c0   : > { %6463 = vsyncadd (!%p6238_p2), %s4939_s29, 4294967232  ;;  %p21_p3 = scmp.ge.s32.totalorder %s6569_s23, 4   ;;  %s8660_s17 = smov %s6470_s18 }
 0x6c1   : > { %s8661_s18 = smov %s6474_s19  ;;  %s8662_s19 = smov %s6580_s26 }
 0x6c2   : > { %s8663_s20 = smov %s6569_s23  ;;  %23 = sbr.rel (!%p21_p3) target bundleno = 5 (0x5), region = 118 }
 0x6c9   :  { %4944 = vsyncpa [#allocation3], 1 }
 0x6ca   :  { %4946 = vsyncpa [#allocation3 + $0x1], 1 }

</bundles_post_ra>
